<compile_context>
chip_gen: v5e
topology: v5e:2x2
jax: 0.10.0
libtpu: 0.0.40
codegen_flags: <defaults>
</compile_context>

<pallas_src>
import functools

import numpy as np
import jax
import jax.numpy as jnp
from jax.experimental import pallas as pl
from jax.experimental.pallas import tpu as pltpu

# ---------------------------------------------------------------------------
# Static configuration (Python constants -> never traced)
# ---------------------------------------------------------------------------
LANE = 128
IN_FEAT = 12
OUT_DIM = 11            # real logit count; padded to LANE inside the kernel
HIDDEN = 128
G_PAD = 8               # graphs per mini-batch (one full sublane group)

# Weight-slab row offsets (all multiples of 128 -> aligned static slices).
_W1, _W2, _W3, _W4, _WL2, _WL3, _WLIN = 0, 128, 256, 512, 768, 1024, 1152
W_SLAB_ROWS, W_SLAB_COLS = 1280, 256
B_SLAB_ROWS = 8


# ---------------------------------------------------------------------------
# Fused Pallas kernel: 4x GCNConv -> global_max_pool -> (dropout) -> MLP head
# ---------------------------------------------------------------------------
def _gcn_kernel(a_ref, x_ref, gid_ref, w_ref, b_ref, o_ref, pooled_ref):
    b_in = pl.program_id(1)
    n_in = pl.num_programs(1)

    a = a_ref[0]                      # [N, N]    f32 normalized adjacency
    h = x_ref[0]                      # [N, 128]  f32 lane-padded node features

    def conv(h, row0, rows, cols, bias_row, relu):
        w = w_ref[row0:row0 + rows, 0:cols]             # bf16 [rows, cols]
        bias = b_ref[bias_row:bias_row + 1, 0:cols]     # f32  [1, cols]
        # aggregate first: (A @ H) @ W + b ; f32 accumulation on the MXU
        agg = jnp.dot(a, h, preferred_element_type=jnp.float32)
        out = jnp.dot(agg.astype(jnp.bfloat16), w,
                      preferred_element_type=jnp.float32) + bias
        return jnp.maximum(out, 0.0) if relu else out

    h = conv(h, _W1, 128, 128, 0, True)     # conv1: 12 (pad->128) -> 128
    h = conv(h, _W2, 128, 256, 1, True)     # conv2: 128 -> 256
    h = conv(h, _W3, 256, 256, 2, True)     # conv3: 256 -> 256
    h = conv(h, _W4, 256, 256, 3, False)    # conv4: 256 -> 256 (no relu)

    # global_max_pool: per-graph masked max. G_PAD is static and tiny, so this
    # is G_PAD 2-D selects + reductions (no [G, N, F] intermediate, no DMA'd mask).
    gid = gid_ref[0]                         # [N, 1] f32 node -> graph id
    neg = jnp.float32(-3.0e38)
    rows = []
    for g in range(G_PAD):
        sel = jnp.where(gid == jnp.float32(g), h, neg)        # [N, 256]
        rows.append(jnp.max(sel, axis=0, keepdims=True))      # [1, 256]
    pooled = jnp.concatenate(rows, axis=0)                    # [G_PAD, 256]
    # Guard empty / ghost graphs: clamp the sentinel so it can't overflow
    # to inf/NaN inside the head matmuls.
    pooled = jnp.where(pooled < jnp.float32(-1.0e37), 0.0, pooled)

    row0 = pl.multiple_of(b_in * G_PAD, G_PAD)
    pooled_ref[pl.ds(row0, G_PAD), :] = pooled

    # MLP head once per super-batch over all accumulated pooled rows:
    # better MXU M-shape and a dense output store.
    @pl.when(b_in == n_in - 1)
    def _():
        # TODO(synk): F.dropout(p=0.5, training=...) implemented as identity (eval mode).
        z = pooled_ref[...]                                   # [R, 256]
        wl2 = w_ref[_WL2:_WL2 + 256, 0:128]
        wl3 = w_ref[_WL3:_WL3 + 128, 0:128]
        wln = w_ref[_WLIN:_WLIN + 128, 0:128]
        z = jnp.dot(z.astype(jnp.bfloat16), wl2,
                    preferred_element_type=jnp.float32) + b_ref[4:5, 0:128]
        z = jnp.maximum(z, 0.0)
        z = jnp.dot(z.astype(jnp.bfloat16), wl3,
                    preferred_element_type=jnp.float32) + b_ref[5:6, 0:128]
        z = jnp.maximum(z, 0.0)
        z = jnp.dot(z.astype(jnp.bfloat16), wln,
                    preferred_element_type=jnp.float32) + b_ref[6:7, 0:128]
        o_ref[...] = z[None, :, :].astype(o_ref.dtype)        # [1, R, 128]


# ---------------------------------------------------------------------------
# Host-side glue: normalized adjacency, param init, slab packing, forward
# ---------------------------------------------------------------------------
def normalized_adjacency(edge_index, num_nodes):
    """A_hat = D^-1/2 (A + I) D^-1/2, matching PyG GCNConv's gcn_norm."""
    src, dst = edge_index[0], edge_index[1]
    a = jnp.zeros((num_nodes, num_nodes), jnp.float32).at[dst, src].add(1.0)
    a = a + jnp.eye(num_nodes, dtype=jnp.float32)
    deg = a.sum(axis=1)
    dinv = jnp.where(deg > 0, 1.0 / jnp.sqrt(deg), 0.0)
    return dinv[:, None] * a * dinv[None, :]


def init_params(key):
    # Deterministic synthetic init (uniform +-1/sqrt(fan_in), like torch Linear).
    # NOTE: the module's unused `linear4` is intentionally not materialized.
    dims = [
        ("conv1", IN_FEAT, HIDDEN),
        ("conv2", 128, 256),
        ("conv3", 256, 256),
        ("conv4", 256, 256),
        ("linear2", 256, 128),
        ("linear3", 128, 128),
        ("lin", 128, OUT_DIM),
    ]
    params = {}
    for name, fin, fout in dims:
        key, kw, kb = jax.random.split(key, 3)
        s = 1.0 / float(fin) ** 0.5
        params[name] = {
            "w": jax.random.uniform(kw, (fin, fout), jnp.float32, -s, s),
            "b": jax.random.uniform(kb, (fout,), jnp.float32, -s, s),
        }
    return params


def build_param_slabs(params):
    """Concatenate all weights into one bf16 slab and all biases into one f32 slab."""
    wslab = np.zeros((W_SLAB_ROWS, W_SLAB_COLS), np.float32)
    bslab = np.zeros((B_SLAB_ROWS, W_SLAB_COLS), np.float32)

    def put(name, row0, bias_row):
        w = np.asarray(params[name]["w"])   # row-pad (conv1) / col-pad (lin) via zeros
        b = np.asarray(params[name]["b"])
        wslab[row0:row0 + w.shape[0], :w.shape[1]] = w
        bslab[bias_row, :b.shape[0]] = b

    put("conv1", _W1, 0)
    put("conv2", _W2, 1)
    put("conv3", _W3, 2)
    put("conv4", _W4, 3)
    put("linear2", _WL2, 4)
    put("linear3", _WL3, 5)
    put("lin", _WLIN, 6)
    return jnp.asarray(wslab, jnp.bfloat16), jnp.asarray(bslab, jnp.float32)


def gcn_forward(wslab, bslab, a_hat, x, gid, *, bps, graphs_per_batch):
    """a_hat: [B,N,N] f32; x: [B,N,12] f32; gid: [B,N] int32 node->graph id (per batch)."""
    total_b, n, _ = a_hat.shape
    assert total_b % bps == 0
    sb = total_b // bps
    rows = bps * G_PAD

    # Lane padding of node features (12 -> 128 zero columns).
    x_p = jnp.zeros((total_b, n, LANE), jnp.float32).at[:, :, :IN_FEAT].set(x)
    gid_col = gid.astype(jnp.float32)[:, :, None]                 # [B, N, 1]

    agg_cols = 128 + 128 + 256 + 256
    wmul = 128 * 128 + 128 * 256 + 256 * 256 + 256 * 256
    flops = (total_b * (2 * n * n * agg_cols + 2 * n * wmul)
             + sb * 2 * rows * (256 * 128 + 128 * 128 + 128 * 128))
    bytes_accessed = (W_SLAB_ROWS * W_SLAB_COLS * 2 + B_SLAB_ROWS * W_SLAB_COLS * 4
                      + total_b * (n * n + n * LANE + n) * 4
                      + sb * rows * LANE * 4)

    batch_idx = lambda s, b: (s * bps + b, 0, 0)
    const_idx = lambda s, b: (0, 0)

    out = pl.pallas_call(
        _gcn_kernel,
        out_shape=jax.ShapeDtypeStruct((sb, rows, LANE), jnp.float32),
        grid=(sb, bps),
        in_specs=[
            pl.BlockSpec((1, n, n), batch_idx),                   # A_hat (per batch)
            pl.BlockSpec((1, n, LANE), batch_idx),                # x     (per batch)
            pl.BlockSpec((1, n, 1), batch_idx),                   # graph ids (per batch)
            pl.BlockSpec((W_SLAB_ROWS, W_SLAB_COLS), const_idx),  # weights (resident)
            pl.BlockSpec((B_SLAB_ROWS, W_SLAB_COLS), const_idx),  # biases  (resident)
        ],
        out_specs=pl.BlockSpec((1, rows, LANE), lambda s, b: (s, 0, 0)),
        scratch_shapes=[pltpu.VMEM((rows, 256), jnp.float32)],    # pooled accumulator
        compiler_params=pltpu.CompilerParams(
            dimension_semantics=("parallel", "arbitrary"),
            vmem_limit_bytes=32 * 1024 * 1024),
        cost_estimate=pl.CostEstimate(flops=flops, transcendentals=0,
                                      bytes_accessed=bytes_accessed),
    )(a_hat, x_p, gid_col, wslab, bslab)

    # Static slicing only (OUT_DIM / graphs_per_batch are Python ints).
    out3 = out.reshape(sb * bps, G_PAD, LANE)
    return out3[:, :graphs_per_batch, :OUT_DIM].reshape(-1, OUT_DIM)


# ---------------------------------------------------------------------------
# Main
# ---------------------------------------------------------------------------
if __name__ == "__main__":
    key = jax.random.PRNGKey(0)
    kx, kp = jax.random.split(key)

    SB, BPS = 2, 2                    # super-batches (parallel) x batches per super-batch
    TOTAL_B = SB * BPS
    G, P = G_PAD, 8                   # graphs per batch, nodes per graph
    N = G * P                         # 64 nodes per batch

    x = jax.random.normal(kx, (TOTAL_B, N, IN_FEAT), jnp.float32)

    # Ring graphs, undirected (both directions), identical topology per batch.
    src, dst = [], []
    for g in range(G):
        base = g * P
        for i in range(P):
            u, v = base + i, base + (i + 1) % P
            src += [u, v]
            dst += [v, u]
    edge_index = jnp.array([src, dst], dtype=jnp.int32)
    a_one = normalized_adjacency(edge_index, N)                       # [N, N]
    a_hat = jnp.broadcast_to(a_one[None], (TOTAL_B, N, N))

    batch_vec = jnp.repeat(jnp.arange(G, dtype=jnp.int32), P)         # [N]
    gid = jnp.broadcast_to(batch_vec[None], (TOTAL_B, N))

    params = init_params(kp)
    wslab, bslab = build_param_slabs(params)          # one-time padding + bf16 packing

    fwd = jax.jit(functools.partial(gcn_forward, bps=BPS, graphs_per_batch=G))
    logits = jax.block_until_ready(fwd(wslab, bslab, a_hat, x, gid))

    assert logits.shape == (TOTAL_B * G, OUT_DIM) and logits.dtype == jnp.float32
    assert bool(jnp.all(jnp.isfinite(logits)))
    print("KERNEL_OK")
</pallas_src>

<mosaic_0001>
module attributes {stable_mosaic.version = 11 : i64} {
  func.func @_gcn_kernel(%arg0: i32, %arg1: i32, %arg2: memref<1x64x64xf32, #tpu.memory_space<vmem>>, %arg3: memref<1x64x128xf32, #tpu.memory_space<vmem>>, %arg4: memref<1x64x1xf32, #tpu.memory_space<vmem>>, %arg5: memref<1280x256xbf16, #tpu.memory_space<vmem>>, %arg6: memref<8x256xf32, #tpu.memory_space<vmem>>, %arg7: memref<1x16x128xf32, #tpu.memory_space<vmem>>, %arg8: memref<16x256xf32, #tpu.memory_space<vmem>>) attributes {dimension_semantics = [#tpu.dimension_semantics<parallel>, #tpu.dimension_semantics<arbitrary>], iteration_bounds = array<i64: 2, 2>, scalar_prefetch = 0 : i64, scratch_operands = 1 : i64, tpu.core_type = #tpu.core_type<tc>, window_params = [{transform_indices = @transform_0, window_bounds = array<i64: 1, 64, 64>}, {transform_indices = @transform_1, window_bounds = array<i64: 1, 64, 128>}, {transform_indices = @transform_2, window_bounds = array<i64: 1, 64, 1>}, {pipeline_mode = #tpu.pipeline_mode<synchronous>, transform_indices = @transform_3, window_bounds = array<i64: 1280, 256>}, {pipeline_mode = #tpu.pipeline_mode<synchronous>, transform_indices = @transform_4, window_bounds = array<i64: 8, 256>}, {transform_indices = @transform_5, window_bounds = array<i64: 1, 16, 128>}]} {
    %c0 = arith.constant 0 : index
    %c0_0 = arith.constant 0 : index
    %c0_1 = arith.constant 0 : index
    %0 = vector.load %arg2[%c0, %c0_0, %c0_1] : memref<1x64x64xf32, #tpu.memory_space<vmem>>, vector<1x64x64xf32>
    %1 = vector.shape_cast %0 : vector<1x64x64xf32> to vector<64x64xf32>
    %c0_2 = arith.constant 0 : index
    %c0_3 = arith.constant 0 : index
    %c0_4 = arith.constant 0 : index
    %2 = vector.load %arg3[%c0_2, %c0_3, %c0_4] : memref<1x64x128xf32, #tpu.memory_space<vmem>>, vector<1x64x128xf32>
    %3 = vector.shape_cast %2 : vector<1x64x128xf32> to vector<64x128xf32>
    %c0_5 = arith.constant 0 : index
    %c0_6 = arith.constant 0 : index
    %4 = vector.load %arg5[%c0_5, %c0_6] : memref<1280x256xbf16, #tpu.memory_space<vmem>>, vector<128x128xbf16>
    %c0_7 = arith.constant 0 : index
    %c0_8 = arith.constant 0 : index
    %5 = vector.load %arg6[%c0_7, %c0_8] : memref<8x256xf32, #tpu.memory_space<vmem>>, vector<1x128xf32>
    %cst = arith.constant dense<0.000000e+00> : vector<64x128xf32>
    %6 = tpu.matmul %1, %3, %cst {dimension_numbers = #tpu.dot_dimension_numbers<[1], [0], [0], [1], [0, 0, 1, 1], [], []>} : vector<64x64xf32>, vector<64x128xf32>, vector<64x128xf32> -> vector<64x128xf32>
    %7 = arith.truncf %6 : vector<64x128xf32> to vector<64x128xbf16>
    %cst_9 = arith.constant dense<0.000000e+00> : vector<64x128xf32>
    %8 = tpu.matmul %7, %4, %cst_9 {dimension_numbers = #tpu.dot_dimension_numbers<[1], [0], [0], [1], [0, 0, 1, 1], [], []>} : vector<64x128xbf16>, vector<128x128xbf16>, vector<64x128xf32> -> vector<64x128xf32>
    %9 = vector.broadcast %5 : vector<1x128xf32> to vector<64x128xf32>
    %10 = arith.addf %8, %9 : vector<64x128xf32>
    %cst_10 = arith.constant 0.000000e+00 : f32
    %11 = vector.broadcast %cst_10 : f32 to vector<64x128xf32>
    %12 = arith.maximumf %10, %11 : vector<64x128xf32>
    %c128 = arith.constant 128 : index
    %c0_11 = arith.constant 0 : index
    %13 = vector.load %arg5[%c128, %c0_11] : memref<1280x256xbf16, #tpu.memory_space<vmem>>, vector<128x256xbf16>
    %c1 = arith.constant 1 : index
    %c0_12 = arith.constant 0 : index
    %14 = vector.load %arg6[%c1, %c0_12] : memref<8x256xf32, #tpu.memory_space<vmem>>, vector<1x256xf32>
    %cst_13 = arith.constant dense<0.000000e+00> : vector<64x128xf32>
    %15 = tpu.matmul %1, %12, %cst_13 {dimension_numbers = #tpu.dot_dimension_numbers<[1], [0], [0], [1], [0, 0, 1, 1], [], []>} : vector<64x64xf32>, vector<64x128xf32>, vector<64x128xf32> -> vector<64x128xf32>
    %16 = arith.truncf %15 : vector<64x128xf32> to vector<64x128xbf16>
    %cst_14 = arith.constant dense<0.000000e+00> : vector<64x256xf32>
    %17 = tpu.matmul %16, %13, %cst_14 {dimension_numbers = #tpu.dot_dimension_numbers<[1], [0], [0], [1], [0, 0, 1, 1], [], []>} : vector<64x128xbf16>, vector<128x256xbf16>, vector<64x256xf32> -> vector<64x256xf32>
    %18 = vector.broadcast %14 : vector<1x256xf32> to vector<64x256xf32>
    %19 = arith.addf %17, %18 : vector<64x256xf32>
    %cst_15 = arith.constant 0.000000e+00 : f32
    %20 = vector.broadcast %cst_15 : f32 to vector<64x256xf32>
    %21 = arith.maximumf %19, %20 : vector<64x256xf32>
    %c256 = arith.constant 256 : index
    %c0_16 = arith.constant 0 : index
    %22 = vector.load %arg5[%c256, %c0_16] : memref<1280x256xbf16, #tpu.memory_space<vmem>>, vector<256x256xbf16>
    %c2 = arith.constant 2 : index
    %c0_17 = arith.constant 0 : index
    %23 = vector.load %arg6[%c2, %c0_17] : memref<8x256xf32, #tpu.memory_space<vmem>>, vector<1x256xf32>
    %cst_18 = arith.constant dense<0.000000e+00> : vector<64x256xf32>
    %24 = tpu.matmul %1, %21, %cst_18 {dimension_numbers = #tpu.dot_dimension_numbers<[1], [0], [0], [1], [0, 0, 1, 1], [], []>} : vector<64x64xf32>, vector<64x256xf32>, vector<64x256xf32> -> vector<64x256xf32>
    %25 = arith.truncf %24 : vector<64x256xf32> to vector<64x256xbf16>
    %cst_19 = arith.constant dense<0.000000e+00> : vector<64x256xf32>
    %26 = tpu.matmul %25, %22, %cst_19 {dimension_numbers = #tpu.dot_dimension_numbers<[1], [0], [0], [1], [0, 0, 1, 1], [], []>} : vector<64x256xbf16>, vector<256x256xbf16>, vector<64x256xf32> -> vector<64x256xf32>
    %27 = vector.broadcast %23 : vector<1x256xf32> to vector<64x256xf32>
    %28 = arith.addf %26, %27 : vector<64x256xf32>
    %cst_20 = arith.constant 0.000000e+00 : f32
    %29 = vector.broadcast %cst_20 : f32 to vector<64x256xf32>
    %30 = arith.maximumf %28, %29 : vector<64x256xf32>
    %c512 = arith.constant 512 : index
    %c0_21 = arith.constant 0 : index
    %31 = vector.load %arg5[%c512, %c0_21] : memref<1280x256xbf16, #tpu.memory_space<vmem>>, vector<256x256xbf16>
    %c3 = arith.constant 3 : index
    %c0_22 = arith.constant 0 : index
    %32 = vector.load %arg6[%c3, %c0_22] : memref<8x256xf32, #tpu.memory_space<vmem>>, vector<1x256xf32>
    %cst_23 = arith.constant dense<0.000000e+00> : vector<64x256xf32>
    %33 = tpu.matmul %1, %30, %cst_23 {dimension_numbers = #tpu.dot_dimension_numbers<[1], [0], [0], [1], [0, 0, 1, 1], [], []>} : vector<64x64xf32>, vector<64x256xf32>, vector<64x256xf32> -> vector<64x256xf32>
    %34 = arith.truncf %33 : vector<64x256xf32> to vector<64x256xbf16>
    %cst_24 = arith.constant dense<0.000000e+00> : vector<64x256xf32>
    %35 = tpu.matmul %34, %31, %cst_24 {dimension_numbers = #tpu.dot_dimension_numbers<[1], [0], [0], [1], [0, 0, 1, 1], [], []>} : vector<64x256xbf16>, vector<256x256xbf16>, vector<64x256xf32> -> vector<64x256xf32>
    %36 = vector.broadcast %32 : vector<1x256xf32> to vector<64x256xf32>
    %37 = arith.addf %35, %36 : vector<64x256xf32>
    %c0_25 = arith.constant 0 : index
    %c0_26 = arith.constant 0 : index
    %c0_27 = arith.constant 0 : index
    %38 = vector.load %arg4[%c0_25, %c0_26, %c0_27] : memref<1x64x1xf32, #tpu.memory_space<vmem>>, vector<1x64x1xf32>
    %39 = vector.shape_cast %38 : vector<1x64x1xf32> to vector<64x1xf32>
    %cst_28 = arith.constant 0.000000e+00 : f32
    %40 = vector.broadcast %cst_28 : f32 to vector<64x1xf32>
    %41 = arith.cmpf oeq, %39, %40 : vector<64x1xf32>
    %cst_29 = arith.constant -3.000000e+38 : f32
    %42 = vector.shape_cast %41 : vector<64x1xi1> to vector<64x1xi1>
    %43 = vector.broadcast %42 : vector<64x1xi1> to vector<64x256xi1>
    %44 = vector.broadcast %cst_29 : f32 to vector<64x256xf32>
    %45 = arith.select %43, %37, %44 : vector<64x256xi1>, vector<64x256xf32>
    %cst_30 = arith.constant dense<0xFF800000> : vector<256xf32>
    %46 = vector.multi_reduction <maximumf>, %45, %cst_30 [0] : vector<64x256xf32> to vector<256xf32>
    %47 = vector.shape_cast %46 : vector<256xf32> to vector<1x256xf32>
    %cst_31 = arith.constant 1.000000e+00 : f32
    %48 = vector.broadcast %cst_31 : f32 to vector<64x1xf32>
    %49 = arith.cmpf oeq, %39, %48 : vector<64x1xf32>
    %cst_32 = arith.constant -3.000000e+38 : f32
    %50 = vector.shape_cast %49 : vector<64x1xi1> to vector<64x1xi1>
    %51 = vector.broadcast %50 : vector<64x1xi1> to vector<64x256xi1>
    %52 = vector.broadcast %cst_32 : f32 to vector<64x256xf32>
    %53 = arith.select %51, %37, %52 : vector<64x256xi1>, vector<64x256xf32>
    %cst_33 = arith.constant dense<0xFF800000> : vector<256xf32>
    %54 = vector.multi_reduction <maximumf>, %53, %cst_33 [0] : vector<64x256xf32> to vector<256xf32>
    %55 = vector.shape_cast %54 : vector<256xf32> to vector<1x256xf32>
    %cst_34 = arith.constant 2.000000e+00 : f32
    %56 = vector.broadcast %cst_34 : f32 to vector<64x1xf32>
    %57 = arith.cmpf oeq, %39, %56 : vector<64x1xf32>
    %cst_35 = arith.constant -3.000000e+38 : f32
    %58 = vector.shape_cast %57 : vector<64x1xi1> to vector<64x1xi1>
    %59 = vector.broadcast %58 : vector<64x1xi1> to vector<64x256xi1>
    %60 = vector.broadcast %cst_35 : f32 to vector<64x256xf32>
    %61 = arith.select %59, %37, %60 : vector<64x256xi1>, vector<64x256xf32>
    %cst_36 = arith.constant dense<0xFF800000> : vector<256xf32>
    %62 = vector.multi_reduction <maximumf>, %61, %cst_36 [0] : vector<64x256xf32> to vector<256xf32>
    %63 = vector.shape_cast %62 : vector<256xf32> to vector<1x256xf32>
    %cst_37 = arith.constant 3.000000e+00 : f32
    %64 = vector.broadcast %cst_37 : f32 to vector<64x1xf32>
    %65 = arith.cmpf oeq, %39, %64 : vector<64x1xf32>
    %cst_38 = arith.constant -3.000000e+38 : f32
    %66 = vector.shape_cast %65 : vector<64x1xi1> to vector<64x1xi1>
    %67 = vector.broadcast %66 : vector<64x1xi1> to vector<64x256xi1>
    %68 = vector.broadcast %cst_38 : f32 to vector<64x256xf32>
    %69 = arith.select %67, %37, %68 : vector<64x256xi1>, vector<64x256xf32>
    %cst_39 = arith.constant dense<0xFF800000> : vector<256xf32>
    %70 = vector.multi_reduction <maximumf>, %69, %cst_39 [0] : vector<64x256xf32> to vector<256xf32>
    %71 = vector.shape_cast %70 : vector<256xf32> to vector<1x256xf32>
    %cst_40 = arith.constant 4.000000e+00 : f32
    %72 = vector.broadcast %cst_40 : f32 to vector<64x1xf32>
    %73 = arith.cmpf oeq, %39, %72 : vector<64x1xf32>
    %cst_41 = arith.constant -3.000000e+38 : f32
    %74 = vector.shape_cast %73 : vector<64x1xi1> to vector<64x1xi1>
    %75 = vector.broadcast %74 : vector<64x1xi1> to vector<64x256xi1>
    %76 = vector.broadcast %cst_41 : f32 to vector<64x256xf32>
    %77 = arith.select %75, %37, %76 : vector<64x256xi1>, vector<64x256xf32>
    %cst_42 = arith.constant dense<0xFF800000> : vector<256xf32>
    %78 = vector.multi_reduction <maximumf>, %77, %cst_42 [0] : vector<64x256xf32> to vector<256xf32>
    %79 = vector.shape_cast %78 : vector<256xf32> to vector<1x256xf32>
    %cst_43 = arith.constant 5.000000e+00 : f32
    %80 = vector.broadcast %cst_43 : f32 to vector<64x1xf32>
    %81 = arith.cmpf oeq, %39, %80 : vector<64x1xf32>
    %cst_44 = arith.constant -3.000000e+38 : f32
    %82 = vector.shape_cast %81 : vector<64x1xi1> to vector<64x1xi1>
    %83 = vector.broadcast %82 : vector<64x1xi1> to vector<64x256xi1>
    %84 = vector.broadcast %cst_44 : f32 to vector<64x256xf32>
    %85 = arith.select %83, %37, %84 : vector<64x256xi1>, vector<64x256xf32>
    %cst_45 = arith.constant dense<0xFF800000> : vector<256xf32>
    %86 = vector.multi_reduction <maximumf>, %85, %cst_45 [0] : vector<64x256xf32> to vector<256xf32>
    %87 = vector.shape_cast %86 : vector<256xf32> to vector<1x256xf32>
    %cst_46 = arith.constant 6.000000e+00 : f32
    %88 = vector.broadcast %cst_46 : f32 to vector<64x1xf32>
    %89 = arith.cmpf oeq, %39, %88 : vector<64x1xf32>
    %cst_47 = arith.constant -3.000000e+38 : f32
    %90 = vector.shape_cast %89 : vector<64x1xi1> to vector<64x1xi1>
    %91 = vector.broadcast %90 : vector<64x1xi1> to vector<64x256xi1>
    %92 = vector.broadcast %cst_47 : f32 to vector<64x256xf32>
    %93 = arith.select %91, %37, %92 : vector<64x256xi1>, vector<64x256xf32>
    %cst_48 = arith.constant dense<0xFF800000> : vector<256xf32>
    %94 = vector.multi_reduction <maximumf>, %93, %cst_48 [0] : vector<64x256xf32> to vector<256xf32>
    %95 = vector.shape_cast %94 : vector<256xf32> to vector<1x256xf32>
    %cst_49 = arith.constant 7.000000e+00 : f32
    %96 = vector.broadcast %cst_49 : f32 to vector<64x1xf32>
    %97 = arith.cmpf oeq, %39, %96 : vector<64x1xf32>
    %cst_50 = arith.constant -3.000000e+38 : f32
    %98 = vector.shape_cast %97 : vector<64x1xi1> to vector<64x1xi1>
    %99 = vector.broadcast %98 : vector<64x1xi1> to vector<64x256xi1>
    %100 = vector.broadcast %cst_50 : f32 to vector<64x256xf32>
    %101 = arith.select %99, %37, %100 : vector<64x256xi1>, vector<64x256xf32>
    %cst_51 = arith.constant dense<0xFF800000> : vector<256xf32>
    %102 = vector.multi_reduction <maximumf>, %101, %cst_51 [0] : vector<64x256xf32> to vector<256xf32>
    %103 = vector.shape_cast %102 : vector<256xf32> to vector<1x256xf32>
    %104 = tpu.concatenate %47, %55, %63, %71, %79, %87, %95, %103 in 0 : vector<1x256xf32>, vector<1x256xf32>, vector<1x256xf32>, vector<1x256xf32>, vector<1x256xf32>, vector<1x256xf32>, vector<1x256xf32>, vector<1x256xf32> -> vector<8x256xf32>
    %cst_52 = arith.constant -9.99999993E+36 : f32
    %105 = vector.broadcast %cst_52 : f32 to vector<8x256xf32>
    %106 = arith.cmpf olt, %104, %105 : vector<8x256xf32>
    %cst_53 = arith.constant 0.000000e+00 : f32
    %107 = vector.broadcast %cst_53 : f32 to vector<8x256xf32>
    %108 = arith.select %106, %107, %104 : vector<8x256xi1>, vector<8x256xf32>
    %c8_i32 = arith.constant 8 : i32
    %109 = arith.muli %arg1, %c8_i32 : i32
    %110 = tpu.assume_multiple %109, 8 : i32
    %111 = arith.index_cast %110 : i32 to index
    %c0_54 = arith.constant 0 : index
    %112 = vector.load %arg8[%111, %c0_54] : memref<16x256xf32, #tpu.memory_space<vmem>>, vector<8x256xf32>
    tpu.vector_store %arg8[%111, %c0_54], %108 {strides = array<i32>} : memref<16x256xf32, #tpu.memory_space<vmem>>, vector<8x256xf32>,
    %c1_i32 = arith.constant 1 : i32
    %113 = arith.cmpi eq, %arg1, %c1_i32 : i32
    %114 = arith.extui %113 : i1 to i32
    %c0_i32 = arith.constant 0 : i32
    %115 = arith.cmpi ne, %114, %c0_i32 : i32
    scf.if %115 {
      %c0_55 = arith.constant 0 : index
      %c0_56 = arith.constant 0 : index
      %116 = vector.load %arg8[%c0_55, %c0_56] : memref<16x256xf32, #tpu.memory_space<vmem>>, vector<16x256xf32>
      %c768 = arith.constant 768 : index
      %c0_57 = arith.constant 0 : index
      %117 = vector.load %arg5[%c768, %c0_57] : memref<1280x256xbf16, #tpu.memory_space<vmem>>, vector<256x128xbf16>
      %c1024 = arith.constant 1024 : index
      %c0_58 = arith.constant 0 : index
      %118 = vector.load %arg5[%c1024, %c0_58] : memref<1280x256xbf16, #tpu.memory_space<vmem>>, vector<128x128xbf16>
      %c1152 = arith.constant 1152 : index
      %c0_59 = arith.constant 0 : index
      %119 = vector.load %arg5[%c1152, %c0_59] : memref<1280x256xbf16, #tpu.memory_space<vmem>>, vector<128x128xbf16>
      %120 = arith.truncf %116 : vector<16x256xf32> to vector<16x256xbf16>
      %cst_60 = arith.constant dense<0.000000e+00> : vector<16x128xf32>
      %121 = tpu.matmul %120, %117, %cst_60 {dimension_numbers = #tpu.dot_dimension_numbers<[1], [0], [0], [1], [0, 0, 1, 1], [], []>} : vector<16x256xbf16>, vector<256x128xbf16>, vector<16x128xf32> -> vector<16x128xf32>
      %c4 = arith.constant 4 : index
      %c0_61 = arith.constant 0 : index
      %122 = vector.load %arg6[%c4, %c0_61] : memref<8x256xf32, #tpu.memory_space<vmem>>, vector<1x128xf32>
      %123 = vector.broadcast %122 : vector<1x128xf32> to vector<16x128xf32>
      %124 = arith.addf %121, %123 : vector<16x128xf32>
      %cst_62 = arith.constant 0.000000e+00 : f32
      %125 = vector.broadcast %cst_62 : f32 to vector<16x128xf32>
      %126 = arith.maximumf %124, %125 : vector<16x128xf32>
      %127 = arith.truncf %126 : vector<16x128xf32> to vector<16x128xbf16>
      %cst_63 = arith.constant dense<0.000000e+00> : vector<16x128xf32>
      %128 = tpu.matmul %127, %118, %cst_63 {dimension_numbers = #tpu.dot_dimension_numbers<[1], [0], [0], [1], [0, 0, 1, 1], [], []>} : vector<16x128xbf16>, vector<128x128xbf16>, vector<16x128xf32> -> vector<16x128xf32>
      %c5 = arith.constant 5 : index
      %c0_64 = arith.constant 0 : index
      %129 = vector.load %arg6[%c5, %c0_64] : memref<8x256xf32, #tpu.memory_space<vmem>>, vector<1x128xf32>
      %130 = vector.broadcast %129 : vector<1x128xf32> to vector<16x128xf32>
      %131 = arith.addf %128, %130 : vector<16x128xf32>
      %cst_65 = arith.constant 0.000000e+00 : f32
      %132 = vector.broadcast %cst_65 : f32 to vector<16x128xf32>
      %133 = arith.maximumf %131, %132 : vector<16x128xf32>
      %134 = arith.truncf %133 : vector<16x128xf32> to vector<16x128xbf16>
      %cst_66 = arith.constant dense<0.000000e+00> : vector<16x128xf32>
      %135 = tpu.matmul %134, %119, %cst_66 {dimension_numbers = #tpu.dot_dimension_numbers<[1], [0], [0], [1], [0, 0, 1, 1], [], []>} : vector<16x128xbf16>, vector<128x128xbf16>, vector<16x128xf32> -> vector<16x128xf32>
      %c6 = arith.constant 6 : index
      %c0_67 = arith.constant 0 : index
      %136 = vector.load %arg6[%c6, %c0_67] : memref<8x256xf32, #tpu.memory_space<vmem>>, vector<1x128xf32>
      %137 = vector.broadcast %136 : vector<1x128xf32> to vector<16x128xf32>
      %138 = arith.addf %135, %137 : vector<16x128xf32>
      %139 = vector.shape_cast %138 : vector<16x128xf32> to vector<1x16x128xf32>
      %c0_68 = arith.constant 0 : index
      %c0_69 = arith.constant 0 : index
      %c0_70 = arith.constant 0 : index
      %140 = vector.load %arg7[%c0_68, %c0_69, %c0_70] : memref<1x16x128xf32, #tpu.memory_space<vmem>>, vector<1x16x128xf32>
      tpu.vector_store %arg7[%c0_68, %c0_69, %c0_70], %139 {strides = array<i32>} : memref<1x16x128xf32, #tpu.memory_space<vmem>>, vector<1x16x128xf32>,
    } else {
    }
    return
  }
  func.func @transform_0(%arg0: i32, %arg1: i32) -> (i32, i32, i32) {
    %c2_i32 = arith.constant 2 : i32
    %0 = arith.muli %arg0, %c2_i32 : i32
    %1 = arith.addi %0, %arg1 : i32
    %c0_i32 = arith.constant 0 : i32
    %c0_i32_0 = arith.constant 0 : i32
    %c0_i32_1 = arith.constant 0 : i32
    return %1, %c0_i32, %c0_i32_0 : i32, i32, i32
  }
  func.func @transform_1(%arg0: i32, %arg1: i32) -> (i32, i32, i32) {
    %c2_i32 = arith.constant 2 : i32
    %0 = arith.muli %arg0, %c2_i32 : i32
    %1 = arith.addi %0, %arg1 : i32
    %c0_i32 = arith.constant 0 : i32
    %c0_i32_0 = arith.constant 0 : i32
    %c0_i32_1 = arith.constant 0 : i32
    return %1, %c0_i32, %c0_i32_0 : i32, i32, i32
  }
  func.func @transform_2(%arg0: i32, %arg1: i32) -> (i32, i32, i32) {
    %c2_i32 = arith.constant 2 : i32
    %0 = arith.muli %arg0, %c2_i32 : i32
    %1 = arith.addi %0, %arg1 : i32
    %c0_i32 = arith.constant 0 : i32
    %c0_i32_0 = arith.constant 0 : i32
    %c0_i32_1 = arith.constant 0 : i32
    return %1, %c0_i32, %c0_i32_0 : i32, i32, i32
  }
  func.func @transform_3(%arg0: i32, %arg1: i32) -> (i32, i32) {
    %c0_i32 = arith.constant 0 : i32
    %c0_i32_0 = arith.constant 0 : i32
    %c0_i32_1 = arith.constant 0 : i32
    return %c0_i32, %c0_i32_0 : i32, i32
  }
  func.func @transform_4(%arg0: i32, %arg1: i32) -> (i32, i32) {
    %c0_i32 = arith.constant 0 : i32
    %c0_i32_0 = arith.constant 0 : i32
    %c0_i32_1 = arith.constant 0 : i32
    return %c0_i32, %c0_i32_0 : i32, i32
  }
  func.func @transform_5(%arg0: i32, %arg1: i32) -> (i32, i32, i32) {
    %c0_i32 = arith.constant 0 : i32
    %c0_i32_0 = arith.constant 0 : i32
    %c0_i32_1 = arith.constant 0 : i32
    return %arg0, %c0_i32, %c0_i32_0 : i32, i32, i32
  }
}

</mosaic_0001>

<bundles_post_ra>
// kernel: gcn_forward.1
= control target key start
LH: loop header
LB: loop body
LE: loop exit
PB: predicated region body
PF: predicated region fallthrough
CT: control target
= control target key end

     0   :  { %10 = vsyncpa [#allocation4], 0  ;;  %s3638_s18 = smov 0   ;;  %s3640_s19 = smov 0   ;;  %s5042_s0 = inlined_call_operand.vmem [shape: f32[4,64,64], index: 0, kind: input, shape index: {}]   ;;  %s5043_s1 = inlined_call_operand.vmem [shape: f32[4,64,128], index: 1, kind: input, shape index: {}]   ;;  %s5044_s2 = inlined_call_operand.vmem [shape: f32[4,64,1], index: 2, kind: input, shape index: {}]   ;;  %s5045_s3 = inlined_call_operand.hbm [shape: bf16[1280,256], index: 3, kind: input, shape index: {}]   ;;  %s5046_s4 = inlined_call_operand.vmem [shape: f32[8,256], index: 4, kind: input, shape index: {}]   ;;  %s5047_s5 = inlined_call_operand.vmem [shape: f32[2,16,128], index: 5, kind: output, shape index: {}]  }
   0x1   :  { %s3642_s20 = smov 0   ;;  %s3644_s21 = smov 0  }
   0x2   :  { %s3646_s22 = smov 0  }
   0x3 LB: > { %s2771_s23 = sadd.s32 4294967295, %s3602_s22   ;;  %s25_s24 = sadd.s32 1, %s3594_s20  ;;  %s3602_s22 = sphi %s3646_s22, %s16_s22   ;;  %s3598_s21 = sphi %s3644_s21, %s5282_s21   ;;  %s3594_s20 = sphi %s3642_s20, %s5281_s20   ;;  %s3590_s19 = sphi %s3640_s19, %s5280_s19   ;;  %s3586_s18 = sphi %s3638_s18, %s5279_s18  }
   0x4   : > { %p26_p0 = scmp.ge.s32.totalorder %s25_s24, 2  ;;  %s28_s25 = sadd.s32 1, %s3598_s21 }
   0x5   : > { %p2779_p1 = scmp.ge.s32.totalorder %s3602_s22, 1  ;;  %p191_p2 = scmp.lt.s32.totalorder %s3602_s22, 5 }
   0x6   : > { %s5284_s24 = smov (%p26_p0, %s25_s24), 0  ;;  %s5286_s25 = smov (!%p26_p0, %s28_s25), %s3598_s21 }
   0x7   : > { %p3671_p3 = pnand %p2779_p1, %p191_p2  ;;  %p30_p4 = scmp.ge.s32.totalorder %s5286_s25, 2 }
   0x8   : > { %p3675_p5 = scmp.eq.s32.totalorder %s2771_s23, 0  ;;  %s202_s30 = sshll.u32 %s5045_s3, 4  ;;  %s203_s30 = int_to_ptr.hbm [resolvable:$true] %s202_s30 }
   0x9   : > { %p3469_p6 = pneg %p3671_p3  ;;  %s5288_s25 = smov (%p30_p4, %s5286_s25), 0 }
   0xa   : > { %s3604_s6 = smov [#allocation3]   ;;  %s3605_s8 = smov 128  }
   0xb   : > { %s204_s7 = sshll.u32 %s3604_s6, 4  ;;  %p3470_p7 = pnand %p3675_p5, %p3469_p6  ;;  %s205_s7 = int_to_ptr.vmem [resolvable:$true] %s204_s7 }
   0xc   : > { %s3606_s9 = smov 8   ;;  %259 = sbr.rel (%p3671_p3) target bundleno = 1951 (0x79f), region = 40 }
   0xd   : > { %3472 = dma.hbm_to_vmem [thread:$0]  (!%p3470_p7), %s203_s30, 20480, %s205_s7, [#allocation4], %s3605_s8, %s3605_s8, %s3606_s9  }
  0x11   : > { %3581 = dma.done.wait (%p3675_p5), [#allocation4], 20480  }
  0x12   : > { %3583 = vsyncadd (%p3675_p5), [#allocation4], 4294946816  ;;  %s2784_s10 = sshll.u32 %s3590_s19, 1  ;;  %p331_p8 = scmp.lt.s32.totalorder %s3590_s19, 1  ;;  %v2833_v6 = vld [vmem:[#allocation3 + $0x70] sm:$0xf] }
  0x13   : > { %s305_s11 = sadd.s32 %s3586_s18, %s2784_s10  ;;  %v3343_v7 = vld [vmem:[#allocation3 + $0x74] sm:$0xf0]  ;;  %v2829_v10 = vld [vmem:[#allocation3 + $0x60] sm:$0xf]  ;;  %v3342_v11 = vld [vmem:[#allocation3 + $0x64] sm:$0xf0] }
  0x14   : > { %p306_p9 = scmp.lt.s32.totalorder %s305_s11, 3  ;;  %s5290_s19 = smov (!%p331_p8, %s3590_s19), 1  ;;  %v2834_v9 = vor.u32 %v3343_v7, %v2833_v6  ;;  %vm369_vm0 = vcmask 523264   ;;  %v2830_v15 = vor.u32 %v3342_v11, %v2829_v10  ;;  %v2825_v16 = vld [vmem:[#allocation3 + $0x50] sm:$0xf] }
  0x15   : > { %s3335_s12 = sshll.u32 %s5290_s19, 4  ;;  %v3341_v17 = vld [vmem:[#allocation3 + $0x54] sm:$0xf0]  ;;  %v2821_v19 = vld [vmem:[#allocation3 + $0x40] sm:$0xf]  ;;  %s3198_s15 = sshll.u32 %s3586_s18, 3 }
  0x16   : > { %s5292_s11 = smov (!%p306_p9, %s305_s11), 3  ;;  %s3703_s16 = scalar_lea.vmem %s5047_s5, %s3335_s12  ;;  %487 = vmatpush.bf16.msra.mxu1 %v2834_v9  ;;  %v2826_v18 = vor.u32 %v3341_v17, %v2825_v16  ;;  %v3340_v20 = vld [vmem:[#allocation3 + $0x44] sm:$0xf0]  ;;  %v2817_v24 = vld [vmem:[#allocation3 + $0x30] sm:$0xf] }
  0x17   : > { %s3698_s13 = sshll.u32 %s5292_s11, 6  ;;  %v2822_v23 = vor.u32 %v3340_v20, %v2821_v19  ;;  %v3339_v25 = vld [vmem:[#allocation3 + $0x34] sm:$0xf0]  ;;  %v2813_v31 = vld [vmem:[#allocation3 + $0x20] sm:$0xf]  ;;  %s4947_s17 = sshra.s32 %s3198_s15, 3 }
  0x18   : > { %s319_s26 = scalar_lea.vmem %s5043_s1, %s3698_s13  ;;  %s3713_s28 = scalar_lea.vmem %s5042_s0, %s3698_s13  ;;  %v2818_v26 = vor.u32 %v3339_v25, %v2817_v24  ;;  %v3338_v32 = vld [vmem:[#allocation3 + $0x24] sm:$0xf0]  ;;  %v2809_v34 = vld [vmem:[#allocation3 + $0x10] sm:$0xf]  ;;  %v3337_v35 = vld [vmem:[#allocation3 + $0x14] sm:$0xf0] }
  0x19   : > { %v351_v0 = vld [vmem:[%s319_s26 + $0x38] sm:$0xff]  ;;  %v350_v1 = vld [vmem:[%s319_s26 + $0x30] sm:$0xff]  ;;  %v349_v2 = vld [vmem:[%s319_s26 + $0x28] sm:$0xff]  ;;  %v2814_v33 = vor.u32 %v3338_v32, %v2813_v31  ;;  %v2810_v36 = vor.u32 %v3337_v35, %v2809_v34  ;;  %s3813_s10 = scalar_lea.vmem %s5044_s2, %s3698_s13  ;;  %s3424_s23 = sshll.u32 %s4947_s17, 4 }
  0x1a   : > { %402 = vmatpush.msra.mxu0 %v351_v0  ;;  %3457 = vmatpush.msra.mxu2 %v351_v0  ;;  %v348_v3 = vld [vmem:[%s319_s26 + $0x20] sm:$0xff]  ;;  %v347_v4 = vld [vmem:[%s319_s26 + $0x18] sm:$0xff]  ;;  %v346_v5 = vld [vmem:[%s319_s26 + $0x10] sm:$0xff]  ;;  %p3201_p10 = scmp.ne.s32.totalorder %s3586_s18, 1 }
  0x1b   : > { %v345_v8 = vld [vmem:[%s319_s26 + $0x8] sm:$0xff]  ;;  %v344_v12 = vld [vmem:[%s319_s26] sm:$0xff]  ;;  %488 = vmatpush.bf16.msra.mxu1 %v2830_v15  ;;  %v3736_v27 = vld [vmem:[%s3713_s28 + $0x10] sm:$0xff]  ;;  %s4989_s26 = scalar_lea.vmem [#allocation2], %s3424_s23 }
  0x1c   : > { %403 = vmatpush.msra.mxu0 %v350_v1  ;;  %3458 = vmatpush.msra.mxu2 %v350_v1  ;;  %v3716_v13 = vld [vmem:[%s3713_s28] sm:$0xff]  ;;  %v3726_v21 = vld [vmem:[%s3713_s28 + $0x8] sm:$0xff]  ;;  %v3739_v28 = vld [vmem:[%s3713_s28 + $0x30] sm:$0xff] }
  0x1d   : > { %v3719_v14 = vld [vmem:[%s3713_s28 + $0x20] sm:$0xff]  ;;  %v3729_v22 = vld [vmem:[%s3713_s28 + $0x28] sm:$0xff]  ;;  %v3746_v29 = vld [vmem:[%s3713_s28 + $0x18] sm:$0xff] }
  0x1e   : > { %404 = vmatpush.msra.mxu0 %v349_v2  ;;  %3459 = vmatpush.msra.mxu2 %v349_v2  ;;  %v3749_v30 = vld [vmem:[%s3713_s28 + $0x38] sm:$0xff]  ;;  %v2805_v37 = vld [vmem:[#allocation3] sm:$0xf]  ;;  %v3336_v38 = vld [vmem:[#allocation3 + $0x4] sm:$0xf0] }
  0x1f   : > { %489 = vmatpush.bf16.msra.mxu1 %v2826_v18  ;;  %v2806_v39 = vor.u32 %v3336_v38, %v2805_v37  ;;  %v368_v59 = vld [vmem:[%s5046_s4] ss:$0 sm:$0xff]  ;;  %v2902_v15 = vld [vmem:[#allocation3 + $0xf0] sm:$0xf]  ;;  %v3359_v16 = vld [vmem:[#allocation3 + $0xf4] sm:$0xf0] }
  0x20   : > { %405 = vmatpush.msra.mxu0 %v348_v3  ;;  %3460 = vmatpush.msra.mxu2 %v348_v3  ;;  %v3358_v17 = vld [vmem:[#allocation3 + $0xf4] sm:$0xf]  ;;  %v2903_v18 = vor.u32 %v3359_v16, %v2902_v15  ;;  %v2904_v19 = vld [vmem:[#allocation3 + $0xf8] sm:$0xf0]  ;;  %v2894_v20 = vld [vmem:[#allocation3 + $0xe0] sm:$0xf] }
  0x21   : > { %v2907_v24 = vor.u32 %v3358_v17, %v2904_v19  ;;  %v3356_v25 = vld [vmem:[#allocation3 + $0xe4] sm:$0xf]  ;;  %v3355_v34 = vld [vmem:[#allocation3 + $0xd4] sm:$0xf0]  ;;  %v3354_v35 = vld [vmem:[#allocation3 + $0xd4] sm:$0xf] }
  0x22   : > { %406 = vmatpush.msra.mxu0 %v347_v4  ;;  %3461 = vmatpush.msra.mxu2 %v347_v4 }
  0x23   : > { %490 = vmatpush.bf16.msra.mxu1 %v2822_v23  ;;  %v3357_v23 = vld [vmem:[#allocation3 + $0xe4] sm:$0xf0]  ;;  %672 = vmatpush.bf16.msra.mxu3 %v2903_v18 }
  0x24   : > { %407 = vmatpush.msra.mxu0 %v346_v5  ;;  %3462 = vmatpush.msra.mxu2 %v346_v5  ;;  %v2895_v31 = vor.u32 %v3357_v23, %v2894_v20 }
  0x26   : > { %408 = vmatpush.msra.mxu0 %v345_v8  ;;  %3463 = vmatpush.msra.mxu2 %v345_v8 }
  0x27   : > { %491 = vmatpush.bf16.msra.mxu1 %v2818_v26  ;;  %v2896_v26 = vld [vmem:[#allocation3 + $0xe8] sm:$0xf0]  ;;  %673 = vmatpush.bf16.msra.mxu3 %v2895_v31 }
  0x28   : > { %409 = vmatpush.msra.mxu0 %v344_v12  ;;  %3464 = vmatpush.msra.mxu2 %v344_v12  ;;  %v2899_v32 = vor.u32 %v3356_v25, %v2896_v26 }
  0x29   : > { %2795 = vmatmul.msk.f32.vlgmr.msra.gmra.mxu0 %vm369_vm0, %v3716_v13  ;;  %2799 = vmatmul.msk.f32.vlgmr.msra.gmra.mxu2 %vm369_vm0, %v3719_v14 }
  0x2a   : > { %701 = vmatpush.bf16.msrb.mxu0 %v2907_v24 }
  0x2b   : > { %492 = vmatpush.bf16.msra.mxu1 %v2814_v33  ;;  %v2886_v33 = vld [vmem:[#allocation3 + $0xd0] sm:$0xf] }
  0x2c   : > { %v2887_v37 = vor.u32 %v3355_v34, %v2886_v33 }
  0x2e   : > { %702 = vmatpush.bf16.msrb.mxu0 %v2899_v32  ;;  %674 = vmatpush.bf16.msra.mxu3 %v2887_v37 }
  0x2f   : > { %493 = vmatpush.bf16.msra.mxu1 %v2810_v36  ;;  %v2888_v36 = vld [vmem:[#allocation3 + $0xd8] sm:$0xf0] }
  0x30   : > { %v2891_v38 = vor.u32 %v3354_v35, %v2888_v36 }
  0x31   : > { %2796 = vmatmul.msk.f32.gmra.mxu0 %vm369_vm0, %v3726_v21  ;;  %2800 = vmatmul.msk.f32.gmra.mxu2 %vm369_vm0, %v3729_v22 }
  0x32   : > { %703 = vmatpush.bf16.msrb.mxu0 %v2891_v38  ;;  %v2835_v38 = vld [vmem:[%s5046_s4 + $0x1] ss:$8 sm:$0x3] }
  0x33   : > { %494 = vmatpush.bf16.msra.mxu1 %v2806_v39  ;;  %v2878_v39 = vld [vmem:[#allocation3 + $0xc0] sm:$0xf] }
  0x39   : > { %2797 = vmatmul.msk.f32.gmra.mxu0 %vm369_vm0, %v3736_v27  ;;  %2801 = vmatmul.msk.f32.gmra.mxu2 %vm369_vm0, %v3739_v28 }
  0x41   : > { %2798 = vmatmul.msk.f32.gmra.mxu0 %vm369_vm0, %v3746_v29  ;;  %2802 = vmatmul.msk.f32.gmra.mxu2 %vm369_vm0, %v3749_v30 }
  0xa6   : > { %v411_v40 = vpop.f32.mrf.mxu0 }
  0xac   : > { %v423_v45 = vpop.f32.mrf.mxu2 }
  0xae   : > { %v414_v41 = vpop.f32.mrf.mxu0 }
  0xaf   : > { %v435_v42 = vpack.c.bf16 %v414_v41, %v411_v40  ;;  %v3353_v40 = vld [vmem:[#allocation3 + $0xc4] sm:$0xf0]  ;;  %v3352_v41 = vld [vmem:[#allocation3 + $0xc4] sm:$0xf] }
  0xb1   : > { %495 = vmatmul.bf16.vlgmr.msra.gmra.mxu1 %v435_v42  ;;  %v2880_v42 = vld [vmem:[#allocation3 + $0xc8] sm:$0xf0] }
  0xb4   : > { %v426_v47 = vpop.f32.mrf.mxu2 }
  0xb5   : > { %v437_v48 = vpack.c.bf16 %v426_v47, %v423_v45  ;;  %v2870_v45 = vld [vmem:[#allocation3 + $0xb0] sm:$0xf]  ;;  %v3350_v47 = vld [vmem:[#allocation3 + $0xb4] sm:$0xf] }
  0xb6   : > { %v417_v43 = vpop.f32.mrf.mxu0 }
  0xbc   : > { %v429_v49 = vpop.f32.mrf.mxu2 }
  0xbe   : > { %v420_v44 = vpop.f32.mrf.mxu0 }
  0xbf   : > { %v436_v46 = vpack.c.bf16 %v420_v44, %v417_v43  ;;  %v2879_v43 = vor.u32 %v3353_v40, %v2878_v39  ;;  %v2883_v44 = vor.u32 %v3352_v41, %v2880_v42  ;;  %v589_v40 = vperm.slane %v2835_v38, 1 }
  0xc1   : > { %500 = vmatmul.bf16.gmra.mxu1 %v436_v46  ;;  %v3351_v46 = vld [vmem:[#allocation3 + $0xb4] sm:$0xf0]  ;;  %675 = vmatpush.bf16.msra.mxu3 %v2879_v43 }
  0xc2   : > { %704 = vmatpush.bf16.msrb.mxu0 %v2883_v44 }
  0xc4   : > { %v432_v50 = vpop.f32.mrf.mxu2 }
  0xc5   : > { %v438_v51 = vpack.c.bf16 %v432_v50, %v429_v49  ;;  %v2871_v49 = vor.u32 %v3351_v46, %v2870_v45  ;;  %v588_v46 = vperm.slane %v2835_v38, 0  ;;  %v2975_v38 = vld [vmem:[#allocation3 + $0x160] sm:$0xf] }
  0xc7   : > { %676 = vmatpush.bf16.msra.mxu3 %v2871_v49 }
  0xd1   : > { %505 = vmatmul.bf16.gmra.mxu1 %v437_v48  ;;  %v2872_v48 = vld [vmem:[#allocation3 + $0xb8] sm:$0xf0] }
  0xd2   : > { %v2875_v50 = vor.u32 %v3350_v47, %v2872_v48 }
  0xd4   : > { %705 = vmatpush.bf16.msrb.mxu0 %v2875_v50 }
  0xe1   : > { %510 = vmatmul.bf16.gmra.mxu1 %v438_v51  ;;  %v2862_v51 = vld [vmem:[#allocation3 + $0xa0] sm:$0xf] }
 0x12e   : > { %v496_v52 = vpop.f32.mrf.mxu1 }
 0x12f   : > { %v497_v9 = vadd.f32 %v496_v52, %v368_v59  ;;  %v3349_v52 = vld [vmem:[#allocation3 + $0xa4] sm:$0xf0] }
 0x131   : > { %v516_v12 = vmax.f32 %v497_v9, 0.0 }
 0x136   : > { %v498_v53 = vpop.f32.mrf.mxu1 }
 0x137   : > { %v499_v7 = vadd.f32 %v498_v53, %v368_v59  ;;  %v3348_v53 = vld [vmem:[#allocation3 + $0xa4] sm:$0xf] }
 0x139   : > { %v517_v11 = vmax.f32 %v499_v7, 0.0 }
 0x13e   : > { %v501_v54 = vpop.f32.mrf.mxu1 }
 0x13f   : > { %v502_v5 = vadd.f32 %v501_v54, %v368_v59  ;;  %v2863_v54 = vor.u32 %v3349_v52, %v2862_v51 }
 0x141   : > { %v518_v10 = vmax.f32 %v502_v5, 0.0  ;;  %677 = vmatpush.bf16.msra.mxu3 %v2863_v54 }
 0x146   : > { %v503_v55 = vpop.f32.mrf.mxu1 }
 0x147   : > { %v504_v3 = vadd.f32 %v503_v55, %v368_v59  ;;  %v2864_v55 = vld [vmem:[#allocation3 + $0xa8] sm:$0xf0] }
 0x149   : > { %v519_v8 = vmax.f32 %v504_v3, 0.0  ;;  %v2848_v3 = vld [vmem:[#allocation3 + $0x88] sm:$0xf0] }
 0x14e   : > { %v506_v56 = vpop.f32.mrf.mxu1 }
 0x14f   : > { %v507_v1 = vadd.f32 %v506_v56, %v368_v59  ;;  %v2867_v56 = vor.u32 %v3348_v53, %v2864_v55 }
 0x151   : > { %v520_v6 = vmax.f32 %v507_v1, 0.0  ;;  %706 = vmatpush.bf16.msrb.mxu0 %v2867_v56  ;;  %v3344_v1 = vld [vmem:[#allocation3 + $0x84] sm:$0xf] }
 0x156   : > { %v508_v57 = vpop.f32.mrf.mxu1 }
 0x157   : > { %v509_v63 = vadd.f32 %v508_v57, %v368_v59  ;;  %v2854_v57 = vld [vmem:[#allocation3 + $0x90] sm:$0xf] }
 0x159   : > { %v521_v4 = vmax.f32 %v509_v63, 0.0  ;;  %v2846_v63 = vld [vmem:[#allocation3 + $0x80] sm:$0xf] }
 0x15e   : > { %v511_v58 = vpop.f32.mrf.mxu1 }
 0x15f   : > { %v512_v61 = vadd.f32 %v511_v58, %v368_v59  ;;  %v3347_v58 = vld [vmem:[#allocation3 + $0x94] sm:$0xf0] }
 0x161   : > { %v522_v2 = vmax.f32 %v512_v61, 0.0  ;;  %v2856_v61 = vld [vmem:[#allocation3 + $0x98] sm:$0xf0] }
 0x166   : > { %v513_v60 = vpop.f32.mrf.mxu1 }
 0x167   : > { %v514_v62 = vadd.f32 %v513_v60, %v368_v59  ;;  %v3346_v59 = vld [vmem:[#allocation3 + $0x94] sm:$0xf]  ;;  %v2855_v60 = vor.u32 %v3347_v58, %v2854_v57 }
 0x169   : > { %v523_v0 = vmax.f32 %v514_v62, 0.0  ;;  %v2859_v62 = vor.u32 %v3346_v59, %v2856_v61  ;;  %678 = vmatpush.bf16.msra.mxu3 %v2855_v60 }
 0x16b   : > { %550 = vmatpush.msrb.mxu2 %v523_v0  ;;  %707 = vmatpush.bf16.msrb.mxu0 %v2859_v62  ;;  %v3345_v0 = vld [vmem:[#allocation3 + $0x84] sm:$0xf0] }
 0x16d   : > { %551 = vmatpush.msrb.mxu2 %v522_v2  ;;  %v2847_v2 = vor.u32 %v3345_v0, %v2846_v63 }
 0x16f   : > { %552 = vmatpush.msrb.mxu2 %v521_v4  ;;  %v2851_v4 = vor.u32 %v3344_v1, %v2848_v3  ;;  %679 = vmatpush.bf16.msra.mxu3 %v2847_v2 }
 0x171   : > { %553 = vmatpush.msrb.mxu2 %v520_v6  ;;  %708 = vmatpush.bf16.msrb.mxu0 %v2851_v4 }
 0x173   : > { %554 = vmatpush.msrb.mxu2 %v519_v8 }
 0x175   : > { %555 = vmatpush.msrb.mxu2 %v518_v10 }
 0x177   : > { %556 = vmatpush.msrb.mxu2 %v517_v11 }
 0x179   : > { %557 = vmatpush.msrb.mxu2 %v516_v12 }
 0x17a   : > { %2836 = vmatmul.msk.f32.vlgmr.msrb.gmra.mxu2 %vm369_vm0, %v3716_v13 }
 0x182   : > { %2837 = vmatmul.msk.f32.gmra.mxu2 %vm369_vm0, %v3726_v21 }
 0x18a   : > { %2838 = vmatmul.msk.f32.gmra.mxu2 %vm369_vm0, %v3736_v27 }
 0x192   : > { %2839 = vmatmul.msk.f32.gmra.mxu2 %vm369_vm0, %v3746_v29 }
 0x19a   : > { %2840 = vmatmul.msk.f32.gmra.mxu2 %vm369_vm0, %v3719_v14 }
 0x1a2   : > { %2841 = vmatmul.msk.f32.gmra.mxu2 %vm369_vm0, %v3729_v22 }
 0x1aa   : > { %2842 = vmatmul.msk.f32.gmra.mxu2 %vm369_vm0, %v3739_v28 }
 0x1b2   : > { %2843 = vmatmul.msk.f32.gmra.mxu2 %vm369_vm0, %v3749_v30 }
 0x1fd   : > { %v559_v5 = vpop.f32.mrf.mxu2 }
 0x205   : > { %v562_v6 = vpop.f32.mrf.mxu2 }
 0x206   : > { %v583_v7 = vpack.c.bf16 %v562_v6, %v559_v5 }
 0x208   : > { %680 = vmatmul.bf16.vlgmr.msra.gmra.mxu3 %v583_v7  ;;  %709 = vmatmul.bf16.vlgmr.msrb.gmra.mxu0 %v583_v7 }
 0x20d   : > { %v565_v8 = vpop.f32.mrf.mxu2 }
 0x215   : > { %v568_v9 = vpop.f32.mrf.mxu2 }
 0x216   : > { %v584_v10 = vpack.c.bf16 %v568_v9, %v565_v8 }
 0x218   : > { %685 = vmatmul.bf16.gmra.mxu3 %v584_v10  ;;  %714 = vmatmul.bf16.gmra.mxu0 %v584_v10 }
 0x21d   : > { %v571_v11 = vpop.f32.mrf.mxu2 }
 0x225   : > { %v574_v12 = vpop.f32.mrf.mxu2 }
 0x226   : > { %v585_v15 = vpack.c.bf16 %v574_v12, %v571_v11  ;;  %v3047_v12 = vld [vmem:[#allocation3 + $0x1f0] sm:$0xf] }
 0x228   : > { %690 = vmatmul.bf16.gmra.mxu3 %v585_v15  ;;  %719 = vmatmul.bf16.gmra.mxu0 %v585_v15  ;;  %v3390_v15 = vld [vmem:[#allocation3 + $0x1f4] sm:$0xf] }
 0x22d   : > { %v577_v16 = vpop.f32.mrf.mxu2 }
 0x235   : > { %v580_v17 = vpop.f32.mrf.mxu2 }
 0x236   : > { %v586_v18 = vpack.c.bf16 %v580_v17, %v577_v16  ;;  %v3049_v17 = vld [vmem:[#allocation3 + $0x1f8] sm:$0xf0] }
 0x238   : > { %695 = vmatmul.bf16.gmra.mxu3 %v586_v18  ;;  %724 = vmatmul.bf16.gmra.mxu0 %v586_v18  ;;  %v3039_v18 = vld [vmem:[#allocation3 + $0x1e0] sm:$0xf] }
 0x285   : > { %v710_v19 = vpop.f32.mrf.mxu0 }
 0x286   : > { %v711_v62 = vadd.f32 %v710_v19, %v589_v40  ;;  %v3389_v19 = vld [vmem:[#allocation3 + $0x1e4] sm:$0xf0] }
 0x288   : > { %v731_v5 = vmax.f32 %v711_v62, 0.0 }
 0x28b   : > { %v681_v20 = vpop.f32.mrf.mxu3 }
 0x28c   : > { %v682_v8 = vadd.f32 %v681_v20, %v588_v46  ;;  %v3388_v20 = vld [vmem:[#allocation3 + $0x1e4] sm:$0xf] }
 0x28d   : > { %v712_v23 = vpop.f32.mrf.mxu0 }
 0x28e   : > { %v713_v58 = vadd.f32 %v712_v23, %v589_v40  ;;  %v730_v11 = vmax.f32 %v682_v8, 0.0  ;;  %v3041_v23 = vld [vmem:[#allocation3 + $0x1e8] sm:$0xf0] }
 0x28f   : > { %v3009_v8 = vld [vmem:[#allocation3 + $0x1a8] sm:$0xf0] }
 0x290   : > { %v733_v4 = vmax.f32 %v713_v58, 0.0  ;;  %v3383_v58 = vld [vmem:[#allocation3 + $0x1b4] sm:$0xf0] }
 0x293   : > { %v683_v24 = vpop.f32.mrf.mxu3 }
 0x294   : > { %v684_v6 = vadd.f32 %v683_v24, %v588_v46  ;;  %v3040_v24 = vor.u32 %v3389_v19, %v3039_v18  ;;  %v3001_v19 = vld [vmem:[#allocation3 + $0x198] sm:$0xf0] }
 0x295   : > { %v715_v25 = vpop.f32.mrf.mxu0 }
 0x296   : > { %v716_v54 = vadd.f32 %v715_v25, %v589_v40  ;;  %v732_v10 = vmax.f32 %v684_v6, 0.0  ;;  %v3375_v25 = vld [vmem:[#allocation3 + $0x174] sm:$0xf0] }
 0x298   : > { %v735_v63 = vmax.f32 %v716_v54, 0.0 }
 0x29b   : > { %v686_v26 = vpop.f32.mrf.mxu3 }
 0x29c   : > { %v687_v2 = vadd.f32 %v686_v26, %v588_v46  ;;  %v3031_v26 = vld [vmem:[#allocation3 + $0x1d0] sm:$0xf] }
 0x29d   : > { %v717_v31 = vpop.f32.mrf.mxu0 }
 0x29e   : > { %v718_v50 = vadd.f32 %v717_v31, %v589_v40  ;;  %v734_v9 = vmax.f32 %v687_v2, 0.0  ;;  %v3387_v31 = vld [vmem:[#allocation3 + $0x1d4] sm:$0xf0]  ;;  %v3381_v2 = vld [vmem:[#allocation3 + $0x1a4] sm:$0xf0] }
 0x2a0   : > { %v737_v61 = vmax.f32 %v718_v50, 0.0  ;;  %v3371_v50 = vld [vmem:[#allocation3 + $0x154] sm:$0xf0] }
 0x2a3   : > { %v688_v32 = vpop.f32.mrf.mxu3 }
 0x2a4   : > { %v689_v0 = vadd.f32 %v688_v32, %v588_v46 }
 0x2a5   : > { %v720_v33 = vpop.f32.mrf.mxu0 }
 0x2a6   : > { %v721_v47 = vadd.f32 %v720_v33, %v589_v40  ;;  %v736_v7 = vmax.f32 %v689_v0, 0.0  ;;  %v3374_v33 = vld [vmem:[#allocation3 + $0x174] sm:$0xf]  ;;  %v3369_v0 = vld [vmem:[#allocation3 + $0x144] sm:$0xf0] }
 0x2a8   : > { %v739_v55 = vmax.f32 %v721_v47, 0.0 }
 0x2ab   : > { %v691_v34 = vpop.f32.mrf.mxu3 }
 0x2ac   : > { %v692_v59 = vadd.f32 %v691_v34, %v588_v46  ;;  %v2985_v34 = vld [vmem:[#allocation3 + $0x178] sm:$0xf0] }
 0x2ad   : > { %v722_v35 = vpop.f32.mrf.mxu0 }
 0x2ae   : > { %v723_v44 = vadd.f32 %v722_v35, %v589_v40  ;;  %v738_v3 = vmax.f32 %v692_v59, 0.0  ;;  %v3386_v35 = vld [vmem:[#allocation3 + $0x1d4] sm:$0xf] }
 0x2af   : > { %v3382_v59 = vld [vmem:[#allocation3 + $0x1b4] sm:$0xf] }
 0x2b0   : > { %v741_v53 = vmax.f32 %v723_v44, 0.0  ;;  %v3385_v44 = vld [vmem:[#allocation3 + $0x1c4] sm:$0xf0] }
 0x2b3   : > { %v693_v36 = vpop.f32.mrf.mxu3 }
 0x2b4   : > { %v694_v56 = vadd.f32 %v693_v36, %v588_v46  ;;  %v2988_v36 = vor.u32 %v3374_v33, %v2985_v34  ;;  %v3376_v33 = vld [vmem:[#allocation3 + $0x184] sm:$0xf]  ;;  %v2993_v34 = vld [vmem:[#allocation3 + $0x188] sm:$0xf0] }
 0x2b5   : > { %v725_v37 = vpop.f32.mrf.mxu0 }
 0x2b6   : > { %v726_v42 = vadd.f32 %v725_v37, %v589_v40  ;;  %v740_v1 = vmax.f32 %v694_v56, 0.0  ;;  %v3033_v37 = vld [vmem:[#allocation3 + $0x1d8] sm:$0xf0] }
 0x2b8   : > { %v743_v48 = vmax.f32 %v726_v42, 0.0  ;;  %v3032_v42 = vor.u32 %v3387_v31, %v3031_v26  ;;  %v3364_v26 = vld [vmem:[#allocation3 + $0x124] sm:$0xf]  ;;  %v2945_v31 = vld [vmem:[#allocation3 + $0x128] sm:$0xf0] }
 0x2bb   : > { %v696_v39 = vpop.f32.mrf.mxu3 }
 0x2bc   : > { %v697_v51 = vadd.f32 %v696_v39, %v588_v46  ;;  %v3373_v39 = vld [vmem:[#allocation3 + $0x164] sm:$0xf0] }
 0x2bd   : > { %v727_v41 = vpop.f32.mrf.mxu0 }
 0x2be   : > { %v728_v43 = vadd.f32 %v727_v41, %v589_v40  ;;  %v742_v60 = vmax.f32 %v697_v51, 0.0  ;;  %v2976_v40 = vor.u32 %v3373_v39, %v2975_v38  ;;  %v3372_v41 = vld [vmem:[#allocation3 + $0x164] sm:$0xf]  ;;  %v3025_v51 = vld [vmem:[#allocation3 + $0x1c8] sm:$0xf0] }
 0x2bf   : > { %v3362_v38 = vld [vmem:[#allocation3 + $0x114] sm:$0xf] }
 0x2c0   : > { %v745_v45 = vmax.f32 %v728_v43, 0.0  ;;  %v3023_v43 = vld [vmem:[#allocation3 + $0x1c0] sm:$0xf] }
 0x2c2   : > { %829 = vmatpush.msrb.mxu1 %v745_v45  ;;  %v2977_v45 = vld [vmem:[#allocation3 + $0x168] sm:$0xf0] }
 0x2c3   : > { %v698_v49 = vpop.f32.mrf.mxu3  ;;  %v2980_v47 = vor.u32 %v3372_v41, %v2977_v45 }
 0x2c4   : > { %v699_v52 = vadd.f32 %v698_v49, %v588_v46  ;;  %830 = vmatpush.msrb.mxu1 %v743_v48  ;;  %v3036_v46 = vor.u32 %v3386_v35, %v3033_v37  ;;  %v3384_v48 = vld [vmem:[#allocation3 + $0x1c4] sm:$0xf]  ;;  %v2967_v49 = vld [vmem:[#allocation3 + $0x150] sm:$0xf]  ;;  %v2996_v35 = vor.u32 %v3376_v33, %v2993_v34  ;;  %v3363_v37 = vld [vmem:[#allocation3 + $0x114] sm:$0xf0] }
 0x2c5   : > { %v2968_v54 = vor.u32 %v3371_v50, %v2967_v49 }
 0x2c6   : > { %v744_v57 = vmax.f32 %v699_v52, 0.0  ;;  %831 = vmatpush.msrb.mxu1 %v741_v53  ;;  %v3370_v52 = vld [vmem:[#allocation3 + $0x154] sm:$0xf]  ;;  %v2969_v53 = vld [vmem:[#allocation3 + $0x158] sm:$0xf0] }
 0x2c7   : > { %v2972_v56 = vor.u32 %v3370_v52, %v2969_v53 }
 0x2c8   : > { %788 = vmatpush.msra.mxu2 %v744_v57  ;;  %832 = vmatpush.msrb.mxu1 %v739_v55  ;;  %v3024_v55 = vor.u32 %v3385_v44, %v3023_v43  ;;  %v3015_v57 = vld [vmem:[#allocation3 + $0x1b0] sm:$0xf]  ;;  %v3361_v43 = vld [vmem:[#allocation3 + $0x104] sm:$0xf0]  ;;  %v3360_v44 = vld [vmem:[#allocation3 + $0x104] sm:$0xf] }
 0x2ca   : > { %789 = vmatpush.msra.mxu2 %v742_v60  ;;  %833 = vmatpush.msrb.mxu1 %v737_v61  ;;  %v3017_v60 = vld [vmem:[#allocation3 + $0x1b8] sm:$0xf0]  ;;  %v3016_v61 = vor.u32 %v3383_v58, %v3015_v57 }
 0x2cb   : > { %v3020_v62 = vor.u32 %v3382_v59, %v3017_v60 }
 0x2cc   : > { %790 = vmatpush.msra.mxu2 %v740_v1  ;;  %834 = vmatpush.msrb.mxu1 %v735_v63  ;;  %v2959_v63 = vld [vmem:[#allocation3 + $0x140] sm:$0xf] }
 0x2cd   : > { %v3007_v1 = vld [vmem:[#allocation3 + $0x1a0] sm:$0xf] }
 0x2ce   : > { %791 = vmatpush.msra.mxu2 %v738_v3  ;;  %835 = vmatpush.msrb.mxu1 %v733_v4  ;;  %v3368_v3 = vld [vmem:[#allocation3 + $0x144] sm:$0xf]  ;;  %v2961_v4 = vld [vmem:[#allocation3 + $0x148] sm:$0xf0] }
 0x2cf   : > { %v2964_v6 = vor.u32 %v3368_v3, %v2961_v4 }
 0x2d0   : > { %792 = vmatpush.msra.mxu2 %v736_v7  ;;  %836 = vmatpush.msrb.mxu1 %v731_v5  ;;  %v3008_v5 = vor.u32 %v3381_v2, %v3007_v1  ;;  %v3380_v7 = vld [vmem:[#allocation3 + $0x1a4] sm:$0xf] }
 0x2d1   : > { %2917 = vmatmul.msk.f32.vlgmr.msrb.gmra.mxu1 %vm369_vm0, %v3716_v13 }
 0x2d2   : > { %793 = vmatpush.msra.mxu2 %v734_v9  ;;  %v2951_v9 = vld [vmem:[#allocation3 + $0x130] sm:$0xf] }
 0x2d4   : > { %794 = vmatpush.msra.mxu2 %v732_v10  ;;  %v3367_v10 = vld [vmem:[#allocation3 + $0x134] sm:$0xf0] }
 0x2d6   : > { %795 = vmatpush.msra.mxu2 %v730_v11  ;;  %v2999_v11 = vld [vmem:[#allocation3 + $0x190] sm:$0xf] }
 0x2d7   : > { %2909 = vmatmul.msk.f32.vlgmr.msra.gmra.mxu2 %vm369_vm0, %v3716_v13  ;;  %v3391_v13 = vld [vmem:[#allocation3 + $0x1f4] sm:$0xf0] }
 0x2d8   : > { %v3048_v16 = vor.u32 %v3391_v13, %v3047_v12  ;;  %1093 = vmatpush.bf16.msrb.mxu2 %v2988_v36  ;;  %v3379_v12 = vld [vmem:[#allocation3 + $0x194] sm:$0xf0]  ;;  %v2935_v36 = vld [vmem:[#allocation3 + $0x110] sm:$0xf] }
 0x2d9   : > { %2918 = vmatmul.msk.f32.gmra.mxu1 %vm369_vm0, %v3726_v21  ;;  %v3000_v13 = vor.u32 %v3379_v12, %v2999_v11  ;;  %v2936_v39 = vor.u32 %v3363_v37, %v2935_v36  ;;  %v3833_v11 = vld [vmem:[%s3813_s10 + $0x30] sm:$0xff]  ;;  %v2908_v36 = vld [vmem:[%s5046_s4 + $0x2] ss:$8 sm:$0x3] }
 0x2da   : > { %1064 = vmatpush.bf16.msra.mxu0 %v3048_v16  ;;  %v2953_v16 = vld [vmem:[#allocation3 + $0x138] sm:$0xf0]  ;;  %vm1586_vm4 = vcmp.eq.f32.partialorder %v3833_v11, 0.0 }
 0x2dc   : > { %1094 = vmatpush.bf16.msrb.mxu2 %v2980_v47 }
 0x2de   : > { %1065 = vmatpush.bf16.msra.mxu0 %v3040_v24 }
 0x2df   : > { %2910 = vmatmul.msk.f32.gmra.mxu2 %vm369_vm0, %v3726_v21  ;;  %v3052_v21 = vor.u32 %v3390_v15, %v3049_v17  ;;  %v3366_v15 = vld [vmem:[#allocation3 + $0x134] sm:$0xf] }
 0x2e0   : > { %1095 = vmatpush.bf16.msrb.mxu2 %v2972_v56  ;;  %v3378_v17 = vld [vmem:[#allocation3 + $0x194] sm:$0xf]  ;;  %v2956_v18 = vor.u32 %v3366_v15, %v2953_v16 }
 0x2e1   : > { %2919 = vmatmul.msk.f32.gmra.mxu1 %vm369_vm0, %v3736_v27 }
 0x2e2   : > { %1122 = vmatpush.bf16.msra.mxu1 %v3052_v21  ;;  %1066 = vmatpush.bf16.msra.mxu0 %v3032_v42  ;;  %v3004_v21 = vor.u32 %v3378_v17, %v3001_v19  ;;  %v2927_v42 = vld [vmem:[#allocation3 + $0x100] sm:$0xf]  ;;  %v3846_v17 = vld [vmem:[%s3813_s10 + $0x38] sm:$0xff] }
 0x2e3   : > { %v2928_v45 = vor.u32 %v3361_v43, %v2927_v42  ;;  %vm1587_vm7 = vcmp.eq.f32.partialorder %v3846_v17, 0.0  ;;  %vm1677_vm11 = vcmp.eq.f32.partialorder %v3846_v17, 1.0 }
 0x2e4   : > { %1096 = vmatpush.bf16.msrb.mxu2 %v2964_v6  ;;  %v3816_v6 = vld [vmem:[%s3813_s10] sm:$0xff] }
 0x2e5   : > { %vm1580_vm1 = vcmp.eq.f32.partialorder %v3816_v6, 0.0  ;;  %vm1760_vm15 = vcmp.eq.f32.partialorder %v3816_v6, 2.0 }
 0x2e6   : > { %1067 = vmatpush.bf16.msra.mxu0 %v3024_v55 }
 0x2e7   : > { %2911 = vmatmul.msk.f32.gmra.mxu2 %vm369_vm0, %v3736_v27  ;;  %v2983_v27 = vld [vmem:[#allocation3 + $0x170] sm:$0xf] }
 0x2e8   : > { %v2984_v32 = vor.u32 %v3375_v25, %v2983_v27  ;;  %1097 = vmatpush.bf16.msrb.mxu2 %v2956_v18  ;;  %v2991_v27 = vld [vmem:[#allocation3 + $0x180] sm:$0xf]  ;;  %v3377_v25 = vld [vmem:[#allocation3 + $0x184] sm:$0xf0] }
 0x2e9   : > { %2920 = vmatmul.msk.f32.gmra.mxu1 %vm369_vm0, %v3746_v29  ;;  %v3850_v18 = vld [vmem:[%s3813_s10 + $0x20] sm:$0xff] }
 0x2ea   : > { %1035 = vmatpush.bf16.msrb.mxu3 %v2984_v32  ;;  %1068 = vmatpush.bf16.msra.mxu0 %v3016_v61  ;;  %v2948_v32 = vor.u32 %v3364_v26, %v2945_v31  ;;  %vm1674_vm8 = vcmp.eq.f32.partialorder %v3850_v18, 1.0  ;;  %vm1584_vm10 = vcmp.eq.f32.partialorder %v3850_v18, 0.0 }
 0x2ec   : > { %1098 = vmatpush.bf16.msrb.mxu2 %v2948_v32 }
 0x2ee   : > { %1036 = vmatpush.bf16.msrb.mxu3 %v2976_v40  ;;  %1069 = vmatpush.bf16.msra.mxu0 %v3008_v5  ;;  %v2937_v40 = vld [vmem:[#allocation3 + $0x118] sm:$0xf0] }
 0x2ef   : > { %2912 = vmatmul.msk.f32.gmra.mxu2 %vm369_vm0, %v3746_v29  ;;  %v3044_v29 = vor.u32 %v3388_v20, %v3041_v23  ;;  %v2943_v20 = vld [vmem:[#allocation3 + $0x120] sm:$0xf]  ;;  %v3365_v23 = vld [vmem:[#allocation3 + $0x124] sm:$0xf0]  ;;  %v2940_v41 = vor.u32 %v3362_v38, %v2937_v40  ;;  %v3887_v40 = vperm.slane %v2908_v36, 0 }
 0x2f0   : > { %v2944_v24 = vor.u32 %v3365_v23, %v2943_v20 }
 0x2f1   : > { %2921 = vmatmul.msk.f32.gmra.mxu1 %vm369_vm0, %v3719_v14  ;;  %1099 = vmatpush.bf16.msrb.mxu2 %v2940_v41  ;;  %v3889_v41 = vperm.slane %v2908_v36, 1 }
 0x2f2   : > { %1123 = vmatpush.bf16.msra.mxu1 %v3044_v29  ;;  %1037 = vmatpush.bf16.msrb.mxu3 %v2968_v54  ;;  %v2992_v29 = vor.u32 %v3377_v25, %v2991_v27 }
 0x2f3   : > { %1070 = vmatpush.bf16.msra.mxu0 %v3000_v13  ;;  %v3839_v13 = vld [vmem:[%s3813_s10 + $0x18] sm:$0xff] }
 0x2f4   : > { %vm1583_vm5 = vcmp.eq.f32.partialorder %v3839_v13, 0.0 }
 0x2f6   : > { %1124 = vmatpush.bf16.msra.mxu1 %v3036_v46  ;;  %v2929_v46 = vld [vmem:[#allocation3 + $0x108] sm:$0xf0] }
 0x2f7   : > { %2913 = vmatmul.msk.f32.gmra.mxu2 %vm369_vm0, %v3719_v14  ;;  %v3028_v14 = vor.u32 %v3384_v48, %v3025_v51  ;;  %1071 = vmatpush.bf16.msra.mxu0 %v2992_v29  ;;  %v2932_v47 = vor.u32 %v3360_v44, %v2929_v46 }
 0x2f9   : > { %2922 = vmatmul.msk.f32.gmra.mxu1 %vm369_vm0, %v3729_v22  ;;  %1100 = vmatpush.bf16.msrb.mxu2 %v2932_v47 }
 0x2fa   : > { %1125 = vmatpush.bf16.msra.mxu1 %v3028_v14 }
 0x2fe   : > { %1126 = vmatpush.bf16.msra.mxu1 %v3020_v62 }
 0x2ff   : > { %2914 = vmatmul.msk.f32.gmra.mxu2 %vm369_vm0, %v3729_v22  ;;  %v2960_v22 = vor.u32 %v3369_v0, %v2959_v63 }
 0x301   : > { %2923 = vmatmul.msk.f32.gmra.mxu1 %vm369_vm0, %v3739_v28  ;;  %1038 = vmatpush.bf16.msrb.mxu3 %v2960_v22 }
 0x307   : > { %2915 = vmatmul.msk.f32.gmra.mxu2 %vm369_vm0, %v3739_v28  ;;  %v3012_v28 = vor.u32 %v3380_v7, %v3009_v8  ;;  %v3607_v7 = vmov 0  }
 0x308   : > { %3519 = vset.pattern.permute.xlu0 %v3607_v7  ;;  %v1588_v8 = vsel %vm1580_vm1, 1, %v3607_v7  ;;  %3520 = vset.pattern.permute.xlu1 %v3607_v7  ;;  %v1591_v15 = vsel %vm1583_vm5, 1, %v3607_v7  ;;  %v1595_v19 = vsel %vm1587_vm7, 1, %v3607_v7  ;;  %v1592_v23 = vsel %vm1584_vm10, 1, %v3607_v7 }
 0x309   : > { %2924 = vmatmul.msk.f32.gmra.mxu1 %vm369_vm0, %v3749_v30  ;;  %1597 = vperm.xlu0 %3519, %v1588_v8   ;;  %v1685_v27 = vsel %vm1677_vm11, 1, %v3607_v7  ;;  %v1768_v33 = vsel %vm1760_vm15, 1, %v3607_v7  ;;  %vm1670_vm1 = vcmp.eq.f32.partialorder %v3816_v6, 1.0  ;;  %vm1850_vm5 = vcmp.eq.f32.partialorder %v3816_v6, 3.0 }
 0x30a   : > { %1127 = vmatpush.bf16.msra.mxu1 %v3012_v28  ;;  %3521 = vset.pattern.permute.xlu2 %v3607_v7  ;;  %v1678_v34 = vsel %vm1670_vm1, 1, %v3607_v7  ;;  %v1858_v43 = vsel %vm1850_vm5, 1, %v3607_v7  ;;  %vm1676_vm7 = vcmp.eq.f32.partialorder %v3833_v11, 1.0  ;;  %vm1856_vm11 = vcmp.eq.f32.partialorder %v3833_v11, 3.0 }
 0x30b   : > { %1609 = vperm.xlu2 %3521, %v1592_v23   ;;  %vm1857_vm15 = vcmp.eq.f32.partialorder %v3846_v17, 3.0  ;;  %vm1767_vm1 = vcmp.eq.f32.partialorder %v3846_v17, 2.0  ;;  %vm1947_vm5 = vcmp.eq.f32.partialorder %v3846_v17, 4.0 }
 0x30c   : > { %v1775_v8 = vsel %vm1767_vm1, 1, %v3607_v7  ;;  %vm1946_vm1 = vcmp.eq.f32.partialorder %v3833_v11, 4.0 }
 0x30e   : > { %1128 = vmatpush.bf16.msra.mxu1 %v3004_v21  ;;  %v1682_v21 = vsel %vm1674_vm8, 1, %v3607_v7  ;;  %vm1853_vm8 = vcmp.eq.f32.partialorder %v3839_v13, 3.0 }
 0x30f   : > { %2916 = vmatmul.msk.f32.gmra.mxu2 %vm369_vm0, %v3749_v30  ;;  %v2952_v30 = vor.u32 %v3367_v10, %v2951_v9  ;;  %v3824_v9 = vld [vmem:[%s3813_s10 + $0x8] sm:$0xff]  ;;  %v3829_v10 = vld [vmem:[%s3813_s10 + $0x10] sm:$0xff] }
 0x310   : > { %vm1581_vm2 = vcmp.eq.f32.partialorder %v3824_v9, 0.0  ;;  %vm1582_vm3 = vcmp.eq.f32.partialorder %v3829_v10, 0.0  ;;  %vm1671_vm6 = vcmp.eq.f32.partialorder %v3824_v9, 1.0  ;;  %vm1672_vm9 = vcmp.eq.f32.partialorder %v3829_v10, 1.0 }
 0x311   : > { %1039 = vmatpush.bf16.msrb.mxu3 %v2952_v30  ;;  %v1589_v28 = vsel %vm1581_vm2, 1, %v3607_v7  ;;  %v1590_v12 = vsel %vm1582_vm3, 1, %v3607_v7  ;;  %v1594_v30 = vsel %vm1586_vm4, 1, %v3607_v7  ;;  %v1679_v16 = vsel %vm1671_vm6, 1, %v3607_v7 }
 0x312   : > { %1129 = vmatpush.bf16.msra.mxu1 %v2996_v35  ;;  %1600 = vperm.xlu0 %3519, %v1589_v28   ;;  %v1680_v20 = vsel %vm1672_vm9, 1, %v3607_v7  ;;  %vm1762_vm14 = vcmp.eq.f32.partialorder %v3829_v10, 2.0  ;;  %vm1763_vm3 = vcmp.eq.f32.partialorder %v3839_v13, 2.0  ;;  %vm1673_vm4 = vcmp.eq.f32.partialorder %v3839_v13, 1.0 }
 0x313   : > { %1603 = vperm.xlu1 %3520, %v1590_v12   ;;  %v1770_v31 = vsel %vm1762_vm14, 1, %v3607_v7  ;;  %v1771_v37 = vsel %vm1763_vm3, 1, %v3607_v7  ;;  %v1681_v42 = vsel %vm1673_vm4, 1, %v3607_v7  ;;  %vm1766_vm6 = vcmp.eq.f32.partialorder %v3833_v11, 2.0 }
 0x314   : > { %vm1851_vm9 = vcmp.eq.f32.partialorder %v3824_v9, 3.0  ;;  %vm1761_vm10 = vcmp.eq.f32.partialorder %v3824_v9, 2.0  ;;  %vm1941_vm14 = vcmp.eq.f32.partialorder %v3824_v9, 4.0  ;;  %vm1942_vm3 = vcmp.eq.f32.partialorder %v3829_v10, 4.0 }
 0x315   : > { %1040 = vmatpush.bf16.msrb.mxu3 %v2944_v24  ;;  %v3862_v24 = vld [vmem:[%s3813_s10 + $0x28] sm:$0xff]  ;;  %vm1852_vm4 = vcmp.eq.f32.partialorder %v3829_v10, 3.0 }
 0x316   : > { %vm1675_vm12 = vcmp.eq.f32.partialorder %v3862_v24, 1.0  ;;  %vm1585_vm13 = vcmp.eq.f32.partialorder %v3862_v24, 0.0  ;;  %vm1765_vm2 = vcmp.eq.f32.partialorder %v3862_v24, 2.0 }
 0x317   : > { %v1683_v25 = vsel %vm1675_vm12, 1, %v3607_v7  ;;  %v1593_v26 = vsel %vm1585_vm13, 1, %v3607_v7  ;;  %v1773_v35 = vsel %vm1765_vm2, 1, %v3607_v7  ;;  %vm1854_vm12 = vcmp.eq.f32.partialorder %v3850_v18, 3.0 }
 0x318   : > { %1612 = vperm.xlu2 %3521, %v1593_v26   ;;  %vm1764_vm13 = vcmp.eq.f32.partialorder %v3850_v18, 2.0  ;;  %vm1944_vm2 = vcmp.eq.f32.partialorder %v3850_v18, 4.0 }
 0x319   : > { %1041 = vmatpush.bf16.msrb.mxu3 %v2936_v39  ;;  %v1952_v28 = vsel %vm1944_vm2, 1, %v3607_v7  ;;  %vm2123_vm2 = vcmp.eq.f32.partialorder %v3839_v13, 6.0 }
 0x31a   : > { %1615 = vperm.xlu0 %3519, %v1594_v30  }
 0x31b   : > { %1606 = vperm.xlu1 %3520, %v1591_v15   ;;  %v1950_v15 = vsel %vm1942_vm3, 1, %v3607_v7  ;;  %vm2121_vm3 = vcmp.eq.f32.partialorder %v3824_v9, 6.0 }
 0x31d   : > { %1042 = vmatpush.bf16.msrb.mxu3 %v2928_v45 }
 0x320   : > { %1687 = vperm.xlu2 %3521, %v1678_v34  }
 0x322   : > { %1690 = vperm.xlu0 %3519, %v1679_v16  }
 0x323   : > { %1618 = vperm.xlu1 %3520, %v1595_v19  }
 0x328   : > { %1696 = vperm.xlu2 %3521, %v1681_v42  }
 0x32a   : > { %1699 = vperm.xlu0 %3519, %v1682_v21   ;;  %v1860_v21 = vsel %vm1852_vm4, 1, %v3607_v7  ;;  %vm2031_vm4 = vcmp.eq.f32.partialorder %v3824_v9, 5.0 }
 0x32b   : > { %1693 = vperm.xlu1 %3520, %v1680_v20   ;;  %v1955_v20 = vsel %vm1947_vm5, 1, %v3607_v7  ;;  %vm2210_vm5 = vcmp.eq.f32.partialorder %v3816_v6, 7.0 }
 0x332   : > { %1708 = vperm.xlu0 %3519, %v1685_v27  }
 0x333   : > { %1702 = vperm.xlu1 %3520, %v1683_v25  }
 0x33a   : > { %1783 = vperm.xlu0 %3519, %v1770_v31  }
 0x33b   : > { %1777 = vperm.xlu1 %3520, %v1768_v33  }
 0x342   : > { %1792 = vperm.xlu0 %3519, %v1773_v35  }
 0x343   : > { %1786 = vperm.xlu1 %3520, %v1771_v37  }
 0x34a   : > { %1867 = vperm.xlu0 %3519, %v1858_v43  }
 0x34e   : > { %v838_v48 = vpop.f32.mrf.mxu1 }
 0x356   : > { %v841_v49 = vpop.f32.mrf.mxu1 }
 0x357   : > { %v863_v50 = vpack.c.bf16 %v841_v49, %v838_v48 }
 0x359   : > { %1072 = vmatmul.bf16.vlgmr.msra.gmra.mxu0 %v863_v50  ;;  %1130 = vmatmul.bf16.vlgmr.msra.gmra.mxu1 %v863_v50  ;;  %v1774_v50 = vsel %vm1766_vm6, 1, %v3607_v7  ;;  %vm1945_vm6 = vcmp.eq.f32.partialorder %v3862_v24, 4.0 }
 0x35a   : > { %v797_v51 = vpop.f32.mrf.mxu2  ;;  %1795 = vperm.xlu1 %3520, %v1774_v50   ;;  %v1953_v25 = vsel %vm1945_vm6, 1, %v3607_v7  ;;  %vm2124_vm6 = vcmp.eq.f32.partialorder %v3850_v18, 6.0 }
 0x35e   : > { %v844_v52 = vpop.f32.mrf.mxu1 }
 0x362   : > { %v800_v53 = vpop.f32.mrf.mxu2 }
 0x363   : > { %v862_v54 = vpack.c.bf16 %v800_v53, %v797_v51  ;;  %v1684_v51 = vsel %vm1676_vm7, 1, %v3607_v7  ;;  %vm1855_vm7 = vcmp.eq.f32.partialorder %v3862_v24, 3.0 }
 0x364   : > { %1705 = vperm.xlu2 %3521, %v1684_v51   ;;  %v1863_v26 = vsel %vm1855_vm7, 1, %v3607_v7  ;;  %vm2034_vm7 = vcmp.eq.f32.partialorder %v3850_v18, 5.0 }
 0x365   : > { %1043 = vmatmul.bf16.vlgmr.msrb.gmra.mxu3 %v862_v54  ;;  %1101 = vmatmul.bf16.vlgmr.msrb.gmra.mxu2 %v862_v54 }
 0x366   : > { %v847_v55 = vpop.f32.mrf.mxu1 }
 0x367   : > { %v865_v56 = vpack.c.bf16 %v847_v55, %v844_v52  ;;  %v1861_v52 = vsel %vm1853_vm8, 1, %v3607_v7  ;;  %vm2032_vm8 = vcmp.eq.f32.partialorder %v3829_v10, 5.0 }
 0x368   : > { %1876 = vperm.xlu0 %3519, %v1861_v52   ;;  %v2040_v31 = vsel %vm2032_vm8, 1, %v3607_v7  ;;  %vm2213_vm8 = vcmp.eq.f32.partialorder %v3839_v13, 7.0 }
 0x369   : > { %1077 = vmatmul.bf16.gmra.mxu0 %v865_v56  ;;  %1135 = vmatmul.bf16.gmra.mxu1 %v865_v56 }
 0x36a   : > { %v803_v14 = vpop.f32.mrf.mxu2 }
 0x36e   : > { %v850_v57 = vpop.f32.mrf.mxu1 }
 0x372   : > { %v806_v58 = vpop.f32.mrf.mxu2 }
 0x373   : > { %v864_v59 = vpack.c.bf16 %v806_v58, %v803_v14  ;;  %v1859_v14 = vsel %vm1851_vm9, 1, %v3607_v7  ;;  %v1864_v58 = vsel %vm1856_vm11, 1, %v3607_v7  ;;  %vm2030_vm9 = vcmp.eq.f32.partialorder %v3816_v6, 5.0 }
 0x374   : > { %1870 = vperm.xlu1 %3520, %v1859_v14   ;;  %1885 = vperm.xlu0 %3519, %v1864_v58   ;;  %v2038_v35 = vsel %vm2030_vm9, 1, %v3607_v7  ;;  %vm2035_vm11 = vcmp.eq.f32.partialorder %v3862_v24, 5.0  ;;  %vm2211_vm9 = vcmp.eq.f32.partialorder %v3824_v9, 7.0 }
 0x375   : > { %1048 = vmatmul.bf16.gmra.mxu3 %v864_v59  ;;  %1106 = vmatmul.bf16.gmra.mxu2 %v864_v59  ;;  %v2043_v37 = vsel %vm2035_vm11, 1, %v3607_v7  ;;  %vm2126_vm11 = vcmp.eq.f32.partialorder %v3833_v11, 6.0 }
 0x376   : > { %v853_v60 = vpop.f32.mrf.mxu1 }
 0x377   : > { %v867_v61 = vpack.c.bf16 %v853_v60, %v850_v57  ;;  %v1769_v57 = vsel %vm1761_vm10, 1, %v3607_v7  ;;  %vm1940_vm10 = vcmp.eq.f32.partialorder %v3816_v6, 4.0 }
 0x378   : > { %1780 = vperm.xlu2 %3521, %v1769_v57   ;;  %v1948_v36 = vsel %vm1940_vm10, 1, %v3607_v7  ;;  %vm2037_vm10 = vcmp.eq.f32.partialorder %v3846_v17, 5.0 }
 0x379   : > { %1082 = vmatmul.bf16.gmra.mxu0 %v867_v61  ;;  %1140 = vmatmul.bf16.gmra.mxu1 %v867_v61 }
 0x37a   : > { %v809_v62 = vpop.f32.mrf.mxu2 }
 0x37e   : > { %v856_v63 = vpop.f32.mrf.mxu1 }
 0x382   : > { %v812_v0 = vpop.f32.mrf.mxu2 }
 0x383   : > { %v866_v1 = vpack.c.bf16 %v812_v0, %v809_v62  ;;  %v1772_v0 = vsel %vm1764_vm13, 1, %v3607_v7  ;;  %vm1943_vm13 = vcmp.eq.f32.partialorder %v3839_v13, 4.0 }
 0x384   : > { %1789 = vperm.xlu2 %3521, %v1772_v0  }
 0x385   : > { %1053 = vmatmul.bf16.gmra.mxu3 %v866_v1  ;;  %1111 = vmatmul.bf16.gmra.mxu2 %v866_v1  ;;  %v1949_v1 = vsel %vm1941_vm14, 1, %v3607_v7  ;;  %vm2120_vm14 = vcmp.eq.f32.partialorder %v3816_v6, 6.0  ;;  %v2042_v6 = vsel %vm2034_vm7, 1, %v3607_v7 }
 0x386   : > { %v859_v22 = vpop.f32.mrf.mxu1  ;;  %1960 = vperm.xlu0 %3519, %v1949_v1  }
 0x387   : > { %v869_v2 = vpack.c.bf16 %v859_v22, %v856_v63  ;;  %v1862_v63 = vsel %vm1854_vm12, 1, %v3607_v7  ;;  %vm2033_vm12 = vcmp.eq.f32.partialorder %v3839_v13, 5.0  ;;  %v2045_v13 = vsel %vm2037_vm10, 1, %v3607_v7 }
 0x388   : > { %1879 = vperm.xlu1 %3520, %v1862_v63  }
 0x389   : > { %1087 = vmatmul.bf16.gmra.mxu0 %v869_v2  ;;  %1145 = vmatmul.bf16.gmra.mxu1 %v869_v2 }
 0x38a   : > { %v815_v3 = vpop.f32.mrf.mxu2 }
 0x38c   : > { %1798 = vperm.xlu2 %3521, %v1775_v8  }
 0x38e   : > { %1969 = vperm.xlu0 %3519, %v1952_v28  }
 0x392   : > { %v818_v4 = vpop.f32.mrf.mxu2 }
 0x393   : > { %v868_v5 = vpack.c.bf16 %v818_v4, %v815_v3 }
 0x394   : > { %1873 = vperm.xlu2 %3521, %v1860_v21  }
 0x395   : > { %1058 = vmatmul.bf16.gmra.mxu3 %v868_v5  ;;  %1116 = vmatmul.bf16.gmra.mxu2 %v868_v5  ;;  %v1865_v5 = vsel %vm1857_vm15, 1, %v3607_v7  ;;  %vm2036_vm15 = vcmp.eq.f32.partialorder %v3833_v11, 5.0 }
 0x396   : > { %1888 = vperm.xlu1 %3520, %v1865_v5   ;;  %1978 = vperm.xlu0 %3519, %v1955_v20  }
 0x39c   : > { %1882 = vperm.xlu2 %3521, %v1863_v26  }
 0x39e   : > { %1963 = vperm.xlu1 %3520, %v1950_v15   ;;  %2053 = vperm.xlu0 %3519, %v2040_v31  }
 0x3a4   : > { %1957 = vperm.xlu2 %3521, %v1948_v36  }
 0x3a6   : > { %1972 = vperm.xlu1 %3520, %v1953_v25   ;;  %2062 = vperm.xlu0 %3519, %v2043_v37  }
 0x3ae   : > { %2047 = vperm.xlu1 %3520, %v2038_v35  }
 0x3d6   : > { %v1073_v29 = vpop.f32.mrf.mxu0  ;;  %v1131_v32 = vpop.f32.mrf.mxu1 }
 0x3de   : > { %v3883_v38 = vpop.f32.mrf.mxu0  ;;  %v3885_v39 = vpop.f32.mrf.mxu1 }
 0x3e6   : > { %v3905_v53 = vpop.f32.mrf.mxu0  ;;  %v3907_v54 = vpop.f32.mrf.mxu1 }
 0x3e8   : > { %v1044_v44 = vpop.f32.mrf.mxu3  ;;  %v1102_v45 = vpop.f32.mrf.mxu2 }
 0x3e9   : > { %v1045_v46 = vadd.f32 %v1044_v44, %v3887_v40  ;;  %v1103_v47 = vadd.f32 %v1102_v45, %v3889_v41 }
 0x3eb   : > { %v3895_v48 = vadd.f32 %v1073_v29, %v1045_v46  ;;  %v3897_v49 = vadd.f32 %v1131_v32, %v1103_v47 }
 0x3ed   : > { %v1151_v37 = vmax.f32 %v3895_v48, 0.0  ;;  %v3522_v48 = vld [vmem:[%s3713_s28] sm:$0xff] }
 0x3ee   : > { %v3923_v61 = vpop.f32.mrf.mxu0  ;;  %v3925_v62 = vpop.f32.mrf.mxu1 }
 0x3f0   : > { %v3909_v55 = vpop.f32.mrf.mxu3  ;;  %v3911_v56 = vpop.f32.mrf.mxu2 }
 0x3f1   : > { %v1047_v20 = vadd.f32 %v3909_v55, %v3887_v40 }
 0x3f6   : > { %v3933_v3 = vpop.f32.mrf.mxu0  ;;  %v3935_v4 = vpop.f32.mrf.mxu1 }
 0x3f8   : > { %v3919_v59 = vpop.f32.mrf.mxu3  ;;  %v3921_v60 = vpop.f32.mrf.mxu2 }
 0x3fe   : > { %v1085_v16 = vpop.f32.mrf.mxu0  ;;  %v1143_v19 = vpop.f32.mrf.mxu1 }
 0x400   : > { %v1051_v22 = vpop.f32.mrf.mxu3  ;;  %v1109_v2 = vpop.f32.mrf.mxu2 }
 0x401   : > { %v1052_v50 = vadd.f32 %v1051_v22, %v3887_v40  ;;  %v1110_v51 = vadd.f32 %v1109_v2, %v3889_v41  ;;  %v2041_v2 = vsel %vm2033_vm12, 1, %v3607_v7  ;;  %vm2214_vm12 = vcmp.eq.f32.partialorder %v3850_v18, 7.0  ;;  %v3406_v18 = vld [vmem:[#allocation3 + $0x274] sm:$0xf] }
 0x402   : > { %2056 = vperm.xlu1 %3520, %v2041_v2   ;;  %v2222_v9 = vsel %vm2214_vm12, 1, %v3607_v7 }
 0x403   : > { %v1081_v55 = vadd.f32 %v3923_v61, %v1052_v50  ;;  %v2219_v50 = vsel %vm2211_vm9, 1, %v3607_v7 }
 0x405   : > { %v1157_v61 = vmax.f32 %v1081_v55, 0.0  ;;  %v3194_v55 = vld [vmem:[#allocation3 + $0x2f8] sm:$0xf0] }
 0x406   : > { %v1088_v29 = vpop.f32.mrf.mxu0  ;;  %v1146_v32 = vpop.f32.mrf.mxu1 }
 0x408   : > { %v1054_v12 = vpop.f32.mrf.mxu3  ;;  %v1112_v30 = vpop.f32.mrf.mxu2 }
 0x409   : > { %v1055_v57 = vadd.f32 %v1054_v12, %v3887_v40  ;;  %v1113_v58 = vadd.f32 %v1112_v30, %v3889_v41  ;;  %v1951_v30 = vsel %vm1943_vm13, 1, %v3607_v7  ;;  %vm2122_vm13 = vcmp.eq.f32.partialorder %v3829_v10, 6.0 }
 0x40a   : > { %1966 = vperm.xlu2 %3521, %v1951_v30   ;;  %v3122_v30 = vld [vmem:[#allocation3 + $0x268] sm:$0xf0] }
 0x40b   : > { %v1142_v25 = vadd.f32 %v3935_v4, %v1113_v58  ;;  %v3525_v58 = vld [vmem:[%s3713_s28 + $0x18] sm:$0xff] }
 0x40e   : > { %v1090_v0 = vpop.f32.mrf.mxu0  ;;  %v1148_v1 = vpop.f32.mrf.mxu1 }
 0x410   : > { %v1056_v23 = vpop.f32.mrf.mxu3  ;;  %v1114_v27 = vpop.f32.mrf.mxu2 }
 0x411   : > { %v1057_v42 = vadd.f32 %v1056_v23, %v3887_v40  ;;  %v1115_v45 = vadd.f32 %v1114_v27, %v3889_v41  ;;  %v1050_v23 = vadd.f32 %v3919_v59, %v3887_v40  ;;  %v1084_v27 = vadd.f32 %v3933_v3, %v1055_v57 }
 0x413   : > { %v1086_v63 = vadd.f32 %v1085_v16, %v1057_v42  ;;  %v1144_v22 = vadd.f32 %v1143_v19, %v1115_v45  ;;  %v2128_v16 = vsel %vm2120_vm14, 1, %v3607_v7  ;;  %v1108_v19 = vadd.f32 %v3921_v60, %v3889_v41 }
 0x414   : > { %2137 = vperm.xlu0 %3519, %v2128_v16   ;;  %v1076_v60 = vadd.f32 %v3883_v38, %v1047_v20  ;;  %v1079_v3 = vadd.f32 %v3905_v53, %v1050_v23  ;;  %v1954_v53 = vsel %vm1946_vm1, 1, %v3607_v7  ;;  %v1152_v42 = vmax.f32 %v3897_v49, 0.0  ;;  %v3112_v16 = vld [vmem:[#allocation3 + $0x250] sm:$0xf]  ;;  %v3403_v23 = vld [vmem:[#allocation3 + $0x254] sm:$0xf0] }
 0x415   : > { %v1161_v59 = vmax.f32 %v1086_v63, 0.0  ;;  %v1137_v4 = vadd.f32 %v3907_v54, %v1108_v19  ;;  %v2131_v54 = vsel %vm2123_vm2, 1, %v3607_v7  ;;  %1975 = vperm.xlu2 %3521, %v1954_v53   ;;  %v2218_v45 = vsel %vm2210_vm5, 1, %v3607_v7  ;;  %v3128_v63 = vld [vmem:[#allocation3 + $0x270] sm:$0xf] }
 0x416   : > { %v2132_v49 = vsel %vm2124_vm6, 1, %v3607_v7  ;;  %vm2217_vm14 = vcmp.eq.f32.partialorder %v3846_v17, 7.0  ;;  %vm2125_vm1 = vcmp.eq.f32.partialorder %v3862_v24, 6.0  ;;  %v3192_v19 = vld [vmem:[#allocation3 + $0x2f0] sm:$0xf]  ;;  %vm2212_vm2 = vcmp.eq.f32.partialorder %v3829_v10, 7.0 }
 0x417   : > { %v1156_v35 = vmax.f32 %v1137_v4, 0.0  ;;  %v2225_v57 = vsel %vm2217_vm14, 1, %v3607_v7  ;;  %v3401_v4 = vld [vmem:[#allocation3 + $0x244] sm:$0xf0]  ;;  %v3186_v53 = vld [vmem:[#allocation3 + $0x2e8] sm:$0xf0] }
 0x418   : > { %v1059_v33 = vpop.f32.mrf.mxu3  ;;  %v1117_v34 = vpop.f32.mrf.mxu2  ;;  %v3096_v10 = vld [vmem:[#allocation3 + $0x230] sm:$0xf] }
 0x419   : > { %v1060_v43 = vadd.f32 %v1059_v33, %v3887_v40  ;;  %v1118_v44 = vadd.f32 %v1117_v34, %v3889_v41  ;;  %v1159_v33 = vmax.f32 %v1084_v27, 0.0  ;;  %v1160_v34 = vmax.f32 %v1142_v25, 0.0  ;;  %v3423_v27 = vld [vmem:[#allocation3 + $0x2f4] sm:$0xf0]  ;;  %v3526_v25 = vld [vmem:[%s3713_s28 + $0x20] sm:$0xff] }
 0x41b   : > { %v1089_v5 = vadd.f32 %v1088_v29, %v1060_v43  ;;  %v1147_v8 = vadd.f32 %v1146_v32, %v1118_v44  ;;  %v1105_v29 = vadd.f32 %v3911_v56, %v3889_v41  ;;  %v1162_v32 = vmax.f32 %v1144_v22, 0.0  ;;  %v3404_v22 = vld [vmem:[#allocation3 + $0x264] sm:$0xf] }
 0x41c   : > { %v2044_v56 = vsel %vm2036_vm15, 1, %v3607_v7  ;;  %2146 = vperm.xlu0 %3519, %v2131_v54   ;;  %v2129_v43 = vsel %vm2121_vm3, 1, %v3607_v7  ;;  %v2039_v44 = vsel %vm2031_vm4, 1, %v3607_v7  ;;  %vm2127_vm15 = vcmp.eq.f32.partialorder %v3846_v17, 6.0 }
 0x41d   : > { %v1163_v26 = vmax.f32 %v1089_v5, 0.0  ;;  %v1164_v31 = vmax.f32 %v1147_v8, 0.0  ;;  %2065 = vperm.xlu1 %3520, %v2044_v56   ;;  %2050 = vperm.xlu2 %3521, %v2039_v44   ;;  %v3120_v8 = vld [vmem:[#allocation3 + $0x260] sm:$0xf]  ;;  %v2135_v2 = vsel %vm2127_vm15, 1, %v3607_v7  ;;  %v3125_v20 = vor.u32 %v3404_v22, %v3122_v30 }
 0x41e   : > { %v3193_v17 = vor.u32 %v3423_v27, %v3192_v19  ;;  %v3106_v56 = vld [vmem:[#allocation3 + $0x248] sm:$0xf0]  ;;  %v3178_v44 = vld [vmem:[#allocation3 + $0x2d8] sm:$0xf0]  ;;  %vm2215_vm3 = vcmp.eq.f32.partialorder %v3862_v24, 7.0  ;;  %vm2216_vm4 = vcmp.eq.f32.partialorder %v3833_v11, 7.0 }
 0x41f   : > { %v3168_v24 = vld [vmem:[#allocation3 + $0x2c0] sm:$0xf]  ;;  %v3411_v30 = vld [vmem:[#allocation3 + $0x294] sm:$0xf0]  ;;  %v3397_v27 = vld [vmem:[#allocation3 + $0x224] sm:$0xf0] }
 0x420   : > { %v1061_v46 = vpop.f32.mrf.mxu3  ;;  %v1119_v47 = vpop.f32.mrf.mxu2  ;;  %1485 = vmatpush.bf16.msrb.mxu1 %v3193_v17  ;;  %v3088_v19 = vld [vmem:[#allocation3 + $0x220] sm:$0xf] }
 0x421   : > { %v1062_v52 = vadd.f32 %v1061_v46, %v3887_v40  ;;  %v1120_v14 = vadd.f32 %v1119_v47, %v3889_v41  ;;  %v1139_v40 = vadd.f32 %v3925_v62, %v1110_v51  ;;  %v1134_v41 = vadd.f32 %v3885_v39, %v1105_v29  ;;  %v3523_v47 = vld [vmem:[%s3713_s28 + $0x8] sm:$0xff]  ;;  %v3422_v29 = vld [vmem:[#allocation3 + $0x2f4] sm:$0xf] }
 0x422   : > { %v1155_v62 = vmax.f32 %v1079_v3, 0.0  ;;  %v1153_v39 = vmax.f32 %v1076_v60, 0.0  ;;  %v2221_v46 = vsel %vm2213_vm8, 1, %v3607_v7  ;;  %v2134_v51 = vsel %vm2126_vm11, 1, %v3607_v7  ;;  %v3104_v3 = vld [vmem:[#allocation3 + $0x240] sm:$0xf] }
 0x423   : > { %v1091_v28 = vadd.f32 %v1090_v0, %v1062_v52  ;;  %v1149_v15 = vadd.f32 %v1148_v1, %v1120_v14  ;;  %v1158_v38 = vmax.f32 %v1139_v40, 0.0  ;;  %v1154_v36 = vmax.f32 %v1134_v41, 0.0  ;;  %v3524_v52 = vld [vmem:[%s3713_s28 + $0x10] sm:$0xff]  ;;  %v3407_v0 = vld [vmem:[#allocation3 + $0x274] sm:$0xf0] }
 0x424   : > { %2227 = vperm.xlu0 %3519, %v2218_v45   ;;  %v2130_v14 = vsel %vm2122_vm13, 1, %v3607_v7  ;;  %v3130_v1 = vld [vmem:[#allocation3 + $0x278] sm:$0xf0]  ;;  %v3129_v5 = vor.u32 %v3407_v0, %v3128_v63  ;;  %v3113_v40 = vor.u32 %v3403_v23, %v3112_v16  ;;  %v3400_v41 = vld [vmem:[#allocation3 + $0x244] sm:$0xf]  ;;  %v3105_v54 = vor.u32 %v3401_v4, %v3104_v3  ;;  %v3527_v45 = vld [vmem:[%s3713_s28 + $0x28] sm:$0xff] }
 0x425   : > { %v1165_v21 = vmax.f32 %v1091_v28, 0.0  ;;  %v1166_v12 = vmax.f32 %v1149_v15, 0.0  ;;  %2140 = vperm.xlu1 %3520, %v2129_v43   ;;  %2059 = vperm.xlu2 %3521, %v2042_v6   ;;  %v3133_v28 = vor.u32 %v3406_v18, %v3130_v1  ;;  %v3405_v15 = vld [vmem:[#allocation3 + $0x264] sm:$0xf0]  ;;  %v3418_v43 = vld [vmem:[#allocation3 + $0x2d4] sm:$0xf] }
 0x426   : > { %1456 = vmatpush.bf16.msra.mxu2 %v3129_v5  ;;  %v3181_v6 = vor.u32 %v3418_v43, %v3178_v44  ;;  %v3160_v0 = vld [vmem:[#allocation3 + $0x2b0] sm:$0xf]  ;;  %v3415_v18 = vld [vmem:[#allocation3 + $0x2b4] sm:$0xf0]  ;;  %v3414_v1 = vld [vmem:[#allocation3 + $0x2b4] sm:$0xf] }
 0x427   : > { %1209 = vmatpush.msra.mxu3 %v1165_v21  ;;  %1250 = vmatpush.msrb.mxu0 %v1166_v12  ;;  %v2133_v21 = vsel %vm2125_vm1, 1, %v3607_v7  ;;  %v3121_v12 = vor.u32 %v3405_v15, %v3120_v8  ;;  %v3161_v11 = vor.u32 %v3415_v18, %v3160_v0  ;;  %v3162_v5 = vld [vmem:[#allocation3 + $0x2b8] sm:$0xf0]  ;;  %v3152_v8 = vld [vmem:[#allocation3 + $0x2a0] sm:$0xf] }
 0x428   : > { %v3412_v15 = vld [vmem:[#allocation3 + $0x2a4] sm:$0xf]  ;;  %v3410_v16 = vld [vmem:[#allocation3 + $0x294] sm:$0xf]  ;;  %v3146_v23 = vld [vmem:[#allocation3 + $0x298] sm:$0xf0] }
 0x429   : > { %1210 = vmatpush.msra.mxu3 %v1163_v26  ;;  %1251 = vmatpush.msrb.mxu0 %v1164_v31  ;;  %v3402_v26 = vld [vmem:[#allocation3 + $0x254] sm:$0xf]  ;;  %v3114_v31 = vld [vmem:[#allocation3 + $0x258] sm:$0xf0]  ;;  %v3149_v17 = vor.u32 %v3410_v16, %v3146_v23 }
 0x42a   : > { %1457 = vmatpush.bf16.msra.mxu2 %v3121_v12  ;;  %v3117_v60 = vor.u32 %v3402_v26, %v3114_v31  ;;  %v3144_v12 = vld [vmem:[#allocation3 + $0x290] sm:$0xf]  ;;  %v3089_v26 = vor.u32 %v3397_v27, %v3088_v19  ;;  %v3090_v31 = vld [vmem:[#allocation3 + $0x228] sm:$0xf0]  ;;  %v3394_v3 = vld [vmem:[#allocation3 + $0x214] sm:$0xf] }
 0x42b   : > { %1211 = vmatpush.msra.mxu3 %v1161_v59  ;;  %1252 = vmatpush.msrb.mxu0 %v1162_v32  ;;  %v3197_v59 = vor.u32 %v3422_v29, %v3194_v55  ;;  %v3184_v32 = vld [vmem:[#allocation3 + $0x2e0] sm:$0xf] }
 0x42c   : > { %2236 = vperm.xlu0 %3519, %v2221_v46   ;;  %v3136_v55 = vld [vmem:[#allocation3 + $0x280] sm:$0xf] }
 0x42d   : > { %1212 = vmatpush.msra.mxu3 %v1159_v33  ;;  %1253 = vmatpush.msrb.mxu0 %v1160_v34  ;;  %v3421_v33 = vld [vmem:[#allocation3 + $0x2e4] sm:$0xf0] }
 0x42e   : > { %2149 = vperm.xlu1 %3520, %v2132_v49   ;;  %2068 = vperm.xlu2 %3521, %v2045_v13   ;;  %v3185_v34 = vor.u32 %v3421_v33, %v3184_v32  ;;  %v3098_v49 = vld [vmem:[#allocation3 + $0x238] sm:$0xf0]  ;;  %v3528_v13 = vld [vmem:[%s3713_s28 + $0x30] sm:$0xff] }
 0x42f   : > { %1213 = vmatpush.msra.mxu3 %v1157_v61  ;;  %1254 = vmatpush.msrb.mxu0 %v1158_v38  ;;  %v3420_v61 = vld [vmem:[#allocation3 + $0x2e4] sm:$0xf]  ;;  %v2220_v38 = vsel %vm2212_vm2, 1, %v3607_v7  ;;  %v3080_v32 = vld [vmem:[#allocation3 + $0x210] sm:$0xf] }
 0x430   : > { %1458 = vmatpush.bf16.msra.mxu2 %v3113_v40  ;;  %1486 = vmatpush.bf16.msrb.mxu1 %v3185_v34  ;;  %v3409_v40 = vld [vmem:[#allocation3 + $0x284] sm:$0xf0]  ;;  %v3082_v34 = vld [vmem:[#allocation3 + $0x218] sm:$0xf0] }
 0x431   : > { %1214 = vmatpush.msra.mxu3 %v1155_v62  ;;  %1255 = vmatpush.msrb.mxu0 %v1156_v35  ;;  %v3189_v62 = vor.u32 %v3420_v61, %v3186_v53  ;;  %v3176_v35 = vld [vmem:[#allocation3 + $0x2d0] sm:$0xf]  ;;  %v3137_v4 = vor.u32 %v3409_v40, %v3136_v55  ;;  %v3393_v53 = vld [vmem:[#allocation3 + $0x204] sm:$0xf0] }
 0x433   : > { %1215 = vmatpush.msra.mxu3 %v1153_v39  ;;  %1256 = vmatpush.msrb.mxu0 %v1154_v36  ;;  %v3419_v39 = vld [vmem:[#allocation3 + $0x2d4] sm:$0xf0]  ;;  %v3109_v36 = vor.u32 %v3400_v41, %v3106_v56  ;;  %v3085_v41 = vor.u32 %v3394_v3, %v3082_v34  ;;  %v3138_v56 = vld [vmem:[#allocation3 + $0x288] sm:$0xf0] }
 0x434   : > { %2155 = vperm.xlu0 %3519, %v2134_v51   ;;  %1459 = vmatpush.bf16.msra.mxu2 %v3105_v54  ;;  %v2224_v51 = vsel %vm2216_vm4, 1, %v3607_v7  ;;  %v3392_v54 = vld [vmem:[#allocation3 + $0x204] sm:$0xf] }
 0x435   : > { %1216 = vmatpush.msra.mxu3 %v1151_v37  ;;  %1257 = vmatpush.msrb.mxu0 %v1152_v42  ;;  %v3399_v37 = vld [vmem:[#allocation3 + $0x234] sm:$0xf0]  ;;  %v3177_v42 = vor.u32 %v3419_v39, %v3176_v35  ;;  %v4059_v39 = vpop.permute.xlu0 %1597 }
 0x436   : > { %3054 = vmatmul.msk.f32.vlgmr.msra.gmra.mxu3 %vm369_vm0, %v3522_v48  ;;  %3062 = vmatmul.msk.f32.vlgmr.msrb.gmra.mxu0 %vm369_vm0, %v3522_v48  ;;  %v3398_v48 = vld [vmem:[#allocation3 + $0x234] sm:$0xf]  ;;  %v3097_v46 = vor.u32 %v3399_v37, %v3096_v10  ;;  %v3074_v10 = vld [vmem:[#allocation3 + $0x208] sm:$0xf0] }
 0x437   : > { %2230 = vperm.xlu1 %3520, %v2219_v50   ;;  %2143 = vperm.xlu2 %3521, %v2130_v14   ;;  %v2223_v50 = vsel %vm2215_vm3, 1, %v3607_v7  ;;  %v3416_v14 = vld [vmem:[#allocation3 + $0x2c4] sm:$0xf]  ;;  %v3165_v7 = vor.u32 %v3414_v1, %v3162_v5  ;;  %v3077_v35 = vor.u32 %v3392_v54, %v3074_v10 }
 0x438   : > { %1514 = vmatpush.bf16.msrb.mxu3 %v3133_v28  ;;  %1543 = vmatpush.bf16.msra.mxu0 %v3197_v59  ;;  %v3413_v28 = vld [vmem:[#allocation3 + $0x2a4] sm:$0xf0]  ;;  %v3408_v59 = vld [vmem:[#allocation3 + $0x284] sm:$0xf] }
 0x439   : > { %1487 = vmatpush.bf16.msrb.mxu1 %v3177_v42  ;;  %1460 = vmatpush.bf16.msra.mxu2 %v3097_v46  ;;  %v3153_v22 = vor.u32 %v3413_v28, %v3152_v8  ;;  %v3141_v61 = vor.u32 %v3408_v59, %v3138_v56  ;;  %v4065_v42 = vpop.permute.xlu2 %1609 }
 0x43c   : > { %2248 = vperm.xlu0 %3519, %v2225_v57   ;;  %1515 = vmatpush.bf16.msrb.mxu3 %v3125_v20  ;;  %v3145_v20 = vor.u32 %v3411_v30, %v3144_v12 }
 0x43d   : > { %1544 = vmatpush.bf16.msra.mxu0 %v3189_v62  ;;  %1461 = vmatpush.bf16.msra.mxu2 %v3089_v26  ;;  %v4063_v37 = vpop.permute.xlu0 %1600 }
 0x43e   : > { %3055 = vmatmul.msk.f32.gmra.mxu3 %vm369_vm0, %v3523_v47  ;;  %3063 = vmatmul.msk.f32.gmra.mxu0 %vm369_vm0, %v3523_v47  ;;  %v3101_v47 = vor.u32 %v3398_v48, %v3098_v49 }
 0x43f   : > { %2239 = vperm.xlu1 %3520, %v2222_v9   ;;  %2152 = vperm.xlu2 %3521, %v2133_v21   ;;  %v3417_v9 = vld [vmem:[#allocation3 + $0x2c4] sm:$0xf0] }
 0x440   : > { %1516 = vmatpush.bf16.msrb.mxu3 %v3117_v60  ;;  %v3169_v57 = vor.u32 %v3417_v9, %v3168_v24  ;;  %v3395_v60 = vld [vmem:[#allocation3 + $0x214] sm:$0xf0] }
 0x441   : > { %1545 = vmatpush.bf16.msra.mxu0 %v3181_v6  ;;  %v3081_v33 = vor.u32 %v3395_v60, %v3080_v32  ;;  %v4071_v48 = vpop.permute.xlu2 %1612 }
 0x442   : > { %1488 = vmatpush.bf16.msrb.mxu1 %v3169_v57  ;;  %5109 = vst [vmem:[#allocation7_spill] sm:$0xff] %v4071_v48 }
 0x443   : > { %1462 = vmatpush.bf16.msra.mxu2 %v3081_v33 }
 0x444   : > { %1517 = vmatpush.bf16.msrb.mxu3 %v3109_v36  ;;  %v4061_v36 = vpop.permute.xlu1 %1603 }
 0x445   : > { %vm1622_vm5 = vcmp.eq.s32.totalorder %v4061_v36, 1 }
 0x446   : > { %3056 = vmatmul.msk.f32.gmra.mxu3 %vm369_vm0, %v3524_v52  ;;  %3064 = vmatmul.msk.f32.gmra.mxu0 %vm369_vm0, %v3524_v52  ;;  %v3529_v52 = vld [vmem:[%s3713_s28 + $0x38] sm:$0xff] }
 0x447   : > { %2158 = vperm.xlu1 %3520, %v2135_v2   ;;  %2233 = vperm.xlu2 %3521, %v2220_v38   ;;  %v3154_v2 = vld [vmem:[#allocation3 + $0x2a8] sm:$0xf0]  ;;  %v3072_v38 = vld [vmem:[#allocation3 + $0x200] sm:$0xf] }
 0x448   : > { %1518 = vmatpush.bf16.msrb.mxu3 %v3101_v47  ;;  %1489 = vmatpush.bf16.msrb.mxu1 %v3161_v11  ;;  %v3157_v21 = vor.u32 %v3412_v15, %v3154_v2  ;;  %v3073_v62 = vor.u32 %v3393_v53, %v3072_v38 }
 0x44a   : > { %1463 = vmatpush.bf16.msra.mxu2 %v3073_v62 }
 0x44c   : > { %1490 = vmatpush.bf16.msrb.mxu1 %v3153_v22  ;;  %v4067_v43 = vpop.permute.xlu1 %1606 }
 0x44e   : > { %3057 = vmatmul.msk.f32.gmra.mxu3 %vm369_vm0, %v3525_v58  ;;  %3065 = vmatmul.msk.f32.gmra.mxu0 %vm369_vm0, %v3525_v58  ;;  %v3170_v58 = vld [vmem:[#allocation3 + $0x2c8] sm:$0xf0] }
 0x44f   : > { %2242 = vperm.xlu2 %3521, %v2223_v50   ;;  %v3173_v63 = vor.u32 %v3416_v14, %v3170_v58 }
 0x450   : > { %1491 = vmatpush.bf16.msrb.mxu1 %v3145_v20 }
 0x451   : > { %1546 = vmatpush.bf16.msra.mxu0 %v3173_v63 }
 0x454   : > { %1492 = vmatpush.bf16.msrb.mxu1 %v3137_v4  ;;  %v4073_v6 = vpop.permute.xlu1 %1618 }
 0x455   : > { %1547 = vmatpush.bf16.msra.mxu0 %v3165_v7  ;;  %5110 = vst [vmem:[#allocation8_spill] sm:$0xff] %v4073_v6 }
 0x456   : > { %3058 = vmatmul.msk.f32.gmra.mxu3 %vm369_vm0, %v3526_v25  ;;  %3066 = vmatmul.msk.f32.gmra.mxu0 %vm369_vm0, %v3526_v25  ;;  %v3396_v25 = vld [vmem:[#allocation3 + $0x224] sm:$0xf] }
 0x457   : > { %2245 = vperm.xlu2 %3521, %v2224_v51   ;;  %v3093_v29 = vor.u32 %v3396_v25, %v3090_v31 }
 0x459   : > { %1548 = vmatpush.bf16.msra.mxu0 %v3157_v21  ;;  %1519 = vmatpush.bf16.msrb.mxu3 %v3093_v29 }
 0x45c   : > { %v4079_v9 = vpop.permute.xlu1 %1693 }
 0x45d   : > { %1549 = vmatpush.bf16.msra.mxu0 %v3149_v17  ;;  %1520 = vmatpush.bf16.msrb.mxu3 %v3085_v41  ;;  %vm1712_vm7 = vcmp.eq.s32.totalorder %v4079_v9, 1 }
 0x45e   : > { %3059 = vmatmul.msk.f32.gmra.mxu3 %vm369_vm0, %v3527_v45  ;;  %3067 = vmatmul.msk.f32.gmra.mxu0 %vm369_vm0, %v3527_v45  ;;  %v4069_v45 = vpop.permute.xlu0 %1615 }
 0x45f   : > { %5108 = vst [vmem:[#allocation6_spill] sm:$0xff] %v4069_v45 }
 0x461   : > { %1550 = vmatpush.bf16.msra.mxu0 %v3141_v61  ;;  %1521 = vmatpush.bf16.msrb.mxu3 %v3077_v35 }
 0x464   : > { %v4085_v18 = vpop.permute.xlu1 %1702 }
 0x465   : > { %5111 = vst [vmem:[#allocation9_spill] sm:$0xff] %v4085_v18 }
 0x466   : > { %3060 = vmatmul.msk.f32.gmra.mxu3 %vm369_vm0, %v3528_v13  ;;  %3068 = vmatmul.msk.f32.gmra.mxu0 %vm369_vm0, %v3528_v13  ;;  %v4075_v50 = vpop.permute.xlu0 %1690  ;;  %v4077_v13 = vpop.permute.xlu2 %1687 }
 0x467   : > { %vm1710_vm6 = vcmp.eq.s32.totalorder %v4077_v13, 1 }
 0x46c   : > { %v4091_v28 = vpop.permute.xlu1 %1777 }
 0x46d   : > { %vm1800_vm9 = vcmp.eq.s32.totalorder %v4091_v28, 1 }
 0x46e   : > { %3061 = vmatmul.msk.f32.gmra.mxu3 %vm369_vm0, %v3529_v52  ;;  %3069 = vmatmul.msk.f32.gmra.mxu0 %vm369_vm0, %v3529_v52  ;;  %v4081_v14 = vpop.permute.xlu0 %1699  ;;  %v4083_v58 = vpop.permute.xlu2 %1696  ;;  %vm1620_vm0 = vcmp.eq.s32.totalorder %v4059_v39, 1 }
 0x474   : > { %v4097_v16 = vpop.permute.xlu1 %1786 }
 0x476   : > { %v4087_v5 = vpop.permute.xlu0 %1708  ;;  %v4089_v8 = vpop.permute.xlu2 %1705 }
 0x477   : > { %5112 = vst [vmem:[#allocation10_spill] sm:$0xff] %v4087_v5 }
 0x478   : > { %5113 = vst [vmem:[#allocation11_spill] sm:$0xff] %v4089_v8 }
 0x47c   : > { %v4103_v26 = vpop.permute.xlu1 %1795 }
 0x47d   : > { %5115 = vst [vmem:[#allocation13_spill] sm:$0xff] %v4103_v26 }
 0x47e   : > { %v4093_v21 = vpop.permute.xlu0 %1783  ;;  %v4095_v12 = vpop.permute.xlu2 %1780 }
 0x47f   : > { %vm1802_vm8 = vcmp.eq.s32.totalorder %v4093_v21, 1  ;;  %vm1801_vm4 = vcmp.eq.s32.totalorder %v4095_v12, 1 }
 0x484   : > { %v4109_v32 = vpop.permute.xlu1 %1870 }
 0x485   : > { %vm1891_vm2 = vcmp.eq.s32.totalorder %v4109_v32, 1 }
 0x486   : > { %v4099_v19 = vpop.permute.xlu0 %1792  ;;  %v4101_v27 = vpop.permute.xlu2 %1789 }
 0x487   : > { %5114 = vst [vmem:[#allocation12_spill] sm:$0xff] %v4099_v19 }
 0x48c   : > { %v4115_v4 = vpop.permute.xlu1 %1879 }
 0x48e   : > { %v4105_v29 = vpop.permute.xlu0 %1867  ;;  %v4107_v40 = vpop.permute.xlu2 %1798 }
 0x48f   : > { %5116 = vst [vmem:[#allocation14_spill] sm:$0xff] %v4107_v40  ;;  %vm1890_vm10 = vcmp.eq.s32.totalorder %v4105_v29, 1 }
 0x494   : > { %v4121_v41 = vpop.permute.xlu1 %1888 }
 0x495   : > { %5119 = vst [vmem:[#allocation17_spill] sm:$0xff] %v4121_v41 }
 0x496   : > { %v4111_v60 = vpop.permute.xlu0 %1876  ;;  %v4113_v3 = vpop.permute.xlu2 %1873 }
 0x497   : > { %vm1892_vm11 = vcmp.eq.s32.totalorder %v4113_v3, 1 }
 0x49c   : > { %v4127_v38 = vpop.permute.xlu1 %1963 }
 0x49d   : > { %vm1982_vm13 = vcmp.eq.s32.totalorder %v4127_v38, 1 }
 0x49e   : > { %v4117_v33 = vpop.permute.xlu0 %1885  ;;  %v4119_v34 = vpop.permute.xlu2 %1882 }
 0x49f   : > { %5117 = vst [vmem:[#allocation15_spill] sm:$0xff] %v4117_v33 }
 0x4a0   : > { %5118 = vst [vmem:[#allocation16_spill] sm:$0xff] %v4119_v34 }
 0x4a4   : > { %v4133_v62 = vpop.permute.xlu1 %1972 }
 0x4a5   : > { %5120 = vst [vmem:[#allocation18_spill] sm:$0xff] %v4133_v62 }
 0x4a6   : > { %v4123_v56 = vpop.permute.xlu0 %1960  ;;  %v4125_v61 = vpop.permute.xlu2 %1957 }
 0x4a7   : > { %vm1980_vm12 = vcmp.eq.s32.totalorder %v4125_v61, 1  ;;  %vm1981_vm3 = vcmp.eq.s32.totalorder %v4123_v56, 1 }
 0x4ae   : > { %v4129_v53 = vpop.permute.xlu0 %1969  ;;  %v4131_v54 = vpop.permute.xlu2 %1966 }
 0x4b3   : > { %v1259_v44 = vpop.f32.mrf.mxu0 }
 0x4b6   : > { %v4135_v10 = vpop.permute.xlu0 %1978  ;;  %v4137_v35 = vpop.permute.xlu2 %1975 }
 0x4b7   : > { %5121 = vst [vmem:[#allocation19_spill] sm:$0xff] %v4135_v10 }
 0x4b8   : > { %5122 = vst [vmem:[#allocation20_spill] sm:$0xff] %v4137_v35 }
 0x4b9   : > { %v1218_v49 = vpop.f32.mrf.mxu3 }
 0x4bb   : > { %v1262_v46 = vpop.f32.mrf.mxu0 }
 0x4bc   : > { %v1284_v47 = vpack.c.bf16 %v1262_v46, %v1259_v44  ;;  %v4139_v44 = vpop.permute.xlu1 %2047 }
 0x4bd   : > { %vm5063_vm14 = vcmp.eq.s32.totalorder %v4139_v44, 1 }
 0x4be   : > { %1493 = vmatmul.bf16.vlgmr.msrb.gmra.mxu1 %v1284_v47  ;;  %1551 = vmatmul.bf16.vlgmr.msra.gmra.mxu0 %v1284_v47  ;;  %v4143_v46 = vpop.permute.xlu2 %2050 }
 0x4c1   : > { %v1221_v51 = vpop.f32.mrf.mxu3 }
 0x4c2   : > { %v1283_v52 = vpack.c.bf16 %v1221_v51, %v1218_v49  ;;  %v4141_v49 = vpop.permute.xlu0 %2053 }
 0x4c3   : > { %v1265_v24 = vpop.f32.mrf.mxu0 }
 0x4c4   : > { %1464 = vmatmul.bf16.vlgmr.msra.gmra.mxu2 %v1283_v52  ;;  %1522 = vmatmul.bf16.vlgmr.msrb.gmra.mxu3 %v1283_v52  ;;  %v4145_v47 = vpop.permute.xlu1 %2056 }
 0x4c6   : > { %v4149_v52 = vpop.permute.xlu2 %2059 }
 0x4c9   : > { %v1224_v57 = vpop.f32.mrf.mxu3 }
 0x4ca   : > { %v4147_v51 = vpop.permute.xlu0 %2062 }
 0x4cb   : > { %v1268_v63 = vpop.f32.mrf.mxu0  ;;  %5123 = vst [vmem:[#allocation21_spill] sm:$0xff] %v4147_v51 }
 0x4cc   : > { %v1286_v0 = vpack.c.bf16 %v1268_v63, %v1265_v24  ;;  %v4151_v24 = vpop.permute.xlu1 %2065 }
 0x4cd   : > { %5124 = vst [vmem:[#allocation22_spill] sm:$0xff] %v4151_v24 }
 0x4ce   : > { %1498 = vmatmul.bf16.gmra.mxu1 %v1286_v0  ;;  %1556 = vmatmul.bf16.gmra.mxu0 %v1286_v0  ;;  %v4155_v63 = vpop.permute.xlu2 %2068 }
 0x4cf   : > { %5125 = vst [vmem:[#allocation23_spill] sm:$0xff] %v4155_v63 }
 0x4d1   : > { %v1227_v1 = vpop.f32.mrf.mxu3 }
 0x4d2   : > { %v1285_v11 = vpack.c.bf16 %v1227_v1, %v1224_v57  ;;  %v4153_v57 = vpop.permute.xlu0 %2137 }
 0x4d3   : > { %v1271_v7 = vpop.f32.mrf.mxu0  ;;  %vm5062_vm15 = vcmp.eq.s32.totalorder %v4153_v57, 1 }
 0x4d4   : > { %1469 = vmatmul.bf16.gmra.mxu2 %v1285_v11  ;;  %1527 = vmatmul.bf16.gmra.mxu3 %v1285_v11  ;;  %v4157_v1 = vpop.permute.xlu1 %2140 }
 0x4d9   : > { %v1230_v15 = vpop.f32.mrf.mxu3 }
 0x4db   : > { %v1274_v22 = vpop.f32.mrf.mxu0 }
 0x4dc   : > { %v1288_v2 = vpack.c.bf16 %v1274_v22, %v1271_v7  ;;  %v3053_v22 = vld [vmem:[%s5046_s4 + $0x3] ss:$8 sm:$0x3] }
 0x4de   : > { %1503 = vmatmul.bf16.gmra.mxu1 %v1288_v2  ;;  %1561 = vmatmul.bf16.gmra.mxu0 %v1288_v2  ;;  %v4162_v2 = vpop.permute.xlu0 %2146 }
 0x4e1   : > { %v1233_v30 = vpop.f32.mrf.mxu3 }
 0x4e2   : > { %v1287_v20 = vpack.c.bf16 %v1233_v30, %v1230_v15  ;;  %v4164_v30 = vperm.slane %v3053_v22, 0 }
 0x4e3   : > { %v1277_v23 = vpop.f32.mrf.mxu0 }
 0x4e4   : > { %1474 = vmatmul.bf16.gmra.mxu2 %v1287_v20  ;;  %1532 = vmatmul.bf16.gmra.mxu3 %v1287_v20  ;;  %5126 = vst [vmem:[#allocation24_spill] sm:$0xff] %v4164_v30  ;;  %v4166_v20 = vpop.permute.xlu2 %2143 }
 0x4e9   : > { %v1236_v25 = vpop.f32.mrf.mxu3 }
 0x4eb   : > { %v1280_v17 = vpop.f32.mrf.mxu0 }
 0x4ec   : > { %v1290_v31 = vpack.c.bf16 %v1280_v17, %v1277_v23 }
 0x4ee   : > { %1508 = vmatmul.bf16.gmra.mxu1 %v1290_v31  ;;  %1566 = vmatmul.bf16.gmra.mxu0 %v1290_v31 }
 0x4f1   : > { %v1239_v55 = vpop.f32.mrf.mxu3 }
 0x4f2   : > { %v1289_v59 = vpack.c.bf16 %v1239_v55, %v1236_v25  ;;  %v4170_v25 = vperm.slane %v3053_v22, 1 }
 0x4f4   : > { %1479 = vmatmul.bf16.gmra.mxu2 %v1289_v59  ;;  %1537 = vmatmul.bf16.gmra.mxu3 %v1289_v59  ;;  %v4173_v59 = vpop.permute.xlu1 %2149 }
 0x53b   : > { %v1494_v0 = vpop.f32.mrf.mxu1  ;;  %v1552_v11 = vpop.f32.mrf.mxu0 }
 0x543   : > { %v4168_v23 = vpop.f32.mrf.mxu1  ;;  %v4175_v63 = vpop.f32.mrf.mxu0 }
 0x547   : > { %v1465_v7 = vpop.f32.mrf.mxu2  ;;  %v1523_v15 = vpop.f32.mrf.mxu3 }
 0x548   : > { %v1466_v17 = vadd.f32 %v1465_v7, %v4164_v30  ;;  %v1524_v10 = vadd.f32 %v1523_v15, %v4170_v25  ;;  %v2228_v7 = vpop.permute.xlu0 %2227 }
 0x549   : > { %vm2250_vm1 = vcmp.eq.s32.totalorder %v2228_v7, 1 }
 0x54a   : > { %v1495_v41 = vadd.f32 %v1494_v0, %v1466_v17  ;;  %v4188_v0 = vpop.permute.xlu2 %2152  ;;  %v1553_v15 = vadd.f32 %v1552_v11, %v1524_v10 }
 0x54b   : > { %5127 = vst [vmem:[#allocation25_spill] sm:$0xff] %v4188_v0  ;;  %v1499_v22 = vpop.f32.mrf.mxu1 }
 0x54c   : > { %v4194_v17 = vsel %vm1620_vm0, %v1495_v41, -3e+38  ;;  %v4198_v6 = vsel %vm1710_vm6, %v1495_v41, -3e+38  ;;  %v4202_v24 = vsel %vm1800_vm9, %v1495_v41, -3e+38 }
 0x54d   : > { %v4206_v10 = vsel %vm1890_vm10, %v1495_v41, -3e+38  ;;  %v4213_v35 = vsel %vm1980_vm12, %v1495_v41, -3e+38  ;;  %v4217_v33 = vsel %vm5063_vm14, %v1495_v41, -3e+38 }
 0x54e   : > { %v4221_v26 = vsel %vm5062_vm15, %v1495_v41, -3e+38  ;;  %v4232_v45 = vsel %vm1620_vm0, %v1553_v15, -3e+38  ;;  %vm2071_vm15 = vcmp.eq.s32.totalorder %v4143_v46, 1  ;;  %vm2161_vm14 = vcmp.eq.s32.totalorder %v4157_v1, 1 }
 0x54f   : > { %v1467_v31 = vpop.f32.mrf.mxu2  ;;  %v1525_v55 = vpop.f32.mrf.mxu3  ;;  %v4243_v62 = vsel %vm1710_vm6, %v1553_v15, -3e+38  ;;  %v4251_v39 = vsel %vm1890_vm10, %v1553_v15, -3e+38  ;;  %v4285_v48 = vsel %vm1980_vm12, %v1553_v15, -3e+38 }
 0x550   : > { %v1468_v0 = vadd.f32 %v1467_v31, %v4164_v30  ;;  %5128 = vst [vmem:[#allocation26_spill] sm:$0xff] %v4243_v62  ;;  %v1526_v31 = vadd.f32 %v1525_v55, %v4170_v25  ;;  %vm1623_vm6 = vcmp.eq.s32.totalorder %v4067_v43, 1  ;;  %vm1803_vm10 = vcmp.eq.s32.totalorder %v4097_v16, 1 }
 0x551   : > { %5130 = vst [vmem:[#allocation28_spill] sm:$0xff] %v4251_v39  ;;  %vm5133_vm0 = vcmp.eq.s32.totalorder %v4139_v44, 1  ;;  %vm5134_vm12 = vcmp.eq.s32.totalorder %v4153_v57, 1 }
 0x552   : > { %5132 = vst [vmem:[#allocation30_spill] sm:$0xff] %v4285_v48  ;;  %v4300_v61 = vsel %vm5133_vm0, %v1553_v15, -3e+38  ;;  %vm2072_vm0 = vcmp.eq.s32.totalorder %v4141_v49, 1 }
 0x557   : > { %v1470_v40 = vpop.f32.mrf.mxu2  ;;  %v1528_v5 = vpop.f32.mrf.mxu3 }
 0x558   : > { %v1471_v11 = vadd.f32 %v1470_v40, %v4164_v30  ;;  %v1529_v8 = vadd.f32 %v1528_v5, %v4170_v25  ;;  %v4228_v40 = vsel %vm2250_vm1, %v1495_v41, -3e+38  ;;  %v4239_v5 = vpop.permute.xlu1 %2230  ;;  %v4247_v41 = vsel %vm1800_vm9, %v1553_v15, -3e+38 }
 0x559   : > { %5129 = vst [vmem:[#allocation27_spill] sm:$0xff] %v4247_v41  ;;  %vm1893_vm9 = vcmp.eq.s32.totalorder %v4111_v60, 1 }
 0x55a   : > { %v4235_v51 = vadd.f32 %v1499_v22, %v1471_v11  ;;  %v1557_v22 = vpop.f32.mrf.mxu0 }
 0x55b   : > { %v4270_v29 = vadd.f32 %v1557_v22, %v1529_v8  ;;  %v1497_v8 = vadd.f32 %v4168_v23, %v1468_v0  ;;  %v4304_v23 = vsel %vm5134_vm12, %v1553_v15, -3e+38  ;;  %v4307_v0 = vsel %vm2250_vm1, %v1553_v15, -3e+38 }
 0x55c   : > { %v4258_v11 = vsel %vm1622_vm5, %v4235_v51, -3e+38  ;;  %v4263_v13 = vsel %vm1712_vm7, %v4235_v51, -3e+38  ;;  %v4268_v28 = vsel %vm1802_vm8, %v4235_v51, -3e+38 }
 0x55d   : > { %v4281_v18 = vsel %vm1892_vm11, %v4235_v51, -3e+38  ;;  %v4293_v34 = vsel %vm1982_vm13, %v4235_v51, -3e+38  ;;  %v4316_v44 = vsel %vm1622_vm5, %v4270_v29, -3e+38 }
 0x55e   : > { %5131 = vst [vmem:[#allocation29_spill] sm:$0xff] %v4281_v18  ;;  %v1555_v18 = vadd.f32 %v4175_v63, %v1526_v31  ;;  %v4321_v57 = vsel %vm1712_vm7, %v4270_v29, -3e+38  ;;  %v4326_v7 = vsel %vm1802_vm8, %v4270_v29, -3e+38  ;;  %vm1983_vm1 = vcmp.eq.s32.totalorder %v4131_v54, 1  ;;  %v4331_v63 = vpop.permute.xlu2 %2233  ;;  %v1501_v31 = vpop.f32.mrf.mxu1 }
 0x55f   : > { %v1472_v19 = vpop.f32.mrf.mxu2  ;;  %v1530_v55 = vpop.f32.mrf.mxu3  ;;  %5135 = vst [vmem:[#allocation31_spill] sm:$0xff] %v4321_v57  ;;  %vm2162_vm12 = vcmp.eq.s32.totalorder %v4166_v20, 1  ;;  %v4342_v21 = vsel %vm1892_vm11, %v4270_v29, -3e+38  ;;  %vm2252_vm5 = vcmp.eq.s32.totalorder %v4331_v63, 1  ;;  %vm5138_vm7 = vcmp.eq.s32.totalorder %v4063_v37, 1 }
 0x560   : > { %5136 = vst [vmem:[#allocation32_spill] sm:$0xff] %v4326_v7  ;;  %v4347_v22 = vsel %vm5138_vm7, %v1497_v8, -3e+38  ;;  %vm5139_vm8 = vcmp.eq.s32.totalorder %v4075_v50, 1  ;;  %v4358_v3 = vsel %vm1982_vm13, %v4270_v29, -3e+38  ;;  %v1473_v39 = vadd.f32 %v1472_v19, %v4164_v30 }
 0x561   : > { %5137 = vst [vmem:[#allocation33_spill] sm:$0xff] %v4342_v21  ;;  %v4351_v36 = vsel %vm5139_vm8, %v1497_v8, -3e+38  ;;  %v4362_v15 = vsel %vm1801_vm4, %v1497_v8, -3e+38  ;;  %v1531_v57 = vadd.f32 %v1530_v55, %v4170_v25  ;;  %vm2073_vm11 = vcmp.eq.s32.totalorder %v4145_v47, 1 }
 0x562   : > { %5140 = vst [vmem:[#allocation34_spill] sm:$0xff] %v4358_v3  ;;  %v4366_v7 = vsel %vm1891_vm2, %v1497_v8, -3e+38  ;;  %v4370_v41 = vsel %vm1981_vm3, %v1497_v8, -3e+38  ;;  %vm5146_vm13 = vcmp.eq.s32.totalorder %v4239_v5, 1  ;;  %v1559_v37 = vpop.f32.mrf.mxu0  ;;  %v5177_v47 = vmax.f32 %v4213_v35, %v4293_v34 }
 0x563   : > { %5141 = vst [vmem:[#allocation35_spill] sm:$0xff] %v4362_v15  ;;  %v4376_v38 = vsel %vm2071_vm15, %v1497_v8, -3e+38  ;;  %v4380_v21 = vsel %vm2161_vm14, %v1497_v8, -3e+38  ;;  %v4437_v5 = vadd.f32 %v1559_v37, %v1531_v57  ;;  %v5165_v63 = vld [vmem:[#allocation7_spill] sm:$0xff] }
 0x564   : > { %5142 = vst [vmem:[#allocation36_spill] sm:$0xff] %v4366_v7  ;;  %v4387_v62 = vsel %vm5146_vm13, %v1497_v8, -3e+38  ;;  %v4391_v9 = vsel %vm5138_vm7, %v1555_v18, -3e+38  ;;  %v1502_v8 = vadd.f32 %v1501_v31, %v1473_v39  ;;  %vm1804_vm7 = vcmp.eq.s32.totalorder %v4101_v27, 1 }
 0x565   : > { %5143 = vst [vmem:[#allocation37_spill] sm:$0xff] %v4370_v41  ;;  %v4395_v3 = vsel %vm5139_vm8, %v1555_v18, -3e+38  ;;  %v4399_v48 = vsel %vm1801_vm4, %v1555_v18, -3e+38  ;;  %vm5152_vm4 = vmmov %vm5146_vm13  ;;  %vm1714_vm13 = vcmp.eq.s32.totalorder %v4081_v14, 1 }
 0x566   : > { %5144 = vst [vmem:[#allocation38_spill] sm:$0xff] %v4376_v38  ;;  %v4403_v19 = vsel %vm1891_vm2, %v1555_v18, -3e+38  ;;  %v4407_v55 = vsel %vm1981_vm3, %v1555_v18, -3e+38  ;;  %vm2163_vm2 = vcmp.eq.s32.totalorder %v4162_v2, 1  ;;  %v1504_v7 = vpop.f32.mrf.mxu1  ;;  %v5169_v38 = vmax.f32 %v4198_v6, %v4263_v13 }
 0x567   : > { %5145 = vst [vmem:[#allocation39_spill] sm:$0xff] %v4380_v21  ;;  %v4413_v50 = vsel %vm2071_vm15, %v1555_v18, -3e+38  ;;  %v4417_v12 = vsel %vm2161_vm14, %v1555_v18, -3e+38  ;;  %v1475_v21 = vpop.f32.mrf.mxu2  ;;  %vm5154_vm15 = vcmp.eq.s32.totalorder %v4083_v58, 1  ;;  %v1533_v57 = vpop.f32.mrf.mxu3 }
 0x568   : > { %5147 = vst [vmem:[#allocation40_spill] sm:$0xff] %v4387_v62  ;;  %v4409_v62 = vpop.permute.xlu0 %2236  ;;  %v4421_v32 = vsel %vm5152_vm4, %v1555_v18, -3e+38  ;;  %v4427_v56 = vsel %vm1623_vm6, %v1502_v8, -3e+38  ;;  %vm1624_vm14 = vcmp.eq.s32.totalorder %v4065_v42, 1 }
 0x569   : > { %5148 = vst [vmem:[#allocation41_spill] sm:$0xff] %v4395_v3  ;;  %vm2253_vm3 = vcmp.eq.s32.totalorder %v4409_v62, 1  ;;  %v4431_v46 = vsel %vm5154_vm15, %v1502_v8, -3e+38  ;;  %v4435_v1 = vsel %vm1803_vm10, %v1502_v8, -3e+38 }
 0x56a   : > { %5149 = vst [vmem:[#allocation42_spill] sm:$0xff] %v4399_v48  ;;  %vm1894_vm8 = vcmp.eq.s32.totalorder %v4115_v4, 1  ;;  %v4456_v37 = vsel %vm2072_vm0, %v4235_v51, -3e+38  ;;  %v4461_v18 = vsel %vm2162_vm12, %v4235_v51, -3e+38  ;;  %v4539_v48 = vpop.permute.xlu1 %2239 }
 0x56b   : > { %5150 = vst [vmem:[#allocation43_spill] sm:$0xff] %v4403_v19  ;;  %v4467_v39 = vsel %vm1983_vm1, %v1502_v8, -3e+38  ;;  %vm1984_vm4 = vcmp.eq.s32.totalorder %v4129_v53, 1  ;;  %v4478_v15 = vsel %vm2072_vm0, %v4270_v29, -3e+38  ;;  %v2094_v60 = vmax.f32 %v4217_v33, %v4456_v37 }
 0x56c   : > { %5151 = vst [vmem:[#allocation44_spill] sm:$0xff] %v4407_v55  ;;  %v4483_v31 = vsel %vm2162_vm12, %v4270_v29, -3e+38  ;;  %vm2074_vm15 = vcmp.eq.s32.totalorder %v4149_v52, 1  ;;  %vm5159_vm0 = vcmp.eq.s32.totalorder %v4083_v58, 1  ;;  %v1534_v33 = vadd.f32 %v1533_v57, %v4170_v25  ;;  %v4569_v55 = vpop.permute.xlu2 %2242  ;;  %v5187_v42 = vld [vmem:[#allocation27_spill] sm:$0xff] }
 0x56d   : > { %5153 = vst [vmem:[#allocation45_spill] sm:$0xff] %v4421_v32  ;;  %v4450_v32 = vsel %vm1893_vm9, %v1502_v8, -3e+38  ;;  %v4496_v49 = vsel %vm5159_vm0, %v4437_v5, -3e+38 }
 0x56e   : > { %5155 = vst [vmem:[#allocation46_spill] sm:$0xff] %v4435_v1  ;;  %v4473_v1 = vsel %vm2252_vm5, %v4235_v51, -3e+38  ;;  %v4491_v51 = vsel %vm1623_vm6, %v4437_v5, -3e+38  ;;  %vm2164_vm6 = vcmp.eq.s32.totalorder %v4173_v59, 1 }
 0x56f   : > { %5156 = vst [vmem:[#allocation47_spill] sm:$0xff] %v4450_v32  ;;  %v4501_v20 = vsel %vm1803_vm10, %v4437_v5, -3e+38  ;;  %v1476_v32 = vadd.f32 %v1475_v21, %v4164_v30  ;;  %v4513_v58 = vsel %vm1893_vm9, %v4437_v5, -3e+38  ;;  %vm2254_vm9 = vcmp.eq.s32.totalorder %v4539_v48, 1  ;;  %v1535_v3 = vpop.f32.mrf.mxu3 }
 0x570   : > { %5157 = vst [vmem:[#allocation48_spill] sm:$0xff] %v4467_v39  ;;  %v4518_v16 = vsel %vm2252_vm5, %v4270_v29, -3e+38  ;;  %v4522_v21 = vsel %vm2073_vm11, %v1502_v8, -3e+38  ;;  %vm1625_vm10 = vcmp.eq.s32.totalorder %v5165_v63, 1  ;;  %v1536_v35 = vadd.f32 %v1535_v3, %v4170_v25 }
 0x571   : > { %5158 = vst [vmem:[#allocation49_spill] sm:$0xff] %v4491_v51  ;;  %v4529_v41 = vsel %vm1983_vm1, %v4437_v5, -3e+38  ;;  %v1505_v37 = vadd.f32 %v1504_v7, %v1476_v32  ;;  %v4554_v54 = vsel %vm2163_vm2, %v1502_v8, -3e+38  ;;  %v5166_v29 = vld [vmem:[#allocation9_spill] sm:$0xff] }
 0x572   : > { %5160 = vst [vmem:[#allocation50_spill] sm:$0xff] %v4496_v49  ;;  %v4558_v43 = vsel %vm2253_vm3, %v1502_v8, -3e+38  ;;  %vm1715_vm1 = vcmp.eq.s32.totalorder %v5166_v29, 1  ;;  %v5168_v8 = vmax.f32 %v4194_v17, %v4258_v11  ;;  %v5171_v51 = vld [vmem:[#allocation16_spill] sm:$0xff]  ;;  %v5191_v3 = vld [vmem:[#allocation39_spill] sm:$0xff] }
 0x573   : > { %5161 = vst [vmem:[#allocation51_spill] sm:$0xff] %v4501_v20  ;;  %v1477_v20 = vpop.f32.mrf.mxu2  ;;  %v1636_v7 = vsel %vm1624_vm14, %v1505_v37, -3e+38  ;;  %v1726_v32 = vsel %vm1714_vm13, %v1505_v37, -3e+38  ;;  %vm1895_vm5 = vcmp.eq.s32.totalorder %v5171_v51, 1 }
 0x574   : > { %5162 = vst [vmem:[#allocation52_spill] sm:$0xff] %v4513_v58  ;;  %v1562_v58 = vpop.f32.mrf.mxu0  ;;  %v1816_v57 = vsel %vm1804_vm7, %v1505_v37, -3e+38  ;;  %v4579_v19 = vmax.f32 %v5169_v38, %v1726_v32  ;;  %v1906_v49 = vsel %vm1894_vm8, %v1505_v37, -3e+38  ;;  %v5179_v32 = vld [vmem:[#allocation18_spill] sm:$0xff] }
 0x575   : > { %5163 = vst [vmem:[#allocation53_spill] sm:$0xff] %v4522_v21  ;;  %v1563_v39 = vadd.f32 %v1562_v58, %v1534_v33  ;;  %v4574_v21 = vmax.f32 %v5168_v8, %v1636_v7  ;;  %v5170_v58 = vmax.f32 %v4202_v24, %v4268_v28  ;;  %v4592_v17 = vsel %vm2073_vm11, %v4437_v5, -3e+38  ;;  %v5173_v24 = vld [vmem:[#allocation29_spill] sm:$0xff]  ;;  %v5209_v48 = vld [vmem:[#allocation22_spill] sm:$0xff] }
 0x576   : > { %5164 = vst [vmem:[#allocation54_spill] sm:$0xff] %v4529_v41  ;;  %v5167_v41 = vld [vmem:[#allocation12_spill] sm:$0xff]  ;;  %v4597_v6 = vsel %vm2163_vm2, %v4437_v5, -3e+38  ;;  %v5174_v11 = vmax.f32 %v4206_v10, %v5173_v24  ;;  %v1996_v28 = vsel %vm1984_vm4, %v1505_v37, -3e+38  ;;  %v1478_v10 = vadd.f32 %v1477_v20, %v4164_v30 }
 0x577   : > { %vm1805_vm12 = vcmp.eq.s32.totalorder %v5167_v41, 1  ;;  %v4584_v33 = vmax.f32 %v5170_v58, %v1816_v57  ;;  %5172 = vst [vmem:[#allocation7_spill] sm:$0xff] %v4597_v6  ;;  %v4609_v38 = vsel %vm2253_vm3, %v4437_v5, -3e+38  ;;  %v4614_v7 = vmax.f32 %v5177_v47, %v1996_v28  ;;  %v5180_v57 = vld [vmem:[#allocation21_spill] sm:$0xff]  ;;  %v5183_v58 = vld [vmem:[#allocation26_spill] sm:$0xff] }
 0x578   : > { %v4602_v13 = vmax.f32 %v5174_v11, %v1906_v49  ;;  %5176 = vst [vmem:[#allocation12_spill] sm:$0xff] %v4609_v38  ;;  %v2086_v2 = vsel %vm2074_vm15, %v1505_v37, -3e+38  ;;  %v1506_v49 = vpop.f32.mrf.mxu1  ;;  %vm1985_vm11 = vcmp.eq.s32.totalorder %v5179_v32, 1  ;;  %vm2075_vm2 = vcmp.eq.s32.totalorder %v5180_v57, 1  ;;  %v5184_v24 = vld [vmem:[#allocation31_spill] sm:$0xff] }
 0x579   : > { %5178 = vst [vmem:[#allocation16_spill] sm:$0xff] %v4614_v7  ;;  %v1637_v62 = vsel %vm1624_vm14, %v1563_v39, -3e+38  ;;  %v1727_v5 = vsel %vm1714_vm13, %v1563_v39, -3e+38  ;;  %v5181_v8 = vmax.f32 %v4232_v45, %v4316_v44  ;;  %v5185_v11 = vmax.f32 %v5183_v58, %v5184_v24  ;;  %v5188_v47 = vld [vmem:[#allocation32_spill] sm:$0xff] }
 0x57a   : > { %5175 = vst [vmem:[#allocation9_spill] sm:$0xff] %v4602_v13  ;;  %v1817_v34 = vsel %vm1804_vm7, %v1563_v39, -3e+38  ;;  %v5189_v7 = vmax.f32 %v5187_v42, %v5188_v47  ;;  %v1907_v27 = vsel %vm1894_vm8, %v1563_v39, -3e+38  ;;  %v5192_v45 = vld [vmem:[#allocation40_spill] sm:$0xff]  ;;  %v1507_v44 = vadd.f32 %v1506_v49, %v1478_v10 }
 0x57b   : > { %v4631_v20 = vmax.f32 %v5181_v8, %v1637_v62  ;;  %v4636_v28 = vmax.f32 %v5185_v11, %v1727_v5  ;;  %v5193_v62 = vld [vmem:[#allocation28_spill] sm:$0xff]  ;;  %v5194_v8 = vld [vmem:[#allocation33_spill] sm:$0xff]  ;;  %v1997_v5 = vsel %vm1984_vm4, %v1563_v39, -3e+38  ;;  %vm2255_vm14 = vcmp.eq.s32.totalorder %v4569_v55, 1  ;;  %v5199_v42 = vld [vmem:[#allocation30_spill] sm:$0xff]  ;;  %v1480_v53 = vpop.f32.mrf.mxu2 }
 0x57c   : > { %v4641_v14 = vmax.f32 %v5189_v7, %v1817_v34  ;;  %v5197_v24 = vld [vmem:[#allocation25_spill] sm:$0xff]  ;;  %v5200_v47 = vld [vmem:[#allocation34_spill] sm:$0xff]  ;;  %v2266_v4 = vsel %vm2254_vm9, %v1505_v37, -3e+38  ;;  %v1564_v13 = vpop.f32.mrf.mxu0  ;;  %v1638_v10 = vsel %vm1625_vm10, %v1507_v44, -3e+38  ;;  %v1481_v59 = vadd.f32 %v1480_v53, %v4164_v30 }
 0x57d   : > { %5182 = vst [vmem:[#allocation29_spill] sm:$0xff] %v4631_v20  ;;  %v5195_v20 = vmax.f32 %v5193_v62, %v5194_v8  ;;  %vm2165_vm3 = vcmp.eq.s32.totalorder %v5197_v24, 1  ;;  %v4669_v62 = vmax.f32 %v2094_v60, %v2086_v2  ;;  %v2176_v8 = vsel %vm2164_vm6, %v1505_v37, -3e+38  ;;  %v5204_v7 = vld [vmem:[#allocation6_spill] sm:$0xff]  ;;  %v5206_v11 = vld [vmem:[#allocation13_spill] sm:$0xff]  ;;  %v4685_v37 = vpop.permute.xlu0 %2155 }
 0x57e   : > { %5186 = vst [vmem:[#allocation18_spill] sm:$0xff] %v4636_v28  ;;  %vm1626_vm13 = vcmp.eq.s32.totalorder %v5204_v7, 1  ;;  %vm1806_vm8 = vcmp.eq.s32.totalorder %v5206_v11, 1  ;;  %v2177_v60 = vsel %vm2164_vm6, %v1563_v39, -3e+38  ;;  %vm2076_vm0 = vcmp.eq.s32.totalorder %v5209_v48, 1 }
 0x57f   : > { %5190 = vst [vmem:[#allocation21_spill] sm:$0xff] %v4641_v14  ;;  %v4652_v58 = vmax.f32 %v5195_v20, %v1907_v27  ;;  %v5201_v20 = vmax.f32 %v5199_v42, %v5200_v47  ;;  %v2267_v2 = vsel %vm2254_vm9, %v1563_v39, -3e+38  ;;  %v1565_v42 = vadd.f32 %v1564_v13, %v1536_v35  ;;  %v5207_v47 = vld [vmem:[#allocation15_spill] sm:$0xff]  ;;  %v5228_v63 = vld [vmem:[#allocation42_spill] sm:$0xff]  ;;  %v5239_v24 = vld [vmem:[#allocation8_spill] sm:$0xff] }
 0x580   : > { %5203 = vst [vmem:[#allocation27_spill] sm:$0xff] %v4669_v62  ;;  %vm1896_vm4 = vcmp.eq.s32.totalorder %v5207_v47, 1  ;;  %v1728_v49 = vsel %vm1715_vm1, %v1507_v44, -3e+38  ;;  %v1818_v52 = vsel %vm1805_vm12, %v1507_v44, -3e+38  ;;  %v5210_v13 = vmax.f32 %v4347_v22, %v4427_v56 }
 0x581   : > { %5196 = vst [vmem:[#allocation26_spill] sm:$0xff] %v4652_v58  ;;  %v4667_v27 = vmax.f32 %v5201_v20, %v1997_v5  ;;  %v5205_v58 = vld [vmem:[#allocation11_spill] sm:$0xff]  ;;  %v2087_v5 = vsel %vm2074_vm15, %v1563_v39, -3e+38  ;;  %v5208_v20 = vld [vmem:[#allocation20_spill] sm:$0xff]  ;;  %v4696_v39 = vpop.permute.xlu2 %2245  ;;  %v5213_v62 = vld [vmem:[#allocation46_spill] sm:$0xff]  ;;  %v5215_v34 = vmax.f32 %v4221_v26, %v4461_v18  ;;  %v5216_v22 = vmax.f32 %v4228_v40, %v4473_v1 }
 0x582   : > { %vm1716_vm7 = vcmp.eq.s32.totalorder %v5205_v58, 1  ;;  %vm1986_vm15 = vcmp.eq.s32.totalorder %v5208_v20, 1  ;;  %v4701_v35 = vmax.f32 %v5210_v13, %v1638_v10  ;;  %v5212_v28 = vld [vmem:[#allocation35_spill] sm:$0xff]  ;;  %v1908_v30 = vsel %vm1895_vm5, %v1507_v44, -3e+38 }
 0x583   : > { %5202 = vst [vmem:[#allocation31_spill] sm:$0xff] %v4667_v27  ;;  %v5211_v27 = vmax.f32 %v4351_v36, %v4431_v46  ;;  %v5214_v38 = vmax.f32 %v5212_v28, %v5213_v62  ;;  %v4718_v6 = vmax.f32 %v5215_v34, %v2176_v8  ;;  %v4723_v56 = vmax.f32 %v5216_v22, %v2266_v4  ;;  %v5219_v28 = vld [vmem:[#allocation47_spill] sm:$0xff]  ;;  %v1509_v4 = vpop.f32.mrf.mxu1  ;;  %v5223_v34 = vld [vmem:[#allocation49_spill] sm:$0xff] }
 0x584   : > { %v5217_v36 = vmax.f32 %v4300_v61, %v4478_v15  ;;  %v5221_v26 = vmax.f32 %v4304_v23, %v4483_v31  ;;  %v5222_v40 = vmax.f32 %v4307_v0, %v4518_v16  ;;  %v1998_v61 = vsel %vm1985_vm11, %v1507_v44, -3e+38  ;;  %v1538_v31 = vpop.f32.mrf.mxu3  ;;  %v5232_v22 = vld [vmem:[#allocation43_spill] sm:$0xff] }
 0x585   : > { %v4706_v14 = vmax.f32 %v5211_v27, %v1728_v49  ;;  %v4711_v53 = vmax.f32 %v5214_v38, %v1818_v52  ;;  %v5218_v38 = vld [vmem:[#allocation36_spill] sm:$0xff]  ;;  %v2088_v15 = vsel %vm2075_vm2, %v1507_v44, -3e+38  ;;  %vm2166_vm6 = vcmp.eq.s32.totalorder %v4685_v37, 1  ;;  %v5229_v52 = vld [vmem:[#allocation51_spill] sm:$0xff] }
 0x586   : > { %v4728_v46 = vmax.f32 %v5217_v36, %v2087_v5  ;;  %v5220_v27 = vmax.f32 %v5218_v38, %v5219_v28  ;;  %v4738_v18 = vmax.f32 %v5221_v26, %v2177_v60  ;;  %v4743_v1 = vmax.f32 %v5222_v40, %v2267_v2  ;;  %v5225_v60 = vld [vmem:[#allocation41_spill] sm:$0xff]  ;;  %v5226_v2 = vld [vmem:[#allocation50_spill] sm:$0xff]  ;;  %v5233_v36 = vld [vmem:[#allocation52_spill] sm:$0xff] }
 0x587   : > { %vm2256_vm9 = vcmp.eq.s32.totalorder %v4696_v39, 1  ;;  %v1729_v23 = vsel %vm1715_vm1, %v1565_v42, -3e+38  ;;  %v1819_v0 = vsel %vm1805_vm12, %v1565_v42, -3e+38  ;;  %v1510_v16 = vadd.f32 %v1509_v4, %v1481_v59  ;;  %v5267_v7 = vld [vmem:[#allocation21_spill] sm:$0xff] }
 0x588   : > { %v4733_v62 = vmax.f32 %v5220_v27, %v1908_v30  ;;  %v1639_v30 = vsel %vm1625_vm10, %v1565_v42, -3e+38  ;;  %v5224_v8 = vmax.f32 %v4391_v9, %v5223_v34  ;;  %v5227_v10 = vmax.f32 %v5225_v60, %v5226_v2 }
 0x589   : > { %v5230_v13 = vmax.f32 %v5228_v63, %v5229_v52  ;;  %v1909_v41 = vsel %vm1895_vm5, %v1565_v42, -3e+38  ;;  %v2178_v59 = vsel %vm2165_vm3, %v1507_v44, -3e+38  ;;  %v2268_v9 = vsel %vm2255_vm14, %v1507_v44, -3e+38  ;;  %v4792_v44 = vpop.permute.xlu1 %2158  ;;  %v4823_v52 = vpop.permute.xlu0 %2248 }
 0x58a   : > { %v4760_v5 = vmax.f32 %v5224_v8, %v1639_v30  ;;  %v4765_v49 = vmax.f32 %v5227_v10, %v1729_v23  ;;  %v5234_v38 = vmax.f32 %v5232_v22, %v5233_v36  ;;  %v1999_v27 = vsel %vm1985_vm11, %v1565_v42, -3e+38  ;;  %v5236_v30 = vld [vmem:[#allocation37_spill] sm:$0xff]  ;;  %v5237_v23 = vld [vmem:[#allocation48_spill] sm:$0xff]  ;;  %v1482_v10 = vpop.f32.mrf.mxu2 }
 0x58b   : > { %v4770_v29 = vmax.f32 %v5230_v13, %v1819_v0  ;;  %v2089_v26 = vsel %vm2075_vm2, %v1565_v42, -3e+38  ;;  %v2179_v51 = vsel %vm2165_vm3, %v1565_v42, -3e+38  ;;  %v2269_v40 = vsel %vm2255_vm14, %v1565_v42, -3e+38 }
 0x58c   : > { %v4781_v28 = vmax.f32 %v5234_v38, %v1909_v41  ;;  %v1539_v4 = vadd.f32 %v1538_v31, %v4170_v25  ;;  %v5238_v0 = vmax.f32 %v5236_v30, %v5237_v23  ;;  %v4801_v32 = vsel %vm1626_vm13, %v1510_v16, -3e+38  ;;  %v5240_v42 = vld [vmem:[#allocation10_spill] sm:$0xff]  ;;  %v5242_v63 = vld [vmem:[#allocation17_spill] sm:$0xff]  ;;  %v5247_v30 = vld [vmem:[#allocation19_spill] sm:$0xff] }
 0x58d   : > { %5231 = vst [vmem:[#allocation32_spill] sm:$0xff] %v4770_v29  ;;  %v4805_v57 = vsel %vm1716_vm7, %v1510_v16, -3e+38  ;;  %v4809_v55 = vsel %vm1806_vm8, %v1510_v16, -3e+38  ;;  %vm1627_vm10 = vcmp.eq.s32.totalorder %v5239_v24, 1 }
 0x58e   : > { %5235 = vst [vmem:[#allocation39_spill] sm:$0xff] %v4781_v28  ;;  %v4797_v34 = vmax.f32 %v5238_v0, %v1998_v61  ;;  %vm1717_vm1 = vcmp.eq.s32.totalorder %v5240_v42, 1  ;;  %v5241_v31 = vld [vmem:[#allocation14_spill] sm:$0xff]  ;;  %v1648_v61 = vmax.f32 %v4574_v21, %v4801_v32  ;;  %v1738_v8 = vmax.f32 %v4579_v19, %v4805_v57  ;;  %v5244_v41 = vld [vmem:[#allocation53_spill] sm:$0xff]  ;;  %v5248_v23 = vld [vmem:[#allocation23_spill] sm:$0xff]  ;;  %v1567_v28 = vpop.f32.mrf.mxu0 }
 0x58f   : > { %vm1807_vm12 = vcmp.eq.s32.totalorder %v5241_v31, 1  ;;  %v1828_v60 = vmax.f32 %v4584_v33, %v4809_v55  ;;  %v1910_v2 = vsel %vm1896_vm4, %v1510_v16, -3e+38  ;;  %vm1897_vm5 = vcmp.eq.s32.totalorder %v5242_v63, 1  ;;  %v5243_v13 = vld [vmem:[#allocation38_spill] sm:$0xff]  ;;  %v5246_v21 = vld [vmem:[#allocation9_spill] sm:$0xff] }
 0x590   : > { %v5245_v22 = vmax.f32 %v5243_v13, %v5244_v41  ;;  %v1918_v38 = vmax.f32 %v5246_v21, %v1910_v2  ;;  %v2000_v19 = vsel %vm1986_vm15, %v1510_v16, -3e+38  ;;  %v2090_v33 = vsel %vm2076_vm0, %v1510_v16, -3e+38  ;;  %v5251_v55 = vld [vmem:[#allocation44_spill] sm:$0xff]  ;;  %v5252_v2 = vld [vmem:[#allocation54_spill] sm:$0xff] }
 0x591   : > { %vm1987_vm11 = vcmp.eq.s32.totalorder %v5247_v30, 1  ;;  %vm2077_vm2 = vcmp.eq.s32.totalorder %v5248_v23, 1  ;;  %vm2167_vm3 = vcmp.eq.s32.totalorder %v4792_v44, 1  ;;  %v5249_v0 = vmax.f32 %v5191_v3, %v4554_v54  ;;  %v5255_v29 = vld [vmem:[#allocation7_spill] sm:$0xff] }
 0x592   : > { %v4828_v36 = vmax.f32 %v5245_v22, %v2088_v15  ;;  %v5250_v15 = vmax.f32 %v5192_v45, %v4558_v43  ;;  %v5253_v13 = vmax.f32 %v5251_v55, %v5252_v2  ;;  %v5254_v22 = vmax.f32 %v4413_v50, %v4592_v17  ;;  %v5259_v43 = vld [vmem:[#allocation12_spill] sm:$0xff]  ;;  %v5264_v17 = vld [vmem:[#allocation27_spill] sm:$0xff] }
 0x593   : > { %v2187_v32 = vmax.f32 %v5249_v0, %v2178_v59  ;;  %v5256_v54 = vmax.f32 %v4417_v12, %v5255_v29  ;;  %v5258_v59 = vld [vmem:[#allocation45_spill] sm:$0xff]  ;;  %v1568_v0 = vadd.f32 %v1567_v28, %v1539_v4  ;;  %vm2257_vm14 = vcmp.eq.s32.totalorder %v4823_v52, 1  ;;  %v5263_v55 = vld [vmem:[#allocation16_spill] sm:$0xff]  ;;  %v1511_v29 = vpop.f32.mrf.mxu1  ;;  %v1540_v4 = vpop.f32.mrf.mxu3 }
 0x594   : > { %v4844_v57 = vmax.f32 %v5250_v15, %v2268_v9  ;;  %v4849_v41 = vmax.f32 %v5253_v13, %v1999_v27  ;;  %v4854_v21 = vmax.f32 %v5254_v22, %v2089_v26  ;;  %v5260_v45 = vmax.f32 %v5258_v59, %v5259_v43  ;;  %v5262_v15 = vld [vmem:[#allocation24_spill] sm:$0xff]  ;;  %v5268_v59 = vld [vmem:[#allocation26_spill] sm:$0xff] }
 0x595   : > { %v4859_v3 = vmax.f32 %v5256_v54, %v2179_v51  ;;  %v1483_v27 = vadd.f32 %v1482_v10, %v5262_v15  ;;  %v2008_v50 = vmax.f32 %v5263_v55, %v2000_v19  ;;  %v2098_v26 = vmax.f32 %v5264_v17, %v2090_v33  ;;  %v5265_v19 = vld [vmem:[#allocation29_spill] sm:$0xff] }
 0x596   : > { %v4864_v9 = vmax.f32 %v5260_v45, %v2269_v40  ;;  %v2180_v2 = vsel %vm2166_vm6, %v1510_v16, -3e+38  ;;  %v2270_v12 = vsel %vm2256_vm9, %v1510_v16, -3e+38  ;;  %v4876_v51 = vsel %vm1626_vm13, %v1568_v0, -3e+38 }
 0x597   : > { %5257 = vst [vmem:[#allocation40_spill] sm:$0xff] %v4859_v3  ;;  %v4880_v28 = vsel %vm1716_vm7, %v1568_v0, -3e+38  ;;  %v4884_v40 = vsel %vm1806_vm8, %v1568_v0, -3e+38  ;;  %v1512_v10 = vadd.f32 %v1511_v29, %v1483_v27  ;;  %v5266_v16 = vld [vmem:[#allocation18_spill] sm:$0xff]  ;;  %v2188_v54 = vmax.f32 %v4718_v6, %v2180_v2 }
 0x598   : > { %5261 = vst [vmem:[#allocation28_spill] sm:$0xff] %v4864_v9  ;;  %v4894_v58 = vsel %vm1896_vm4, %v1568_v0, -3e+38  ;;  %v2278_v11 = vmax.f32 %v4723_v56, %v2270_v12  ;;  %v4902_v45 = vsel %vm1986_vm15, %v1568_v0, -3e+38  ;;  %v4917_v56 = vadd.f32 %v1540_v4, %v4170_v25  ;;  %v5269_v27 = vld [vmem:[#allocation31_spill] sm:$0xff] }
 0x599   : > { %v4906_v15 = vsel %vm2076_vm0, %v1568_v0, -3e+38  ;;  %v4910_v47 = vsel %vm2166_vm6, %v1568_v0, -3e+38  ;;  %v4914_v6 = vsel %vm2256_vm9, %v1568_v0, -3e+38 }
 0x59a   : > { %v1642_v55 = vsel %vm1627_vm10, %v1512_v10, -3e+38  ;;  %v1732_v48 = vsel %vm1717_vm1, %v1512_v10, -3e+38  ;;  %v1822_v37 = vsel %vm1807_vm12, %v1512_v10, -3e+38 }
 0x59b   : > { %v1649_v17 = vmax.f32 %v4701_v35, %v1642_v55  ;;  %v1739_v39 = vmax.f32 %v4706_v14, %v1732_v48  ;;  %v1829_v0 = vmax.f32 %v4711_v53, %v1822_v37  ;;  %v1912_v25 = vsel %vm1897_vm5, %v1512_v10, -3e+38 }
 0x59c   : > { %v1919_v2 = vmax.f32 %v4733_v62, %v1912_v25  ;;  %v2002_v12 = vsel %vm1987_vm11, %v1512_v10, -3e+38  ;;  %v2092_v29 = vsel %vm2077_vm2, %v1512_v10, -3e+38  ;;  %v2182_v4 = vsel %vm2167_vm3, %v1512_v10, -3e+38 }
 0x59d   : > { %v1650_v20 = vmax.f32 %v1648_v61, %v1649_v17  ;;  %v1740_v35 = vmax.f32 %v1738_v8, %v1739_v39  ;;  %v1830_v55 = vmax.f32 %v1828_v60, %v1829_v0  ;;  %v2009_v14 = vmax.f32 %v4797_v34, %v2002_v12 }
 0x59e   : > { %v1920_v53 = vmax.f32 %v1918_v38, %v1919_v2  ;;  %v2099_v48 = vmax.f32 %v4828_v36, %v2092_v29  ;;  %v2189_v37 = vmax.f32 %v2187_v32, %v2182_v4  ;;  %v2272_v62 = vsel %vm2257_vm14, %v1512_v10, -3e+38 }
 0x59f   : > { %v1651_v25 = vrot.slane %v1650_v20, 4  ;;  %v1741_v43 = vrot.slane %v1740_v35, 4  ;;  %v1831_v22 = vrot.slane %v1830_v55, 4  ;;  %v2010_v13 = vmax.f32 %v2008_v50, %v2009_v14 }
 0x5a0   : > { %v1921_v33 = vrot.slane %v1920_v53, 4  ;;  %v2100_v9 = vmax.f32 %v2098_v26, %v2099_v48  ;;  %v2190_v3 = vmax.f32 %v2188_v54, %v2189_v37  ;;  %v2279_v61 = vmax.f32 %v4844_v57, %v2272_v62 }
 0x5a1   : > { %vm2300_vm13 = vcmask 1040384   ;;  %v1652_v8 = vmax.f32 %v1650_v20, %v1651_v25  ;;  %v1742_v60 = vmax.f32 %v1740_v35, %v1741_v43  ;;  %v1832_v34 = vmax.f32 %v1830_v55, %v1831_v22 }
 0x5a2   : > { %v2011_v38 = vrot.slane %v2010_v13, 4  ;;  %vm2303_vm7 = vcmask 1041408   ;;  %v1922_v36 = vmax.f32 %v1920_v53, %v1921_v33  ;;  %v2101_v32 = vrot.slane %v2100_v9, 4 }
 0x5a3   : > { %v2191_v17 = vrot.slane %v2190_v3, 4  ;;  %v2280_v39 = vmax.f32 %v2278_v11, %v2279_v61  ;;  %vm2306_vm8 = vcmask 1042432   ;;  %v1653_v10 = vrot.slane %v1652_v8, 2 }
 0x5a4   : > { %v1743_v0 = vrot.slane %v1742_v60, 2  ;;  %v1833_v2 = vrot.slane %v1832_v34, 2  ;;  %v2012_v50 = vmax.f32 %v2010_v13, %v2011_v38  ;;  %vm2309_vm4 = vcmask 1043456  }
 0x5a5   : > { %v1923_v26 = vrot.slane %v1922_v36, 2  ;;  %v2102_v54 = vmax.f32 %v2100_v9, %v2101_v32  ;;  %v2192_v57 = vmax.f32 %v2190_v3, %v2191_v17  ;;  %v2281_v12 = vrot.slane %v2280_v39, 4 }
 0x5a6   : > { %v1654_v20 = vmax.f32 %v1652_v8, %v1653_v10  ;;  %v1744_v43 = vmax.f32 %v1742_v60, %v1743_v0  ;;  %v1834_v22 = vmax.f32 %v1832_v34, %v1833_v2  ;;  %v2013_v29 = vrot.slane %v2012_v50, 2 }
 0x5a7   : > { %v1924_v4 = vmax.f32 %v1922_v36, %v1923_v26  ;;  %v2103_v33 = vrot.slane %v2102_v54, 2  ;;  %v2193_v35 = vrot.slane %v2192_v57, 2  ;;  %v2282_v55 = vmax.f32 %v2280_v39, %v2281_v12 }
 0x5a8   : > { %v1655_v11 = vrot.slane %v1654_v20, 1  ;;  %v1745_v14 = vrot.slane %v1744_v43, 1  ;;  %v1835_v53 = vrot.slane %v1834_v22, 1  ;;  %v2014_v48 = vmax.f32 %v2012_v50, %v2013_v29 }
 0x5a9   : > { %v1925_v13 = vrot.slane %v1924_v4, 1  ;;  %v2104_v37 = vmax.f32 %v2102_v54, %v2103_v33  ;;  %v2194_v62 = vmax.f32 %v2192_v57, %v2193_v35  ;;  %v2283_v25 = vrot.slane %v2282_v55, 2  ;;  %v5270_v33 = vld [vmem:[#allocation32_spill] sm:$0xff] }
 0x5aa   : > { %v1656_v9 = vmax.f32 %v1654_v20, %v1655_v11  ;;  %v1746_v3 = vmax.f32 %v1744_v43, %v1745_v14  ;;  %v1836_v61 = vmax.f32 %v1834_v22, %v1835_v53  ;;  %v2015_v8 = vrot.slane %v2014_v48, 1 }
 0x5ab   : > { %v2111_v60 = vmax.f32 %v4728_v46, %v4906_v15  ;;  %v2105_v34 = vrot.slane %v2104_v37, 1  ;;  %v2195_v38 = vrot.slane %v2194_v62, 1  ;;  %v2284_v36 = vmax.f32 %v2282_v55, %v2283_v25  ;;  %v1569_v46 = vpop.f32.mrf.mxu0 }
 0x5ac   : > { %v2201_v32 = vmax.f32 %v4738_v18, %v4910_v47  ;;  %v2291_v17 = vmax.f32 %v4743_v1, %v4914_v6  ;;  %v1926_v39 = vmax.f32 %v1924_v4, %v1925_v13  ;;  %v2301_v10 = vsel %vm2300_vm13, %v1656_v9, %v1746_v3  ;;  %v5274_v13 = vld [vmem:[#allocation39_spill] sm:$0xff] }
 0x5ad   : > { %v2016_v0 = vmax.f32 %v2014_v48, %v2015_v8  ;;  %v2285_v2 = vrot.slane %v2284_v36, 1  ;;  %v2304_v50 = vsel %vm2303_vm7, %v2301_v10, %v1836_v61  ;;  %vm2312_vm15 = vcmask 1044480  }
 0x5ae   : > { %v2106_v15 = vmax.f32 %v2104_v37, %v2105_v34  ;;  %v2307_v26 = vsel %vm2306_vm8, %v2304_v50, %v1926_v39  ;;  %vm2315_vm0 = vcmask 1045504   ;;  %v1570_v54 = vadd.f32 %v1569_v46, %v4917_v56 }
 0x5af   : > { %v2196_v18 = vmax.f32 %v2194_v62, %v2195_v38  ;;  %v2286_v47 = vmax.f32 %v2284_v36, %v2285_v2  ;;  %v2310_v57 = vsel %vm2309_vm4, %v2307_v26, %v2016_v0  ;;  %vm2318_vm6 = vcmask 1046528   ;;  %v5278_v0 = vld [vmem:[#allocation28_spill] sm:$0xff] }
 0x5b0   : > { %v2313_v12 = vsel %vm2312_vm15, %v2310_v57, %v2106_v15  ;;  %v1643_v20 = vsel %vm1627_vm10, %v1570_v54, -3e+38  ;;  %v1733_v43 = vsel %vm1717_vm1, %v1570_v54, -3e+38  ;;  %v1823_v22 = vsel %vm1807_vm12, %v1570_v54, -3e+38 }
 0x5b1   : > { %v2316_v29 = vsel %vm2315_vm0, %v2313_v12, %v2196_v18  ;;  %v1662_v56 = vmax.f32 %v4760_v5, %v1643_v20  ;;  %v1752_v4 = vmax.f32 %v4765_v49, %v1733_v43  ;;  %v1842_v35 = vmax.f32 %v5270_v33, %v1823_v22 }
 0x5b2   : > { %v2319_v55 = vsel %vm2318_vm6, %v2316_v29, %v2286_v47  ;;  %v1913_v24 = vsel %vm1897_vm5, %v1570_v54, -3e+38  ;;  %v2003_v42 = vsel %vm1987_vm11, %v1570_v54, -3e+38  ;;  %v2093_v31 = vsel %vm2077_vm2, %v1570_v54, -3e+38 }
 0x5b3   : > { %vm2321_vm9 = vcmp.lt.f32.partialorder %v2319_v55, -1e+37  ;;  %v5271_v11 = vmax.f32 %v5265_v19, %v4876_v51  ;;  %v5272_v49 = vmax.f32 %v5266_v16, %v4880_v28  ;;  %v5273_v53 = vmax.f32 %v5267_v7, %v4884_v40 }
 0x5b4   : > { %v2323_v48 = vsel %vm2321_vm9, 0.0, %v2319_v55  ;;  %v1932_v30 = vmax.f32 %v5274_v13, %v1913_v24  ;;  %v2022_v37 = vmax.f32 %v4849_v41, %v2003_v42  ;;  %v2112_v23 = vmax.f32 %v4854_v21, %v2093_v31  ;;  %v5277_v21 = vld [vmem:[#allocation40_spill] sm:$0xff] }
 0x5b5   : > { %v1663_v5 = vmax.f32 %v5271_v11, %v1662_v56  ;;  %v1753_v14 = vmax.f32 %v5272_v49, %v1752_v4  ;;  %v1843_v63 = vmax.f32 %v5273_v53, %v1842_v35  ;;  %2331 = vst [vmem:[%s4989_s26] sm:$0xff] %v2323_v48  ;;  %v2183_v28 = vsel %vm2167_vm3, %v1570_v54, -3e+38 }
 0x5b6   : > { %v5275_v40 = vmax.f32 %v5268_v59, %v4894_v58  ;;  %v5276_v7 = vmax.f32 %v5269_v27, %v4902_v45  ;;  %v2113_v25 = vmax.f32 %v2111_v60, %v2112_v23  ;;  %v2202_v9 = vmax.f32 %v5277_v21, %v2183_v28 }
 0x5b7   : > { %v1664_v51 = vrot.slane %v1663_v5, 4  ;;  %v1754_v19 = vrot.slane %v1753_v14, 4  ;;  %v1844_v62 = vrot.slane %v1843_v63, 4  ;;  %v2273_v34 = vsel %vm2257_vm14, %v1570_v54, -3e+38 }
 0x5b8   : > { %v1933_v16 = vmax.f32 %v5275_v40, %v1932_v30  ;;  %v2023_v41 = vmax.f32 %v5276_v7, %v2022_v37  ;;  %v2114_v36 = vrot.slane %v2113_v25, 4  ;;  %v2203_v39 = vmax.f32 %v2201_v32, %v2202_v9 }
 0x5b9   : > { %v1665_v3 = vmax.f32 %v1663_v5, %v1664_v51  ;;  %v1755_v61 = vmax.f32 %v1753_v14, %v1754_v19  ;;  %v1845_v8 = vmax.f32 %v1843_v63, %v1844_v62  ;;  %v2292_v2 = vmax.f32 %v5278_v0, %v2273_v34 }
 0x5ba   : > { %v1934_v38 = vrot.slane %v1933_v16, 4  ;;  %v2024_v44 = vrot.slane %v2023_v41, 4  ;;  %v2115_v60 = vmax.f32 %v2113_v25, %v2114_v36  ;;  %v2204_v50 = vrot.slane %v2203_v39, 4 }
 0x5bb   : > { %v1666_v10 = vrot.slane %v1665_v3, 2  ;;  %v1756_v58 = vrot.slane %v1755_v61, 2  ;;  %v1846_v59 = vrot.slane %v1845_v8, 2  ;;  %v2293_v52 = vmax.f32 %v2291_v17, %v2292_v2 }
 0x5bc   : > { %v1935_v45 = vmax.f32 %v1933_v16, %v1934_v38  ;;  %v2025_v27 = vmax.f32 %v2023_v41, %v2024_v44  ;;  %v2116_v47 = vrot.slane %v2115_v60, 2  ;;  %v2205_v32 = vmax.f32 %v2203_v39, %v2204_v50 }
 0x5bd   : > { %v1667_v46 = vmax.f32 %v1665_v3, %v1666_v10  ;;  %v1757_v15 = vmax.f32 %v1755_v61, %v1756_v58  ;;  %v1847_v26 = vmax.f32 %v1845_v8, %v1846_v59  ;;  %v2294_v43 = vrot.slane %v2293_v52, 4 }
 0x5be   : > { %v1936_v54 = vrot.slane %v1935_v45, 2  ;;  %v2026_v18 = vrot.slane %v2025_v27, 2  ;;  %v2117_v56 = vmax.f32 %v2115_v60, %v2116_v47  ;;  %v2206_v4 = vrot.slane %v2205_v32, 2 }
 0x5bf   : > { %v1668_v57 = vrot.slane %v1667_v46, 1  ;;  %v1758_v12 = vrot.slane %v1757_v15, 1  ;;  %v1848_v20 = vrot.slane %v1847_v26, 1  ;;  %v2295_v24 = vmax.f32 %v2293_v52, %v2294_v43 }
 0x5c0   : > { %v1937_v22 = vmax.f32 %v1935_v45, %v1936_v54  ;;  %v2027_v29 = vmax.f32 %v2025_v27, %v2026_v18  ;;  %v2118_v1 = vrot.slane %v2117_v56, 1  ;;  %v2207_v6 = vmax.f32 %v2205_v32, %v2206_v4 }
 0x5c1   : > { %v1669_v33 = vmax.f32 %v1667_v46, %v1668_v57  ;;  %v1759_v35 = vmax.f32 %v1757_v15, %v1758_v12  ;;  %v1849_v55 = vmax.f32 %v1847_v26, %v1848_v20  ;;  %v2296_v17 = vrot.slane %v2295_v24, 2 }
 0x5c2   : > { %v1938_v42 = vrot.slane %v1937_v22, 1  ;;  %v2028_v31 = vrot.slane %v2027_v29, 1  ;;  %v2208_v49 = vrot.slane %v2207_v6, 1  ;;  %v2119_v48 = vmax.f32 %v2117_v56, %v2118_v1 }
 0x5c3   : > { %v2302_v11 = vsel %vm2300_vm13, %v1669_v33, %v1759_v35  ;;  %v2297_v53 = vmax.f32 %v2295_v24, %v2296_v17 }
 0x5c4   : > { %v1939_v5 = vmax.f32 %v1937_v22, %v1938_v42  ;;  %v2029_v14 = vmax.f32 %v2027_v29, %v2028_v31  ;;  %v2305_v63 = vsel %vm2303_vm7, %v2302_v11, %v1849_v55  ;;  %v2209_v30 = vmax.f32 %v2207_v6, %v2208_v49 }
 0x5c5   : > { %v2298_v37 = vrot.slane %v2297_v53, 1 }
 0x5c6   : > { %v2308_v13 = vsel %vm2306_vm8, %v2305_v63, %v1939_v5 }
 0x5c7   : > { %v2311_v23 = vsel %vm2309_vm4, %v2308_v13, %v2029_v14  ;;  %v2299_v19 = vmax.f32 %v2297_v53, %v2298_v37 }
 0x5c8   : > { %v2314_v51 = vsel %vm2312_vm15, %v2311_v23, %v2119_v48 }
 0x5c9   : > { %v2317_v62 = vsel %vm2315_vm0, %v2314_v51, %v2209_v30  ;;  %2336 = sbr.rel (%p3201_p10) target bundleno = 1951 (0x79f), region = 48 }
 0x5ca   : > { %v2320_v28 = vsel %vm2318_vm6, %v2317_v62, %v2299_v19 }
 0x5cb   : > { %vm2322_vm10 = vcmp.lt.f32.partialorder %v2320_v28, -1e+37 }
 0x5cc   : > { %v2324_v40 = vsel %vm2322_vm10, 0.0, %v2320_v28 }
 0x5cd   : > { %2332 = vst [vmem:[%s4989_s26 + $0x8] sm:$0xff] %v2324_v40 }
 0x5ce   : > { %v3232_v16 = vld [vmem:[#allocation3 + $0x370] sm:$0xf]  ;;  %v3432_v7 = vld [vmem:[#allocation3 + $0x374] sm:$0xf0]  ;;  %v3228_v9 = vld [vmem:[#allocation3 + $0x360] sm:$0xf] }
 0x5cf   : > { %v3264_v41 = vld [vmem:[#allocation3 + $0x3f0] sm:$0xf]  ;;  %v3233_v25 = vor.u32 %v3432_v7, %v3232_v16  ;;  %v3440_v21 = vld [vmem:[#allocation3 + $0x3f4] sm:$0xf0]  ;;  %v3431_v3 = vld [vmem:[#allocation3 + $0x364] sm:$0xf0] }
 0x5d0   : > { %v3265_v61 = vor.u32 %v3440_v21, %v3264_v41  ;;  %v3260_v8 = vld [vmem:[#allocation3 + $0x3e0] sm:$0xf]  ;;  %v3439_v34 = vld [vmem:[#allocation3 + $0x3e4] sm:$0xf0]  ;;  %v3229_v38 = vor.u32 %v3431_v3, %v3228_v9  ;;  %v3224_v36 = vld [vmem:[#allocation3 + $0x350] sm:$0xf] }
 0x5d1   : > { %2504 = vmatpush.bf16.msra.mxu0 %v3233_v25  ;;  %v3261_v44 = vor.u32 %v3439_v34, %v3260_v8  ;;  %v3430_v39 = vld [vmem:[#allocation3 + $0x354] sm:$0xf0]  ;;  %v3256_v10 = vld [vmem:[#allocation3 + $0x3d0] sm:$0xf]  ;;  %v3220_v2 = vld [vmem:[#allocation3 + $0x340] sm:$0xf] }
 0x5d2   : > { %2518 = vmatpush.bf16.msra.mxu1 %v3265_v61  ;;  %v3438_v58 = vld [vmem:[#allocation3 + $0x3d4] sm:$0xf0]  ;;  %v3225_v59 = vor.u32 %v3430_v39, %v3224_v36  ;;  %v3429_v45 = vld [vmem:[#allocation3 + $0x344] sm:$0xf0]  ;;  %v3252_v27 = vld [vmem:[#allocation3 + $0x3c0] sm:$0xf] }
 0x5d3   : > { %v3257_v0 = vor.u32 %v3438_v58, %v3256_v10  ;;  %v3437_v60 = vld [vmem:[#allocation3 + $0x3c4] sm:$0xf0]  ;;  %v3221_v50 = vor.u32 %v3429_v45, %v3220_v2  ;;  %v3216_v46 = vld [vmem:[#allocation3 + $0x330] sm:$0xf]  ;;  %v3428_v15 = vld [vmem:[#allocation3 + $0x334] sm:$0xf0] }
 0x5d4   : > { %v3253_v26 = vor.u32 %v3437_v60, %v3252_v27  ;;  %v3296_v52 = vld [vmem:[#allocation3 + $0x470] sm:$0xf]  ;;  %v3448_v54 = vld [vmem:[#allocation3 + $0x474] sm:$0xf0]  ;;  %v3292_v18 = vld [vmem:[#allocation3 + $0x460] sm:$0xf]  ;;  %v3217_v20 = vor.u32 %v3428_v15, %v3216_v46 }
 0x5d5   : > { %2505 = vmatpush.bf16.msra.mxu0 %v3229_v38  ;;  %v3248_v47 = vld [vmem:[#allocation3 + $0x3b0] sm:$0xf]  ;;  %v3436_v32 = vld [vmem:[#allocation3 + $0x3b4] sm:$0xf0]  ;;  %v3297_v57 = vor.u32 %v3448_v54, %v3296_v52  ;;  %v3447_v12 = vld [vmem:[#allocation3 + $0x464] sm:$0xf0] }
 0x5d6   : > { %2519 = vmatpush.bf16.msra.mxu1 %v3261_v44  ;;  %v3212_v43 = vld [vmem:[#allocation3 + $0x320] sm:$0xf]  ;;  %v3293_v22 = vor.u32 %v3447_v12, %v3292_v18  ;;  %v3249_v29 = vor.u32 %v3436_v32, %v3248_v47  ;;  %v3427_v56 = vld [vmem:[#allocation3 + $0x324] sm:$0xf0]  ;;  %v3288_v4 = vld [vmem:[#allocation3 + $0x450] sm:$0xf] }
 0x5d7   : > { %2584 = vmatpush.bf16.msra.mxu2 %v3297_v57  ;;  %v3446_v33 = vld [vmem:[#allocation3 + $0x454] sm:$0xf0]  ;;  %v3244_v35 = vld [vmem:[#allocation3 + $0x3a0] sm:$0xf]  ;;  %v3435_v55 = vld [vmem:[#allocation3 + $0x3a4] sm:$0xf0]  ;;  %v3213_v24 = vor.u32 %v3427_v56, %v3212_v43 }
 0x5d8   : > { %v3208_v42 = vld [vmem:[#allocation3 + $0x310] sm:$0xf]  ;;  %v3289_v31 = vor.u32 %v3446_v33, %v3288_v4  ;;  %v3245_v1 = vor.u32 %v3435_v55, %v3244_v35  ;;  %v3426_v6 = vld [vmem:[#allocation3 + $0x314] sm:$0xf0]  ;;  %v3284_v17 = vld [vmem:[#allocation3 + $0x440] sm:$0xf] }
 0x5d9   : > { %2506 = vmatpush.bf16.msra.mxu0 %v3225_v59  ;;  %v3445_v11 = vld [vmem:[#allocation3 + $0x444] sm:$0xf0]  ;;  %v3240_v5 = vld [vmem:[#allocation3 + $0x390] sm:$0xf]  ;;  %v3434_v49 = vld [vmem:[#allocation3 + $0x394] sm:$0xf0]  ;;  %v3209_v14 = vor.u32 %v3426_v6, %v3208_v42 }
 0x5da   : > { %2520 = vmatpush.bf16.msra.mxu1 %v3257_v0  ;;  %v3285_v53 = vor.u32 %v3445_v11, %v3284_v17  ;;  %v3241_v63 = vor.u32 %v3434_v49, %v3240_v5  ;;  %v3204_v48 = vld [vmem:[#allocation3 + $0x300] sm:$0xf]  ;;  %v3425_v13 = vld [vmem:[#allocation3 + $0x304] sm:$0xf0]  ;;  %v2339_v19 = vld [vmem:[#allocation2 + $0x10] sm:$0xff] }
 0x5db   : > { %2585 = vmatpush.bf16.msra.mxu2 %v3293_v22  ;;  %v3236_v30 = vld [vmem:[#allocation3 + $0x380] sm:$0xf]  ;;  %v3433_v37 = vld [vmem:[#allocation3 + $0x384] sm:$0xf0]  ;;  %v3205_v23 = vor.u32 %v3425_v13, %v3204_v48  ;;  %v2340_v40 = vld [vmem:[#allocation2 + $0x18] sm:$0xff] }
 0x5dc   : > { %v2337_v51 = vld [vmem:[#allocation2] sm:$0xff]  ;;  %v3237_v62 = vor.u32 %v3433_v37, %v3236_v30  ;;  %v2338_v28 = vld [vmem:[#allocation2 + $0x8] sm:$0xff]  ;;  %v3280_v41 = vld [vmem:[#allocation3 + $0x430] sm:$0xf] }
 0x5dd   : > { %2507 = vmatpush.bf16.msra.mxu0 %v3221_v50  ;;  %v2405_v16 = vpack.c.bf16 %v2339_v19, %v2337_v51  ;;  %v2406_v7 = vpack.c.bf16 %v2340_v40, %v2338_v28  ;;  %v3444_v25 = vld [vmem:[#allocation3 + $0x434] sm:$0xf0]  ;;  %v3276_v9 = vld [vmem:[#allocation3 + $0x420] sm:$0xf]  ;;  %v3443_v3 = vld [vmem:[#allocation3 + $0x424] sm:$0xf0] }
 0x5de   : > { %2521 = vmatpush.bf16.msra.mxu1 %v3253_v26  ;;  %v3281_v21 = vor.u32 %v3444_v25, %v3280_v41  ;;  %v3277_v61 = vor.u32 %v3443_v3, %v3276_v9  ;;  %v3272_v8 = vld [vmem:[#allocation3 + $0x410] sm:$0xf]  ;;  %v3442_v34 = vld [vmem:[#allocation3 + $0x414] sm:$0xf0]  ;;  %v3268_v44 = vld [vmem:[#allocation3 + $0x400] sm:$0xf] }
 0x5df   : > { %2586 = vmatpush.bf16.msra.mxu2 %v3289_v31  ;;  %v3273_v38 = vor.u32 %v3442_v34, %v3272_v8  ;;  %v3441_v36 = vld [vmem:[#allocation3 + $0x404] sm:$0xf0]  ;;  %v3328_v10 = vld [vmem:[#allocation3 + $0x4f0] sm:$0xf]  ;;  %v3456_v58 = vld [vmem:[#allocation3 + $0x4f4] sm:$0xf0] }
 0x5e0   : > { %v3269_v39 = vor.u32 %v3441_v36, %v3268_v44  ;;  %v3324_v59 = vld [vmem:[#allocation3 + $0x4e0] sm:$0xf]  ;;  %v3329_v0 = vor.u32 %v3456_v58, %v3328_v10  ;;  %v3455_v2 = vld [vmem:[#allocation3 + $0x4e4] sm:$0xf0]  ;;  %v3320_v27 = vld [vmem:[#allocation3 + $0x4d0] sm:$0xf] }
 0x5e1   : > { %2508 = vmatpush.bf16.msra.mxu0 %v3217_v20  ;;  %v3325_v45 = vor.u32 %v3455_v2, %v3324_v59  ;;  %v3454_v60 = vld [vmem:[#allocation3 + $0x4d4] sm:$0xf0]  ;;  %v3316_v46 = vld [vmem:[#allocation3 + $0x4c0] sm:$0xf]  ;;  %v3453_v15 = vld [vmem:[#allocation3 + $0x4c4] sm:$0xf0] }
 0x5e2   : > { %2522 = vmatpush.bf16.msra.mxu1 %v3249_v29  ;;  %2650 = vmatpush.bf16.msra.mxu3 %v3329_v0  ;;  %v3321_v50 = vor.u32 %v3454_v60, %v3320_v27  ;;  %v3317_v26 = vor.u32 %v3453_v15, %v3316_v46  ;;  %v2407_v18 = vld [vmem:[%s5046_s4 + $0x4] ss:$0 sm:$0xff]  ;;  %v3312_v4 = vld [vmem:[#allocation3 + $0x4b0] sm:$0xf]  ;;  %v3452_v33 = vld [vmem:[#allocation3 + $0x4b4] sm:$0xf0] }
 0x5e3   : > { %2587 = vmatpush.bf16.msra.mxu2 %v3285_v53  ;;  %v3313_v35 = vor.u32 %v3452_v33, %v3312_v4  ;;  %v3308_v55 = vld [vmem:[#allocation3 + $0x4a0] sm:$0xf]  ;;  %v3304_v31 = vld [vmem:[#allocation3 + $0x490] sm:$0xf]  ;;  %v3449_v11 = vld [vmem:[#allocation3 + $0x484] sm:$0xf0] }
 0x5e4   : > { %v3300_v17 = vld [vmem:[#allocation3 + $0x480] sm:$0xf] }
 0x5e5   : > { %2509 = vmatpush.bf16.msra.mxu0 %v3213_v24  ;;  %v3451_v24 = vld [vmem:[#allocation3 + $0x4a4] sm:$0xf0]  ;;  %v3301_v5 = vor.u32 %v3449_v11, %v3300_v17 }
 0x5e6   : > { %2523 = vmatpush.bf16.msra.mxu1 %v3245_v1  ;;  %2651 = vmatpush.bf16.msra.mxu3 %v3325_v45  ;;  %v3309_v42 = vor.u32 %v3451_v24, %v3308_v55  ;;  %v3450_v1 = vld [vmem:[#allocation3 + $0x494] sm:$0xf0] }
 0x5e7   : > { %2588 = vmatpush.bf16.msra.mxu2 %v3281_v21  ;;  %v3305_v6 = vor.u32 %v3450_v1, %v3304_v31 }
 0x5e9   : > { %2510 = vmatpush.bf16.msra.mxu0 %v3209_v14  ;;  %v2535_v14 = vld [vmem:[%s5046_s4 + $0x5] ss:$0 sm:$0xff] }
 0x5ea   : > { %2524 = vmatpush.bf16.msra.mxu1 %v3241_v63  ;;  %2652 = vmatpush.bf16.msra.mxu3 %v3321_v50 }
 0x5eb   : > { %2589 = vmatpush.bf16.msra.mxu2 %v3277_v61 }
 0x5ed   : > { %2511 = vmatpush.bf16.msra.mxu0 %v3205_v23  ;;  %v2601_v23 = vld [vmem:[%s5046_s4 + $0x6] ss:$0 sm:$0xff] }
 0x5ee   : > { %2525 = vmatpush.bf16.msra.mxu1 %v3237_v62  ;;  %2653 = vmatpush.bf16.msra.mxu3 %v3317_v26 }
 0x5ef   : > { %2590 = vmatpush.bf16.msra.mxu2 %v3273_v38 }
 0x5f0   : > { %2512 = vmatmul.bf16.vlgmr.msra.gmra.mxu0 %v2405_v16 }
 0x5f1   : > { %2526 = vmatmul.bf16.vlgmr.msra.gmra.mxu1 %v2406_v7 }
 0x5f2   : > { %2654 = vmatpush.bf16.msra.mxu3 %v3313_v35 }
 0x5f3   : > { %2591 = vmatpush.bf16.msra.mxu2 %v3269_v39 }
 0x5f6   : > { %2655 = vmatpush.bf16.msra.mxu3 %v3309_v42 }
 0x5fa   : > { %2656 = vmatpush.bf16.msra.mxu3 %v3305_v6 }
 0x5fe   : > { %2657 = vmatpush.bf16.msra.mxu3 %v3301_v5 }
 0x66d   : > { %v2513_v52 = vpop.f32.mrf.mxu0 }
 0x66e   : > { %v2527_v54 = vpop.f32.mrf.mxu1  ;;  %v2514_v47 = vadd.f32 %v2513_v52, %v2407_v18 }
 0x670   : > { %v2528_v57 = vadd.f32 %v2527_v54, %v2514_v47 }
 0x672   : > { %v2532_v22 = vmax.f32 %v2528_v57, 0.0 }
 0x675   : > { %v2515_v32 = vpop.f32.mrf.mxu0 }
 0x676   : > { %v2516_v12 = vadd.f32 %v2515_v32, %v2407_v18  ;;  %v2529_v20 = vpop.f32.mrf.mxu1 }
 0x678   : > { %v2530_v43 = vadd.f32 %v2529_v20, %v2516_v12 }
 0x67a   : > { %v2533_v29 = vmax.f32 %v2530_v43, 0.0 }
 0x67c   : > { %v2534_v56 = vpack.c.bf16 %v2533_v29, %v2532_v22 }
 0x67e   : > { %2592 = vmatmul.bf16.vlgmr.msra.gmra.mxu2 %v2534_v56 }
 0x701   : > { %v2593_v49 = vpop.f32.mrf.mxu2 }
 0x702   : > { %v2594_v53 = vadd.f32 %v2593_v49, %v2535_v14 }
 0x704   : > { %v2598_v13 = vmax.f32 %v2594_v53, 0.0 }
 0x709   : > { %v2595_v63 = vpop.f32.mrf.mxu2 }
 0x70a   : > { %v2596_v48 = vadd.f32 %v2595_v63, %v2535_v14 }
 0x70c   : > { %v2599_v30 = vmax.f32 %v2596_v48, 0.0 }
 0x70e   : > { %v2600_v37 = vpack.c.bf16 %v2599_v30, %v2598_v13 }
 0x710   : > { %2658 = vmatmul.bf16.vlgmr.msra.gmra.mxu3 %v2600_v37 }
 0x793   : > { %v2659_v51 = vpop.f32.mrf.mxu3 }
 0x794   : > { %v2660_v19 = vadd.f32 %v2659_v51, %v2601_v23 }
 0x796   : > { %2664 = vst [vmem:[%s3703_s16] sm:$0xff] %v2660_v19 }
 0x79b   : > { %v2661_v62 = vpop.f32.mrf.mxu3 }
 0x79c   : > { %v2662_v28 = vadd.f32 %v2661_v62, %v2601_v23 }
 0x79e   : > { %2665 = vst [vmem:[%s3703_s16 + $0x8] sm:$0xff] %v2662_v28 }
 0x79f PF: > { %s16_s22 = sadd.s32 1, %s3602_s22   ;;  %s5279_s18 = smov %s3594_s20 }
 0x7a0   : > { %p13_p11 = scmp.ge.s32.totalorder %s16_s22, 6   ;;  %s5280_s19 = smov %s3598_s21 }
 0x7a1   : > { %s5281_s20 = smov %s5284_s24  ;;  %s5282_s21 = smov %s5288_s25 }
 0x7a2   :  { %15 = sbr.rel (!%p13_p11) target bundleno = 3 (0x3), region = 89 }
 0x7a7   :  { %2687 = vsyncpa [#allocation4], 1 }
 0x7a8   :  { %2689 = vsyncpa [#allocation4 + $0x1], 1 }

</bundles_post_ra>
